<compile_context>
chip_gen: v5e
topology: v5e:2x2
jax: 0.10.0
libtpu: 0.0.40
codegen_flags: <defaults>
</compile_context>

<pallas_src>
import functools

import numpy as np
import jax
import jax.numpy as jnp
from jax import lax
from jax.experimental import pallas as pl
from jax.experimental.pallas import tpu as pltpu


def _dtype_bytes(dt):
    return np.dtype(dt).itemsize


# ---------------------------------------------------------------------------
# Tiled per-layer kernel: Linear (no bias) -> BatchNorm1d (training) [-> ReLU]
# grid = (2, B // m_tile); phase (axis 0) is outermost, M tiles innermost.
# ---------------------------------------------------------------------------
def _layer_tiled_kernel(x_ref, w_ref, gb_ref, o_ref, sum_ref, sq_ref, *, eps, batch, relu):
    phase = pl.program_id(0)   # 0: accumulate stats, 1: normalize + write
    m = pl.program_id(1)

    @pl.when(jnp.logical_and(phase == 0, m == 0))
    def _init():
        sum_ref[...] = jnp.zeros_like(sum_ref)
        sq_ref[...] = jnp.zeros_like(sq_ref)

    # MXU matmul: bf16 x bf16 -> f32 accumulate.  Linear bias is omitted: training-mode
    # BatchNorm mean subtraction cancels it exactly.
    y = jnp.dot(x_ref[...].astype(jnp.bfloat16), w_ref[...],
                preferred_element_type=jnp.float32)                       # [mt, F] f32

    @pl.when(phase == 0)
    def _accumulate():
        sum_ref[...] += jnp.sum(y, axis=0, keepdims=True)
        sq_ref[...] += jnp.sum(y * y, axis=0, keepdims=True)

    @pl.when(phase == 1)
    def _normalize():
        inv_b = 1.0 / float(batch)
        mean = sum_ref[...] * inv_b
        var = sq_ref[...] * inv_b - mean * mean                           # one-pass variance
        gamma = gb_ref[0:1, :]
        beta = gb_ref[1:2, :]
        scale = gamma * lax.rsqrt(var + eps)                              # gamma folded in
        shift = beta - mean * scale
        out = y * scale + shift
        if relu:
            out = jnp.maximum(out, 0.0)
        o_ref[...] = out.astype(o_ref.dtype)


def _layer_vmem_limit(m_tile, in_dim, f, in_bytes, out_bytes):
    wt = in_dim * f * 2                   # resident bf16 weights (single buffer)
    xb = 2 * m_tile * in_dim * in_bytes   # double-buffered activation tile
    ob = 2 * m_tile * f * out_bytes       # double-buffered output tile
    yv = m_tile * f * 4                   # live f32 matmul result
    vecs = 3 * 8 * f * 4                  # gb + sum + sq (padded to 8 sublanes)
    est = wt + xb + ob + yv + vecs
    return int(min(max(2 * est, 32 * 1024 * 1024), 100 * 1024 * 1024))


def _layer_tiled(h, w_t, gb, *, relu, out_dtype, eps, m_tile):
    batch, in_dim = h.shape
    f = w_t.shape[1]
    n_tiles = batch // m_tile
    in_bytes = _dtype_bytes(h.dtype)
    out_bytes = _dtype_bytes(out_dtype)
    kernel = functools.partial(_layer_tiled_kernel, eps=eps, batch=batch, relu=relu)
    cost = pl.CostEstimate(
        flops=2 * 2 * batch * in_dim * f,     # matmul runs in both phases
        transcendentals=0,
        bytes_accessed=2 * batch * in_dim * in_bytes + in_dim * f * 2 + batch * f * out_bytes,
    )
    return pl.pallas_call(
        kernel,
        out_shape=jax.ShapeDtypeStruct((batch, f), out_dtype),
        grid=(2, n_tiles),                                          # (phase, M tile)
        in_specs=[
            pl.BlockSpec((m_tile, in_dim), lambda p, m: (m, 0)),    # activations: stream
            pl.BlockSpec((in_dim, f), lambda p, m: (0, 0)),         # weights: VMEM-resident
            pl.BlockSpec((2, f), lambda p, m: (0, 0)),              # [gamma; beta]: resident
        ],
        # Phase 0 never writes the output; mapping it to block (0, 0) there means no HBM
        # write-back occurs until phase 1 has filled that block.
        out_specs=pl.BlockSpec((m_tile, f), lambda p, m: (m * p, 0)),
        scratch_shapes=[
            pltpu.VMEM((1, f), jnp.float32),                        # per-feature sum
            pltpu.VMEM((1, f), jnp.float32),                        # per-feature sum of squares
        ],
        compiler_params=pltpu.CompilerParams(
            dimension_semantics=("arbitrary", "arbitrary"),
            vmem_limit_bytes=_layer_vmem_limit(m_tile, in_dim, f, in_bytes, out_bytes),
        ),
        cost_estimate=cost,
    )(h, w_t, gb)


# ---------------------------------------------------------------------------
# Fully fused single-launch kernel for small batches (single M tile).
# ---------------------------------------------------------------------------
def _encoder_fused_kernel(x_ref, w1_ref, gb1_ref, w2_ref, gb2_ref, w3_ref, gb3_ref,
                          o_ref, *, eps):
    def layer(h_bf16, w_ref, gb_ref, relu):
        y = jnp.dot(h_bf16, w_ref[...], preferred_element_type=jnp.float32)   # [B, F] f32
        inv_b = 1.0 / float(y.shape[0])
        mean = jnp.sum(y, axis=0, keepdims=True) * inv_b
        var = jnp.sum(y * y, axis=0, keepdims=True) * inv_b - mean * mean     # one-pass
        gamma = gb_ref[0:1, :]
        beta = gb_ref[1:2, :]
        scale = gamma * lax.rsqrt(var + eps)
        out = y * scale + (beta - mean * scale)
        if relu:
            out = jnp.maximum(out, 0.0)
        return out

    h1 = layer(x_ref[...].astype(jnp.bfloat16), w1_ref, gb1_ref, relu=True)
    h2 = layer(h1.astype(jnp.bfloat16), w2_ref, gb2_ref, relu=True)
    h3 = layer(h2.astype(jnp.bfloat16), w3_ref, gb3_ref, relu=False)
    o_ref[...] = h3.astype(o_ref.dtype)


def _encoder_fused(x, params, eps):
    (w1, gb1), (w2, gb2), (w3, gb3) = [(p["w_t"], p["gb"]) for p in params]
    batch, in_dim = x.shape
    hidden = w1.shape[1]
    out_dim = w3.shape[1]
    w_bytes = (in_dim * hidden + hidden * hidden + hidden * out_dim) * 2
    est = w_bytes + batch * (in_dim + 3 * hidden + out_dim) * 4 + 6 * 8 * max(hidden, out_dim) * 4
    cost = pl.CostEstimate(
        flops=2 * batch * (in_dim * hidden + hidden * hidden + hidden * out_dim),
        transcendentals=0,
        bytes_accessed=batch * in_dim * 4 + w_bytes + batch * out_dim * 4,
    )
    kernel = functools.partial(_encoder_fused_kernel, eps=eps)
    return pl.pallas_call(
        kernel,
        out_shape=jax.ShapeDtypeStruct((batch, out_dim), jnp.float32),
        grid=(1,),
        in_specs=[
            pl.BlockSpec((batch, in_dim), lambda i: (0, 0)),
            pl.BlockSpec((in_dim, hidden), lambda i: (0, 0)),
            pl.BlockSpec((2, hidden), lambda i: (0, 0)),
            pl.BlockSpec((hidden, hidden), lambda i: (0, 0)),
            pl.BlockSpec((2, hidden), lambda i: (0, 0)),
            pl.BlockSpec((hidden, out_dim), lambda i: (0, 0)),
            pl.BlockSpec((2, out_dim), lambda i: (0, 0)),
        ],
        out_specs=pl.BlockSpec((batch, out_dim), lambda i: (0, 0)),
        compiler_params=pltpu.CompilerParams(
            dimension_semantics=("arbitrary",),
            vmem_limit_bytes=int(min(max(2 * est, 32 * 1024 * 1024), 100 * 1024 * 1024)),
        ),
        cost_estimate=cost,
    )(x, w1, gb1, w2, gb2, w3, gb3)


def _pick_m_tile(batch, preferred=256):
    # Multiple of 16 (dense bf16 sublane packing); 256 feeds the v6e/v7x MXU, 128 the v5e MXU.
    for t in (256, 128, 64, 32, 16):
        if t <= preferred and batch % t == 0:
            return t
    return None


def encoder_forward(x, params, eps=1e-5, m_tile=256):
    """Encoder forward: (Linear -> BN -> ReLU) x2 + (Linear -> BN).  x: [B, in_dim] f32."""
    batch = x.shape[0]
    mt = _pick_m_tile(batch, m_tile)
    if batch <= 256 or mt is None:
        # Single-tile problem (or ragged batch): fully fused 3-layer kernel, one launch.
        # TODO(synk): mask the ragged last M tile instead of falling back for large batches
        #             that are not a multiple of 16.
        return _encoder_fused(x, params, eps)
    n_layers = len(params)
    h = x
    for li, p in enumerate(params):
        last = li == n_layers - 1
        h = _layer_tiled(
            h, p["w_t"], p["gb"],
            relu=not last,
            out_dtype=jnp.float32 if last else jnp.bfloat16,   # bf16 feeds the next MXU matmul
            eps=eps, m_tile=mt,
        )
    return h


def init_encoder_params(key, in_dim, hidden_dim, out_dim):
    """Deterministic init mirroring nn.Linear default (U[-1/sqrt(fan_in), 1/sqrt(fan_in)])
    and nn.BatchNorm1d default (gamma=1, beta=0).
    Weights are pre-transposed to [in, out] and stored bf16 for the MXU."""
    dims = [(in_dim, hidden_dim), (hidden_dim, hidden_dim), (hidden_dim, out_dim)]
    params = []
    for fan_in, fan_out in dims:
        key, kw, kb = jax.random.split(key, 3)
        bound = 1.0 / (float(fan_in) ** 0.5)
        w = jax.random.uniform(kw, (fan_out, fan_in), jnp.float32, -bound, bound)
        b = jax.random.uniform(kb, (fan_out,), jnp.float32, -bound, bound)
        w_t = jnp.asarray(w.T, dtype=jnp.bfloat16)            # [in, out], pre-transposed, bf16
        gb = jnp.stack(
            [jnp.ones((fan_out,), jnp.float32), jnp.zeros((fan_out,), jnp.float32)], axis=0
        )                                                      # [2, out] = [gamma; beta]
        params.append({"w_t": w_t, "b": b, "gb": gb})
    return params


def encoder_reference(x, params, eps=1e-5):
    """Pure-JAX reference of the PyTorch forward (training-mode BN).
    Uses the same bf16-input / f32-accumulate matmul precision as the kernels; keeps the
    Linear bias (which the kernels legitimately drop: BN mean subtraction cancels it)."""
    n_layers = len(params)
    h = x
    for li, p in enumerate(params):
        y = jnp.dot(h.astype(jnp.bfloat16), p["w_t"], preferred_element_type=jnp.float32)
        y = y + p["b"]
        mean = jnp.mean(y, axis=0, keepdims=True)
        var = jnp.mean((y - mean) ** 2, axis=0, keepdims=True)
        y = (y - mean) * lax.rsqrt(var + eps)
        y = y * p["gb"][0] + p["gb"][1]
        if li < n_layers - 1:
            y = jnp.maximum(y, 0.0)
        h = y
    return h


if __name__ == "__main__":
    # Small shapes consistent with Encoder(in_dim, hidden_dim, out_dim).
    IN_DIM, HIDDEN_DIM, OUT_DIM = 256, 512, 256

    key = jax.random.PRNGKey(0)
    key, kx_big, kx_small = jax.random.split(key, 3)
    params = init_encoder_params(key, IN_DIM, HIDDEN_DIM, OUT_DIM)

    # Batch large enough to exercise the M-tiled path (2 tiles of 256 per phase, per layer).
    x_big = jax.random.normal(kx_big, (512, IN_DIM), jnp.float32)
    out_big = jax.block_until_ready(encoder_forward(x_big, params))
    ref_big = encoder_reference(x_big, params)
    assert out_big.shape == (512, OUT_DIM)
    assert jnp.allclose(out_big, ref_big, atol=5e-3, rtol=5e-3), "tiled path mismatch vs reference"

    # Tiny batch exercises the fully fused single-launch path.
    x_small = jax.random.normal(kx_small, (8, IN_DIM), jnp.float32)
    out_small = jax.block_until_ready(encoder_forward(x_small, params))
    ref_small = encoder_reference(x_small, params)
    assert out_small.shape == (8, OUT_DIM)
    assert jnp.allclose(out_small, ref_small, atol=5e-3, rtol=5e-3), "fused path mismatch vs reference"

    print("KERNEL_OK")
</pallas_src>

<mosaic_0001>
module attributes {stable_mosaic.version = 11 : i64} {
  func.func @_layer_tiled_kernel(%arg0: i32, %arg1: i32, %arg2: memref<256x256xf32, #tpu.memory_space<vmem>>, %arg3: memref<256x512xbf16, #tpu.memory_space<vmem>>, %arg4: memref<2x512xf32, #tpu.memory_space<vmem>>, %arg5: memref<256x512xbf16, #tpu.memory_space<vmem>>, %arg6: memref<1x512xf32, #tpu.memory_space<vmem>>, %arg7: memref<1x512xf32, #tpu.memory_space<vmem>>) attributes {dimension_semantics = [#tpu.dimension_semantics<arbitrary>, #tpu.dimension_semantics<arbitrary>], iteration_bounds = array<i64: 2, 2>, scalar_prefetch = 0 : i64, scratch_operands = 2 : i64, tpu.core_type = #tpu.core_type<tc>, window_params = [{transform_indices = @transform_0, window_bounds = array<i64: 256, 256>}, {pipeline_mode = #tpu.pipeline_mode<synchronous>, transform_indices = @transform_1, window_bounds = array<i64: 256, 512>}, {pipeline_mode = #tpu.pipeline_mode<synchronous>, transform_indices = @transform_2, window_bounds = array<i64: 2, 512>}, {transform_indices = @transform_3, window_bounds = array<i64: 256, 512>}]} {
    %c0_i32 = arith.constant 0 : i32
    %0 = arith.cmpi eq, %arg0, %c0_i32 : i32
    %c0_i32_0 = arith.constant 0 : i32
    %1 = arith.cmpi eq, %arg1, %c0_i32_0 : i32
    %2 = arith.andi %0, %1 : i1
    %3 = arith.extui %2 : i1 to i32
    %c0_i32_1 = arith.constant 0 : i32
    %4 = arith.cmpi ne, %3, %c0_i32_1 : i32
    scf.if %4 {
      %cst_8 = arith.constant 0.000000e+00 : f32
      %15 = vector.broadcast %cst_8 : f32 to vector<1x512xf32>
      %c0_9 = arith.constant 0 : index
      %c0_10 = arith.constant 0 : index
      %16 = vector.load %arg6[%c0_9, %c0_10] : memref<1x512xf32, #tpu.memory_space<vmem>>, vector<1x512xf32>
      tpu.vector_store %arg6[%c0_9, %c0_10], %15 {strides = array<i32>} : memref<1x512xf32, #tpu.memory_space<vmem>>, vector<1x512xf32>,
      %cst_11 = arith.constant 0.000000e+00 : f32
      %17 = vector.broadcast %cst_11 : f32 to vector<1x512xf32>
      %c0_12 = arith.constant 0 : index
      %c0_13 = arith.constant 0 : index
      %18 = vector.load %arg7[%c0_12, %c0_13] : memref<1x512xf32, #tpu.memory_space<vmem>>, vector<1x512xf32>
      tpu.vector_store %arg7[%c0_12, %c0_13], %17 {strides = array<i32>} : memref<1x512xf32, #tpu.memory_space<vmem>>, vector<1x512xf32>,
    } else {
    }
    %c0 = arith.constant 0 : index
    %c0_2 = arith.constant 0 : index
    %5 = vector.load %arg2[%c0, %c0_2] : memref<256x256xf32, #tpu.memory_space<vmem>>, vector<256x256xf32>
    %6 = arith.truncf %5 : vector<256x256xf32> to vector<256x256xbf16>
    %c0_3 = arith.constant 0 : index
    %c0_4 = arith.constant 0 : index
    %7 = vector.load %arg3[%c0_3, %c0_4] : memref<256x512xbf16, #tpu.memory_space<vmem>>, vector<256x512xbf16>
    %cst = arith.constant dense<0.000000e+00> : vector<256x512xf32>
    %8 = tpu.matmul %6, %7, %cst {dimension_numbers = #tpu.dot_dimension_numbers<[1], [0], [0], [1], [0, 0, 1, 1], [], []>} : vector<256x256xbf16>, vector<256x512xbf16>, vector<256x512xf32> -> vector<256x512xf32>
    %c0_i32_5 = arith.constant 0 : i32
    %9 = arith.cmpi eq, %arg0, %c0_i32_5 : i32
    %10 = arith.extui %9 : i1 to i32
    %c0_i32_6 = arith.constant 0 : i32
    %11 = arith.cmpi ne, %10, %c0_i32_6 : i32
    scf.if %11 {
      %c0_8 = arith.constant 0 : index
      %c0_9 = arith.constant 0 : index
      %15 = vector.load %arg6[%c0_8, %c0_9] : memref<1x512xf32, #tpu.memory_space<vmem>>, vector<1x512xf32>
      %cst_10 = arith.constant dense<0.000000e+00> : vector<512xf32>
      %16 = vector.multi_reduction <add>, %8, %cst_10 [0] : vector<256x512xf32> to vector<512xf32>
      %17 = vector.shape_cast %16 : vector<512xf32> to vector<1x512xf32>
      %18 = arith.addf %15, %17 : vector<1x512xf32>
      %c0_11 = arith.constant 0 : index
      %c0_12 = arith.constant 0 : index
      %19 = vector.load %arg6[%c0_11, %c0_12] : memref<1x512xf32, #tpu.memory_space<vmem>>, vector<1x512xf32>
      tpu.vector_store %arg6[%c0_11, %c0_12], %18 {strides = array<i32>} : memref<1x512xf32, #tpu.memory_space<vmem>>, vector<1x512xf32>,
      %c0_13 = arith.constant 0 : index
      %c0_14 = arith.constant 0 : index
      %20 = vector.load %arg7[%c0_13, %c0_14] : memref<1x512xf32, #tpu.memory_space<vmem>>, vector<1x512xf32>
      %21 = arith.mulf %8, %8 : vector<256x512xf32>
      %cst_15 = arith.constant dense<0.000000e+00> : vector<512xf32>
      %22 = vector.multi_reduction <add>, %21, %cst_15 [0] : vector<256x512xf32> to vector<512xf32>
      %23 = vector.shape_cast %22 : vector<512xf32> to vector<1x512xf32>
      %24 = arith.addf %20, %23 : vector<1x512xf32>
      %c0_16 = arith.constant 0 : index
      %c0_17 = arith.constant 0 : index
      %25 = vector.load %arg7[%c0_16, %c0_17] : memref<1x512xf32, #tpu.memory_space<vmem>>, vector<1x512xf32>
      tpu.vector_store %arg7[%c0_16, %c0_17], %24 {strides = array<i32>} : memref<1x512xf32, #tpu.memory_space<vmem>>, vector<1x512xf32>,
    } else {
    }
    %c1_i32 = arith.constant 1 : i32
    %12 = arith.cmpi eq, %arg0, %c1_i32 : i32
    %13 = arith.extui %12 : i1 to i32
    %c0_i32_7 = arith.constant 0 : i32
    %14 = arith.cmpi ne, %13, %c0_i32_7 : i32
    scf.if %14 {
      %c0_8 = arith.constant 0 : index
      %c0_9 = arith.constant 0 : index
      %15 = vector.load %arg6[%c0_8, %c0_9] : memref<1x512xf32, #tpu.memory_space<vmem>>, vector<1x512xf32>
      %cst_10 = arith.constant 0.001953125 : f32
      %16 = vector.broadcast %cst_10 : f32 to vector<1x512xf32>
      %17 = arith.mulf %15, %16 : vector<1x512xf32>
      %c0_11 = arith.constant 0 : index
      %c0_12 = arith.constant 0 : index
      %18 = vector.load %arg7[%c0_11, %c0_12] : memref<1x512xf32, #tpu.memory_space<vmem>>, vector<1x512xf32>
      %cst_13 = arith.constant 0.001953125 : f32
      %19 = vector.broadcast %cst_13 : f32 to vector<1x512xf32>
      %20 = arith.mulf %18, %19 : vector<1x512xf32>
      %21 = arith.mulf %17, %17 : vector<1x512xf32>
      %22 = arith.subf %20, %21 : vector<1x512xf32>
      %c0_14 = arith.constant 0 : index
      %c0_15 = arith.constant 0 : index
      %23 = vector.load %arg4[%c0_14, %c0_15] : memref<2x512xf32, #tpu.memory_space<vmem>>, vector<1x512xf32>
      %c1 = arith.constant 1 : index
      %c0_16 = arith.constant 0 : index
      %24 = vector.load %arg4[%c1, %c0_16] : memref<2x512xf32, #tpu.memory_space<vmem>>, vector<1x512xf32>
      %cst_17 = arith.constant 9.99999974E-6 : f32
      %25 = vector.broadcast %cst_17 : f32 to vector<1x512xf32>
      %26 = arith.addf %22, %25 : vector<1x512xf32>
      %27 = math.rsqrt %26 : vector<1x512xf32>
      %28 = arith.mulf %23, %27 : vector<1x512xf32>
      %29 = arith.mulf %17, %28 : vector<1x512xf32>
      %30 = arith.subf %24, %29 : vector<1x512xf32>
      %31 = vector.broadcast %28 : vector<1x512xf32> to vector<256x512xf32>
      %32 = arith.mulf %8, %31 : vector<256x512xf32>
      %33 = vector.broadcast %30 : vector<1x512xf32> to vector<256x512xf32>
      %34 = arith.addf %32, %33 : vector<256x512xf32>
      %cst_18 = arith.constant 0.000000e+00 : f32
      %35 = vector.broadcast %cst_18 : f32 to vector<256x512xf32>
      %36 = arith.maximumf %34, %35 : vector<256x512xf32>
      %37 = arith.truncf %36 : vector<256x512xf32> to vector<256x512xbf16>
      %c0_19 = arith.constant 0 : index
      %c0_20 = arith.constant 0 : index
      %38 = vector.load %arg5[%c0_19, %c0_20] : memref<256x512xbf16, #tpu.memory_space<vmem>>, vector<256x512xbf16>
      tpu.vector_store %arg5[%c0_19, %c0_20], %37 {strides = array<i32>} : memref<256x512xbf16, #tpu.memory_space<vmem>>, vector<256x512xbf16>,
    } else {
    }
    return
  }
  func.func @transform_0(%arg0: i32, %arg1: i32) -> (i32, i32) {
    %c0_i32 = arith.constant 0 : i32
    %c0_i32_0 = arith.constant 0 : i32
    return %arg1, %c0_i32 : i32, i32
  }
  func.func @transform_1(%arg0: i32, %arg1: i32) -> (i32, i32) {
    %c0_i32 = arith.constant 0 : i32
    %c0_i32_0 = arith.constant 0 : i32
    %c0_i32_1 = arith.constant 0 : i32
    return %c0_i32, %c0_i32_0 : i32, i32
  }
  func.func @transform_2(%arg0: i32, %arg1: i32) -> (i32, i32) {
    %c0_i32 = arith.constant 0 : i32
    %c0_i32_0 = arith.constant 0 : i32
    %c0_i32_1 = arith.constant 0 : i32
    return %c0_i32, %c0_i32_0 : i32, i32
  }
  func.func @transform_3(%arg0: i32, %arg1: i32) -> (i32, i32) {
    %0 = arith.muli %arg1, %arg0 : i32
    %c0_i32 = arith.constant 0 : i32
    %c0_i32_0 = arith.constant 0 : i32
    return %0, %c0_i32 : i32, i32
  }
}

</mosaic_0001>

<bundles_post_ra>
// kernel: tpu_custom_call.1
= control target key start
LH: loop header
LB: loop body
LE: loop exit
PB: predicated region body
PF: predicated region fallthrough
CT: control target
= control target key end

     0   :  { %s4997_s0 = inlined_call_operand.hbm [shape: f32[512,256], index: 0, kind: input, shape index: {}]   ;;  %s4998_s1 = inlined_call_operand.hbm [shape: bf16[256,512], index: 1, kind: input, shape index: {}]   ;;  %s4999_s2 = inlined_call_operand.hbm [shape: f32[2,512], index: 2, kind: input, shape index: {}]   ;;  %s5000_s3 = inlined_call_operand.hbm [shape: bf16[512,512], index: 3, kind: output, shape index: {}]  }
   0x1   :  { %5134 = sst [smem:[#allocation144_spill]] %s4998_s1 }
   0x2   :  { %5135 = sst [smem:[#allocation145_spill]] %s4999_s2 }
   0x3   :  { %5136 = sst [smem:[#allocation146_spill]] %s5000_s3 }
   0x4   :  { %8 = vsyncpa [#allocation5], 0 }
   0x5   :  { %10 = vsyncpa [#allocation5 + $0x1], 0 }
   0x6   :  { %11 = vsyncpa [#allocation8], 0 }
   0x7   :  { %12 = vsyncpa [#allocation6], 0 }
   0x8   :  { %14 = vsyncpa [#allocation6 + $0x1], 0  ;;  %s3306_s12 = smov 0   ;;  %s3308_s13 = smov 0  }
   0x9   :  { %s3310_s14 = smov 0   ;;  %s3312_s15 = smov 0  }
   0xa   :  { %s3314_s16 = smov 0   ;;  %s3316_s17 = smov 0  }
   0xb   :  { %s3318_s18 = smov 0   ;;  %s3320_s19 = smov 0  }
   0xc   :  { %s3322_s20 = smov 0   ;;  %s3324_s21 = smov 0  }
   0xd   :  { %s3326_s22 = smov 0  }
   0xe LB: > { %5137 = sst [smem:[#allocation14_spill]] %s3237_s12  ;;  %s2584_s23 = sadd.s32 4294967295, %s3277_s22   ;;  %s3277_s22 = sphi %s3326_s22, %s20_s22   ;;  %s3273_s21 = sphi %s3324_s21, %s5579_s21   ;;  %s3269_s20 = sphi %s3322_s20, %s5587_s20   ;;  %s3265_s19 = sphi %s3320_s19, %s5577_s19   ;;  %s3261_s18 = sphi %s3318_s18, %s5586_s18   ;;  %s3257_s17 = sphi %s3316_s17, %s5585_s17   ;;  %s3253_s16 = sphi %s3314_s16, %s5584_s16   ;;  %s3249_s15 = sphi %s3312_s15, %s5583_s15   ;;  %s3245_s14 = sphi %s3310_s14, %s5582_s14   ;;  %s3241_s13 = sphi %s3308_s13, %s5581_s13   ;;  %s3237_s12 = sphi %s3306_s12, %s5580_s12  }
   0xf   : > { %5138 = sst [smem:[#allocation15_spill]] %s3273_s21  ;;  %s2585_s24 = sadd.s32 4294967294, %s3277_s22  }
  0x10   : > { %p52_p0 = scmp.ne.s32.totalorder %s3253_s16, %s3249_s15  ;;  %p3362_p1 = scmp.eq.s32.totalorder %s2584_s23, 0 }
  0x11   : > { %p119_p2 = scmp.ne.s32.totalorder %s3245_s14, %s3241_s13  ;;  %p120_p3 = scmp.eq.s32.totalorder %s2584_s23, 3 }
  0x12   : > { %p3370_p4 = por %p3362_p1, %p52_p0  ;;  %p125_p5 = scmp.ne.s32.totalorder %s3241_s13, %s3237_s12 }
  0x13   : > { %p3376_p6 = por %p120_p3, %p119_p2  ;;  %p126_p7 = scmp.eq.s32.totalorder %s2585_s24, 3 }
  0x14   : > { %p2586_p8 = scmp.ge.s32.totalorder %s3277_s22, 1  ;;  %p133_p9 = scmp.lt.s32.totalorder %s3277_s22, 5 }
  0x15   : > { %p3382_p10 = por %p126_p7, %p125_p5  ;;  %s5145_s1 = sld [smem:[#allocation144_spill]] }
  0x16   : > { %p3386_p11 = pnand %p2586_p8, %p133_p9  ;;  %s3279_s6 = smov [#allocation7]  }
  0x17   : > { %s5142_s28 = scalar_select %p3382_p10, 1, 0 }
  0x18   : > { %p2943_p12 = pneg %p3386_p11  ;;  %s146_s7 = sshll.u32 %s3279_s6, 4  ;;  %s147_s7 = int_to_ptr.vmem [resolvable:$true] %s146_s7 }
  0x19   : > { %5143 = sst [smem:[#allocation16_spill]] %s5142_s28  ;;  %s5001_s11 = smov 256  }
  0x1a   : > { %p2944_p13 = pnand %p2943_p12, %p3362_p1  ;;  %s5146_s2 = sld [smem:[#allocation145_spill]] }
  0x1b   : > { %s144_s5 = sshll.u32 %s5145_s1, 4  ;;  %s5002_s15 = smov 16   ;;  %s145_s5 = int_to_ptr.hbm [resolvable:$true] %s144_s5 }
  0x1c   : > { %2946 = dma.hbm_to_vmem [thread:$0]  (!%p2944_p13), %s145_s5, 8192, %s147_s7, [#allocation8], %s5001_s11, %s5001_s11, %s5002_s15  }
  0x1d   : > { %s3282_s23 = smov [#allocation9]   ;;  %s29_s30 = sadd.s32 1, %s3269_s20 }
  0x1e   : > { %s161_s24 = sshll.u32 %s3282_s23, 4  ;;  %p30_p0 = scmp.ge.s32.totalorder %s29_s30, 2  ;;  %s162_s24 = int_to_ptr.vmem [resolvable:$true] %s161_s24 }
  0x1f   : > { %s32_s4 = sadd.s32 1, %s3273_s21  ;;  %s39_s6 = sadd.s32 1, %s3257_s17 }
  0x20   : > { %s159_s10 = sshll.u32 %s5146_s2, 4  ;;  %p46_p2 = scmp.ne.s32.totalorder %s3257_s17, %s3253_s16  ;;  %s160_s10 = int_to_ptr.hbm [resolvable:$true] %s159_s10 }
  0x21   : > { %2949 = dma.hbm_to_vmem [thread:$0]  (!%p2944_p13), %s160_s10, 128, %s162_s24, [#allocation8]  }
  0x22   : > { %s5589_s30 = smov (%p30_p0, %s29_s30), 0  ;;  %s5591_s4 = smov (!%p30_p0, %s32_s4), %s3273_s21 }
  0x23   : > { %5147 = sst [smem:[#allocation17_spill]] %s5589_s30  ;;  %s36_s5 = ssub.s32 %s3269_s20, %s5589_s30 }
  0x24   : > { %p47_p3 = scmp.eq.s32.totalorder %s3277_s22, 0  ;;  %p34_p5 = scmp.ge.s32.totalorder %s5591_s4, 2 }
  0x25   : > { %p37_p7 = scmp.eq.s32.totalorder %s36_s5, 0  ;;  %s104_s8 = smul.u32 %s3269_s20, %s3273_s21 }
  0x26   : > { %p3414_p8 = por %p47_p3, %p46_p2  ;;  %s5593_s4 = smov (%p34_p5, %s5591_s4), 0 }
  0x27   : > { %5149 = sst [smem:[#allocation18_spill]] %s5593_s4  ;;  %s105_s10 = smul.u32 %s5593_s4, %s5589_s30 }
  0x28   : > { %s3423_s9 = scalar_select %p37_p7, %s3257_s17, %s39_s6  }
  0x29   : > { %s109_s23 = sadd.s32 1, %s3245_s14  ;;  %p2960_p9 = scmp.lt.s32.totalorder %s3277_s22, 4 }
  0x2a   : > { %s172_s24 = sand.u32 1, %s3257_s17   ;;  %s106_s11 = ssub.s32 %s104_s8, %s105_s10 }
  0x2b   : > { %p107_p12 = scmp.eq.s32.totalorder %s106_s11, 0  ;;  %s2590_s15 = sshll.u32 %s172_s24, 9 }
  0x2c   : > { %s2864_s5 = sshll.u32 %s3269_s20, 9  ;;  %s176_s12 = scalar_lea.vmem [#allocation4], %s2590_s15 }
  0x2d   : > { %s3432_s1 = scalar_select %p107_p12, %s3245_s14, %s109_s23  }
  0x2e   : > { %s182_s21 = scalar_lea.hbm %s4997_s0, %s2864_s5  ;;  %s185_s3 = sshll.u32 %s176_s12, 4  ;;  %s186_s3 = int_to_ptr.vmem [resolvable:$true] %s185_s3 }
  0x2f   : > { %s183_s6 = sshll.u32 %s182_s21, 4  ;;  %p2951_p13 = pnand %p2960_p9, %p3414_p8  ;;  %s184_s6 = int_to_ptr.hbm [resolvable:$true] %s183_s6 }
  0x30   : > { %s173_s4 = scalar_lea.sflag [#allocation5], %s172_s24  ;;  %s5150_s30 = smov 16  }
  0x31   : > { %s5151_s8 = smov 256   ;;  %197 = sbr.rel (%p3386_p11) target bundleno = 1078 (0x436), region = 32 }
  0x32   : > { %2953 = dma.hbm_to_vmem [thread:$0]  (!%p2951_p13), %s184_s6, 8192, %s186_s3, %s173_s4, %s5151_s8, %s5151_s8, %s5150_s30  }
  0x36   : > { %s199_s2 = sand.u32 1, %s3253_s16  }
  0x37   : > { %s2595_s28 = sshll.u32 %s199_s2, 9  ;;  %s200_s11 = scalar_lea.sflag [#allocation5], %s199_s2 }
  0x38   : > { %s3447_s12 = scalar_lea.vmem [#allocation4], %s2595_s28 }
  0x39   : > { %3224 = dma.done.wait (%p3370_p4), %s200_s11, 8192  }
  0x3a   : > { %3226 = vsyncadd (%p3370_p4), %s200_s11, 4294959104 }
  0x3b   : > { %3228 = dma.done.wait (%p3362_p1), [#allocation8], 8320  }
  0x3c   : > { %3230 = vsyncadd (%p3362_p1), [#allocation8], 4294958976  ;;  %s234_s3 = sand.u32 1, %s3241_s13   ;;  %p240_p11 = scmp.eq.s32.totalorder %s3265_s19, 0 }
  0x3d   : > { %s2598_s21 = sshll.u32 %s234_s3, 9  ;;  %p241_p0 = scmp.eq.s32.totalorder %s3261_s18, 0 }
  0x3e   : > { %s3462_s29 = scalar_lea.vmem [#allocation10], %s2598_s21 }
  0x3f   : > { %p242_p2 = pnand %p241_p0, %p240_p11 }
  0x41   : > { %245 = sbr.rel (%p242_p2) target bundleno = 75 (0x4b), region = 48 }
  0x46   : > { %v246_v0 = vlaneseq  ;;  %v3283_v1 = vmov 0.0  }
  0x48   : > { %vm248_vm0 = vcmp.lt.s32.totalorder %v246_v0, 512 }
  0x49   : > { %250 = vst.msk [vmem:[#allocation2] sm:$0xf] %vm248_vm0, %v3283_v1 }
  0x4a   : > { %251 = vst.msk [vmem:[#allocation3] sm:$0xf] %vm248_vm0, %v3283_v1 }
  0x4b PF: > { %v2713_v2 = vld [vmem:[#allocation7 + $0xe0] sm:$0xf]  ;;  %v2895_v3 = vld [vmem:[#allocation7 + $0xec] sm:$0xf0]  ;;  %v2893_v7 = vld [vmem:[#allocation7 + $0xe4] sm:$0xf] }
  0x4c   : > { %v2841_v4 = vld [vmem:[#allocation7 + $0x1e0] sm:$0xf]  ;;  %v2714_v5 = vor.u32 %v2895_v3, %v2713_v2  ;;  %v2927_v6 = vld [vmem:[#allocation7 + $0x1ec] sm:$0xf0]  ;;  %v2715_v8 = vld [vmem:[#allocation7 + $0xf0] sm:$0xf0] }
  0x4d   : > { %v2842_v9 = vor.u32 %v2927_v6, %v2841_v4  ;;  %v2718_v10 = vor.u32 %v2893_v7, %v2715_v8  ;;  %v2925_v11 = vld [vmem:[#allocation7 + $0x1e4] sm:$0xf]  ;;  %v2843_v12 = vld [vmem:[#allocation7 + $0x1f0] sm:$0xf0]  ;;  %v2697_v13 = vld [vmem:[#allocation7 + $0xc0] sm:$0xf] }
  0x4e   : > { %732 = vmatpush.bf16.msra.mxu0 %v2714_v5  ;;  %v2846_v14 = vor.u32 %v2925_v11, %v2843_v12  ;;  %v2891_v15 = vld [vmem:[#allocation7 + $0xcc] sm:$0xf0]  ;;  %v2825_v16 = vld [vmem:[#allocation7 + $0x1c0] sm:$0xf]  ;;  %v2889_v20 = vld [vmem:[#allocation7 + $0xc4] sm:$0xf] }
  0x4f   : > { %v2923_v17 = vld [vmem:[#allocation7 + $0x1cc] sm:$0xf0]  ;;  %821 = vmatpush.bf16.msra.mxu1 %v2842_v9  ;;  %910 = vmatpush.bf16.msra.mxu2 %v2718_v10  ;;  %v2698_v18 = vor.u32 %v2891_v15, %v2697_v13  ;;  %v2699_v21 = vld [vmem:[#allocation7 + $0xd0] sm:$0xf0]  ;;  %v2921_v22 = vld [vmem:[#allocation7 + $0x1c4] sm:$0xf] }
  0x50   : > { %v2826_v19 = vor.u32 %v2923_v17, %v2825_v16  ;;  %999 = vmatpush.bf16.msra.mxu3 %v2846_v14  ;;  %v2702_v23 = vor.u32 %v2889_v20, %v2699_v21  ;;  %v2827_v24 = vld [vmem:[#allocation7 + $0x1d0] sm:$0xf0]  ;;  %v2681_v25 = vld [vmem:[#allocation7 + $0xa0] sm:$0xf]  ;;  %v2887_v26 = vld [vmem:[#allocation7 + $0xac] sm:$0xf0] }
  0x51   : > { %v2830_v27 = vor.u32 %v2921_v22, %v2827_v24  ;;  %v2809_v28 = vld [vmem:[#allocation7 + $0x1a0] sm:$0xf]  ;;  %v2919_v29 = vld [vmem:[#allocation7 + $0x1ac] sm:$0xf0]  ;;  %v2885_v30 = vld [vmem:[#allocation7 + $0xa4] sm:$0xf]  ;;  %v2682_v31 = vor.u32 %v2887_v26, %v2681_v25 }
  0x52   : > { %733 = vmatpush.bf16.msra.mxu0 %v2698_v18  ;;  %v2683_v32 = vld [vmem:[#allocation7 + $0xb0] sm:$0xf0]  ;;  %v2917_v33 = vld [vmem:[#allocation7 + $0x1a4] sm:$0xf]  ;;  %v2810_v35 = vor.u32 %v2919_v29, %v2809_v28  ;;  %v2665_v37 = vld [vmem:[#allocation7 + $0x80] sm:$0xf] }
  0x53   : > { %v2811_v34 = vld [vmem:[#allocation7 + $0x1b0] sm:$0xf0]  ;;  %822 = vmatpush.bf16.msra.mxu1 %v2826_v19  ;;  %911 = vmatpush.bf16.msra.mxu2 %v2702_v23  ;;  %v2686_v36 = vor.u32 %v2885_v30, %v2683_v32  ;;  %v2883_v38 = vld [vmem:[#allocation7 + $0x8c] sm:$0xf0]  ;;  %v2793_v39 = vld [vmem:[#allocation7 + $0x180] sm:$0xf] }
  0x54   : > { %1000 = vmatpush.bf16.msra.mxu3 %v2830_v27  ;;  %v2814_v40 = vor.u32 %v2917_v33, %v2811_v34  ;;  %v2915_v41 = vld [vmem:[#allocation7 + $0x18c] sm:$0xf0]  ;;  %v2881_v42 = vld [vmem:[#allocation7 + $0x84] sm:$0xf]  ;;  %v2667_v43 = vld [vmem:[#allocation7 + $0x90] sm:$0xf0]  ;;  %v2666_v46 = vor.u32 %v2883_v38, %v2665_v37 }
  0x55   : > { %v2913_v44 = vld [vmem:[#allocation7 + $0x184] sm:$0xf]  ;;  %v2795_v45 = vld [vmem:[#allocation7 + $0x190] sm:$0xf0]  ;;  %v2794_v47 = vor.u32 %v2915_v41, %v2793_v39  ;;  %v2670_v48 = vor.u32 %v2881_v42, %v2667_v43  ;;  %v2649_v49 = vld [vmem:[#allocation7 + $0x60] sm:$0xf] }
  0x56   : > { %734 = vmatpush.bf16.msra.mxu0 %v2682_v31  ;;  %v2879_v50 = vld [vmem:[#allocation7 + $0x6c] sm:$0xf0]  ;;  %v2777_v51 = vld [vmem:[#allocation7 + $0x160] sm:$0xf]  ;;  %v2798_v52 = vor.u32 %v2913_v44, %v2795_v45  ;;  %v2877_v54 = vld [vmem:[#allocation7 + $0x64] sm:$0xf] }
  0x57   : > { %823 = vmatpush.bf16.msra.mxu1 %v2810_v35  ;;  %912 = vmatpush.bf16.msra.mxu2 %v2686_v36  ;;  %v2911_v53 = vld [vmem:[#allocation7 + $0x16c] sm:$0xf0]  ;;  %v2651_v55 = vld [vmem:[#allocation7 + $0x70] sm:$0xf0]  ;;  %v2909_v56 = vld [vmem:[#allocation7 + $0x164] sm:$0xf]  ;;  %v2650_v58 = vor.u32 %v2879_v50, %v2649_v49 }
  0x58   : > { %1001 = vmatpush.bf16.msra.mxu3 %v2814_v40  ;;  %v2779_v57 = vld [vmem:[#allocation7 + $0x170] sm:$0xf0]  ;;  %v2778_v59 = vor.u32 %v2911_v53, %v2777_v51  ;;  %v2654_v60 = vor.u32 %v2877_v54, %v2651_v55  ;;  %v2633_v61 = vld [vmem:[#allocation7 + $0x40] sm:$0xf]  ;;  %v2875_v62 = vld [vmem:[#allocation7 + $0x4c] sm:$0xf0] }
  0x59   : > { %v2761_v63 = vld [vmem:[#allocation7 + $0x140] sm:$0xf]  ;;  %v2782_v0 = vor.u32 %v2909_v56, %v2779_v57  ;;  %v2907_v1 = vld [vmem:[#allocation7 + $0x14c] sm:$0xf0]  ;;  %v2873_v2 = vld [vmem:[#allocation7 + $0x44] sm:$0xf]  ;;  %v2634_v6 = vor.u32 %v2875_v62, %v2633_v61 }
  0x5a   : > { %735 = vmatpush.bf16.msra.mxu0 %v2666_v46  ;;  %v2635_v3 = vld [vmem:[#allocation7 + $0x50] sm:$0xf0]  ;;  %v2905_v4 = vld [vmem:[#allocation7 + $0x144] sm:$0xf]  ;;  %v2762_v7 = vor.u32 %v2907_v1, %v2761_v63  ;;  %v2617_v9 = vld [vmem:[#allocation7 + $0x20] sm:$0xf] }
  0x5b   : > { %824 = vmatpush.bf16.msra.mxu1 %v2794_v47  ;;  %913 = vmatpush.bf16.msra.mxu2 %v2670_v48  ;;  %v2763_v5 = vld [vmem:[#allocation7 + $0x150] sm:$0xf0]  ;;  %v2638_v8 = vor.u32 %v2873_v2, %v2635_v3  ;;  %v2871_v10 = vld [vmem:[#allocation7 + $0x2c] sm:$0xf0]  ;;  %v2745_v11 = vld [vmem:[#allocation7 + $0x120] sm:$0xf] }
  0x5c   : > { %1002 = vmatpush.bf16.msra.mxu3 %v2798_v52  ;;  %v2766_v12 = vor.u32 %v2905_v4, %v2763_v5  ;;  %v2903_v13 = vld [vmem:[#allocation7 + $0x12c] sm:$0xf0]  ;;  %v2869_v14 = vld [vmem:[#allocation7 + $0x24] sm:$0xf]  ;;  %v2619_v15 = vld [vmem:[#allocation7 + $0x30] sm:$0xf0]  ;;  %v2618_v18 = vor.u32 %v2871_v10, %v2617_v9 }
  0x5d   : > { %v2901_v16 = vld [vmem:[#allocation7 + $0x124] sm:$0xf]  ;;  %v2747_v17 = vld [vmem:[#allocation7 + $0x130] sm:$0xf0]  ;;  %v2601_v19 = vld [vmem:[#allocation7] sm:$0xf]  ;;  %v2746_v21 = vor.u32 %v2903_v13, %v2745_v11  ;;  %v2622_v22 = vor.u32 %v2869_v14, %v2619_v15 }
  0x5e   : > { %736 = vmatpush.bf16.msra.mxu0 %v2650_v58  ;;  %v2867_v20 = vld [vmem:[#allocation7 + $0xc] sm:$0xf0]  ;;  %v2729_v23 = vld [vmem:[#allocation7 + $0x100] sm:$0xf]  ;;  %v2865_v25 = vld [vmem:[#allocation7 + $0x4] sm:$0xf]  ;;  %v2750_v26 = vor.u32 %v2901_v16, %v2747_v17 }
  0x5f   : > { %825 = vmatpush.bf16.msra.mxu1 %v2778_v59  ;;  %914 = vmatpush.bf16.msra.mxu2 %v2654_v60  ;;  %v2899_v24 = vld [vmem:[#allocation7 + $0x10c] sm:$0xf0]  ;;  %v2603_v27 = vld [vmem:[#allocation7 + $0x10] sm:$0xf0]  ;;  %v2897_v28 = vld [vmem:[#allocation7 + $0x104] sm:$0xf]  ;;  %v2602_v33 = vor.u32 %v2867_v20, %v2601_v19 }
  0x60   : > { %1003 = vmatpush.bf16.msra.mxu3 %v2782_v0  ;;  %v2731_v29 = vld [vmem:[#allocation7 + $0x110] sm:$0xf0]  ;;  %v252_v30 = vld [vmem:[%s3447_s12] sm:$0xff]  ;;  %v2894_v31 = vld [vmem:[#allocation7 + $0xec] sm:$0xf]  ;;  %v2730_v37 = vor.u32 %v2899_v24, %v2729_v23  ;;  %v2606_v38 = vor.u32 %v2865_v25, %v2603_v27  ;;  %p2855_p1 = scmp.ne.s32.totalorder %s3265_s19, 0 }
  0x61   : > { %v2723_v32 = vld [vmem:[#allocation7 + $0xf8] sm:$0xf0]  ;;  %v254_v34 = vld [vmem:[%s3447_s12 + $0x10] sm:$0xff]  ;;  %v2926_v35 = vld [vmem:[#allocation7 + $0x1ec] sm:$0xf]  ;;  %v2734_v41 = vor.u32 %v2897_v28, %v2731_v29 }
  0x62   : > { %737 = vmatpush.bf16.msra.mxu0 %v2634_v6  ;;  %v2851_v36 = vld [vmem:[#allocation7 + $0x1f8] sm:$0xf0]  ;;  %v253_v39 = vld [vmem:[%s3447_s12 + $0x8] sm:$0xff]  ;;  %v2726_v42 = vor.u32 %v2894_v31, %v2723_v32  ;;  %v2896_v44 = vld [vmem:[#allocation7 + $0xf4] sm:$0xf0]  ;;  %v3468_v45 = vpack.c.bf16 %v254_v34, %v252_v30 }
  0x63   : > { %826 = vmatpush.bf16.msra.mxu1 %v2762_v7  ;;  %915 = vmatpush.bf16.msra.mxu2 %v2638_v8  ;;  %v255_v40 = vld [vmem:[%s3447_s12 + $0x18] sm:$0xff]  ;;  %v2721_v43 = vld [vmem:[#allocation7 + $0xe8] sm:$0xf]  ;;  %v2854_v46 = vor.u32 %v2926_v35, %v2851_v36  ;;  %v2890_v52 = vld [vmem:[#allocation7 + $0xcc] sm:$0xf] }
  0x64   : > { %1004 = vmatpush.bf16.msra.mxu3 %v2766_v12  ;;  %v2849_v47 = vld [vmem:[#allocation7 + $0x1e8] sm:$0xf]  ;;  %v2928_v48 = vld [vmem:[#allocation7 + $0x1f4] sm:$0xf0]  ;;  %v3470_v49 = vpack.c.bf16 %v255_v40, %v253_v39  ;;  %v2722_v50 = vor.u32 %v2896_v44, %v2721_v43  ;;  %v2707_v53 = vld [vmem:[#allocation7 + $0xd8] sm:$0xf0] }
  0x65   : > { %v2850_v51 = vor.u32 %v2928_v48, %v2849_v47  ;;  %v2922_v54 = vld [vmem:[#allocation7 + $0x1cc] sm:$0xf]  ;;  %v2710_v55 = vor.u32 %v2890_v52, %v2707_v53  ;;  %v2835_v56 = vld [vmem:[#allocation7 + $0x1d8] sm:$0xf0]  ;;  %v2705_v57 = vld [vmem:[#allocation7 + $0xc8] sm:$0xf] }
  0x66   : > { %738 = vmatpush.bf16.msra.mxu0 %v2618_v18  ;;  %v2892_v58 = vld [vmem:[#allocation7 + $0xd4] sm:$0xf0]  ;;  %v2838_v59 = vor.u32 %v2922_v54, %v2835_v56  ;;  %v2833_v61 = vld [vmem:[#allocation7 + $0x1c8] sm:$0xf]  ;;  %v256_v0 = vld [vmem:[%s3447_s12 + $0x20] sm:$0xff] }
  0x67   : > { %827 = vmatpush.bf16.msra.mxu1 %v2746_v21  ;;  %916 = vmatpush.bf16.msra.mxu2 %v2622_v22  ;;  %v2706_v60 = vor.u32 %v2892_v58, %v2705_v57  ;;  %v2924_v62 = vld [vmem:[#allocation7 + $0x1d4] sm:$0xf0]  ;;  %v258_v1 = vld [vmem:[%s3447_s12 + $0x30] sm:$0xff]  ;;  %v257_v2 = vld [vmem:[%s3447_s12 + $0x28] sm:$0xff] }
  0x68   : > { %1005 = vmatpush.bf16.msra.mxu3 %v2750_v26  ;;  %v2834_v63 = vor.u32 %v2924_v62, %v2833_v61  ;;  %v259_v3 = vld [vmem:[%s3447_s12 + $0x38] sm:$0xff]  ;;  %v3480_v4 = vpack.c.bf16 %v258_v1, %v256_v0  ;;  %v260_v6 = vld [vmem:[%s3447_s12 + $0x40] sm:$0xff]  ;;  %v262_v7 = vld [vmem:[%s3447_s12 + $0x50] sm:$0xff] }
  0x69   : > { %v3482_v5 = vpack.c.bf16 %v259_v3, %v257_v2  ;;  %v261_v8 = vld [vmem:[%s3447_s12 + $0x48] sm:$0xff]  ;;  %v263_v9 = vld [vmem:[%s3447_s12 + $0x58] sm:$0xff]  ;;  %v3492_v10 = vpack.c.bf16 %v262_v7, %v260_v6  ;;  %v264_v24 = vld [vmem:[%s3447_s12 + $0x60] sm:$0xff] }
  0x6a   : > { %739 = vmatpush.bf16.msra.mxu0 %v2602_v33  ;;  %v3494_v11 = vpack.c.bf16 %v263_v9, %v261_v8  ;;  %v2886_v12 = vld [vmem:[#allocation7 + $0xac] sm:$0xf]  ;;  %v2691_v13 = vld [vmem:[#allocation7 + $0xb8] sm:$0xf0]  ;;  %v2689_v17 = vld [vmem:[#allocation7 + $0xa8] sm:$0xf] }
  0x6b   : > { %828 = vmatpush.bf16.msra.mxu1 %v2730_v37  ;;  %917 = vmatpush.bf16.msra.mxu2 %v2606_v38  ;;  %v2918_v14 = vld [vmem:[#allocation7 + $0x1ac] sm:$0xf]  ;;  %v2694_v15 = vor.u32 %v2886_v12, %v2691_v13  ;;  %v2819_v16 = vld [vmem:[#allocation7 + $0x1b8] sm:$0xf0]  ;;  %v2888_v18 = vld [vmem:[#allocation7 + $0xb4] sm:$0xf0] }
  0x6c   : > { %1006 = vmatpush.bf16.msra.mxu3 %v2734_v41  ;;  %v2822_v19 = vor.u32 %v2918_v14, %v2819_v16  ;;  %v2690_v20 = vor.u32 %v2888_v18, %v2689_v17  ;;  %v2817_v21 = vld [vmem:[#allocation7 + $0x1a8] sm:$0xf]  ;;  %v2920_v22 = vld [vmem:[#allocation7 + $0x1b4] sm:$0xf0]  ;;  %v266_v25 = vld [vmem:[%s3447_s12 + $0x70] sm:$0xff] }
  0x6d   : > { %740 = vmatmul.bf16.vlgmr.msra.gmra.mxu0 %v3468_v45  ;;  %v2818_v23 = vor.u32 %v2920_v22, %v2817_v21  ;;  %v265_v26 = vld [vmem:[%s3447_s12 + $0x68] sm:$0xff]  ;;  %v267_v27 = vld [vmem:[%s3447_s12 + $0x78] sm:$0xff]  ;;  %v3504_v28 = vpack.c.bf16 %v266_v25, %v264_v24  ;;  %v268_v30 = vld [vmem:[%s3447_s12 + $0x80] sm:$0xff] }
  0x6e   : > { %829 = vmatmul.bf16.vlgmr.msra.gmra.mxu1 %v3470_v49  ;;  %918 = vmatmul.bf16.vlgmr.msra.gmra.mxu2 %v3468_v45  ;;  %v3506_v29 = vpack.c.bf16 %v267_v27, %v265_v26  ;;  %v270_v31 = vld [vmem:[%s3447_s12 + $0x90] sm:$0xff]  ;;  %v269_v32 = vld [vmem:[%s3447_s12 + $0x88] sm:$0xff]  ;;  %v271_v33 = vld [vmem:[%s3447_s12 + $0x98] sm:$0xff] }
  0x6f   : > { %1266 = vmatpush.bf16.msrb.mxu2 %v2726_v42  ;;  %1007 = vmatmul.bf16.vlgmr.msra.gmra.mxu3 %v3470_v49  ;;  %v3516_v34 = vpack.c.bf16 %v270_v31, %v268_v30  ;;  %v3518_v35 = vpack.c.bf16 %v271_v33, %v269_v32  ;;  %v2882_v36 = vld [vmem:[#allocation7 + $0x8c] sm:$0xf]  ;;  %v2675_v37 = vld [vmem:[#allocation7 + $0x98] sm:$0xf0]  ;;  %v2673_v41 = vld [vmem:[#allocation7 + $0x88] sm:$0xf] }
  0x70   : > { %1355 = vmatpush.bf16.msrb.mxu3 %v2854_v46  ;;  %1088 = vmatpush.bf16.msrb.mxu0 %v2722_v50  ;;  %v2914_v38 = vld [vmem:[#allocation7 + $0x18c] sm:$0xf]  ;;  %v2678_v39 = vor.u32 %v2882_v36, %v2675_v37  ;;  %v2803_v40 = vld [vmem:[#allocation7 + $0x198] sm:$0xf0]  ;;  %v2884_v42 = vld [vmem:[#allocation7 + $0x94] sm:$0xf0] }
  0x71   : > { %1177 = vmatpush.bf16.msrb.mxu1 %v2850_v51  ;;  %v2806_v43 = vor.u32 %v2914_v38, %v2803_v40  ;;  %v2674_v44 = vor.u32 %v2884_v42, %v2673_v41  ;;  %v2801_v46 = vld [vmem:[#allocation7 + $0x188] sm:$0xf]  ;;  %v2916_v47 = vld [vmem:[#allocation7 + $0x194] sm:$0xf0]  ;;  %v272_v50 = vld [vmem:[%s3447_s12 + $0xa0] sm:$0xff] }
  0x72   : > { %v2802_v48 = vor.u32 %v2916_v47, %v2801_v46  ;;  %v274_v51 = vld [vmem:[%s3447_s12 + $0xb0] sm:$0xff]  ;;  %v273_v52 = vld [vmem:[%s3447_s12 + $0xa8] sm:$0xff]  ;;  %v275_v53 = vld [vmem:[%s3447_s12 + $0xb8] sm:$0xff] }
  0x73   : > { %1267 = vmatpush.bf16.msrb.mxu2 %v2710_v55  ;;  %v3528_v54 = vpack.c.bf16 %v274_v51, %v272_v50  ;;  %v3530_v55 = vpack.c.bf16 %v275_v53, %v273_v52  ;;  %v276_v56 = vld [vmem:[%s3447_s12 + $0xc0] sm:$0xff]  ;;  %v278_v57 = vld [vmem:[%s3447_s12 + $0xd0] sm:$0xff]  ;;  %v277_v58 = vld [vmem:[%s3447_s12 + $0xc8] sm:$0xff] }
  0x74   : > { %1356 = vmatpush.bf16.msrb.mxu3 %v2838_v59  ;;  %1089 = vmatpush.bf16.msrb.mxu0 %v2706_v60  ;;  %v279_v59 = vld [vmem:[%s3447_s12 + $0xd8] sm:$0xff]  ;;  %v3540_v60 = vpack.c.bf16 %v278_v57, %v276_v56  ;;  %v2878_v62 = vld [vmem:[#allocation7 + $0x6c] sm:$0xf]  ;;  %v2657_v6 = vld [vmem:[#allocation7 + $0x68] sm:$0xf] }
  0x75   : > { %1178 = vmatpush.bf16.msrb.mxu1 %v2834_v63  ;;  %v3542_v61 = vpack.c.bf16 %v279_v59, %v277_v58  ;;  %v2659_v63 = vld [vmem:[#allocation7 + $0x78] sm:$0xf0]  ;;  %v2910_v0 = vld [vmem:[#allocation7 + $0x16c] sm:$0xf]  ;;  %v2880_v7 = vld [vmem:[#allocation7 + $0x74] sm:$0xf0] }
  0x76   : > { %v2662_v1 = vor.u32 %v2878_v62, %v2659_v63  ;;  %v2787_v2 = vld [vmem:[#allocation7 + $0x178] sm:$0xf0]  ;;  %v2785_v8 = vld [vmem:[#allocation7 + $0x168] sm:$0xf]  ;;  %v2658_v9 = vor.u32 %v2880_v7, %v2657_v6  ;;  %v2912_v12 = vld [vmem:[#allocation7 + $0x174] sm:$0xf0] }
  0x77   : > { %1268 = vmatpush.bf16.msrb.mxu2 %v2694_v15  ;;  %v2790_v3 = vor.u32 %v2910_v0, %v2787_v2  ;;  %v280_v13 = vld [vmem:[%s3447_s12 + $0xe0] sm:$0xff]  ;;  %v282_v14 = vld [vmem:[%s3447_s12 + $0xf0] sm:$0xff]  ;;  %v2786_v15 = vor.u32 %v2912_v12, %v2785_v8  ;;  %v281_v16 = vld [vmem:[%s3447_s12 + $0xe8] sm:$0xff] }
  0x78   : > { %1357 = vmatpush.bf16.msrb.mxu3 %v2822_v19  ;;  %1090 = vmatpush.bf16.msrb.mxu0 %v2690_v20  ;;  %v283_v17 = vld [vmem:[%s3447_s12 + $0xf8] sm:$0xff]  ;;  %v3552_v18 = vpack.c.bf16 %v282_v14, %v280_v13  ;;  %v284_v20 = vld [vmem:[%s3447_s12 + $0x100] sm:$0xff]  ;;  %v286_v21 = vld [vmem:[%s3447_s12 + $0x110] sm:$0xff] }
  0x79   : > { %1179 = vmatpush.bf16.msrb.mxu1 %v2818_v23  ;;  %v3554_v19 = vpack.c.bf16 %v283_v17, %v281_v16  ;;  %v285_v22 = vld [vmem:[%s3447_s12 + $0x108] sm:$0xff]  ;;  %v287_v23 = vld [vmem:[%s3447_s12 + $0x118] sm:$0xff]  ;;  %v3564_v24 = vpack.c.bf16 %v286_v21, %v284_v20  ;;  %v288_v52 = vld [vmem:[%s3447_s12 + $0x120] sm:$0xff] }
  0x7a   : > { %v3566_v26 = vpack.c.bf16 %v287_v23, %v285_v22  ;;  %v2874_v31 = vld [vmem:[#allocation7 + $0x4c] sm:$0xf]  ;;  %v2643_v32 = vld [vmem:[#allocation7 + $0x58] sm:$0xf0]  ;;  %v2641_v46 = vld [vmem:[#allocation7 + $0x48] sm:$0xf] }
  0x7b   : > { %1269 = vmatpush.bf16.msrb.mxu2 %v2678_v39  ;;  %v2906_v33 = vld [vmem:[#allocation7 + $0x14c] sm:$0xf]  ;;  %v2646_v36 = vor.u32 %v2874_v31, %v2643_v32  ;;  %v2771_v37 = vld [vmem:[#allocation7 + $0x158] sm:$0xf0]  ;;  %v2876_v47 = vld [vmem:[#allocation7 + $0x54] sm:$0xf0] }
  0x7c   : > { %1358 = vmatpush.bf16.msrb.mxu3 %v2806_v43  ;;  %1091 = vmatpush.bf16.msrb.mxu0 %v2674_v44  ;;  %v2774_v39 = vor.u32 %v2906_v33, %v2771_v37  ;;  %v2642_v50 = vor.u32 %v2876_v47, %v2641_v46  ;;  %v2908_v51 = vld [vmem:[#allocation7 + $0x154] sm:$0xf0]  ;;  %v290_v53 = vld [vmem:[%s3447_s12 + $0x130] sm:$0xff]  ;;  %v289_v57 = vld [vmem:[%s3447_s12 + $0x128] sm:$0xff] }
  0x7d   : > { %745 = vmatmul.bf16.gmra.mxu0 %v3480_v4  ;;  %1180 = vmatpush.bf16.msrb.mxu1 %v2802_v48  ;;  %v2769_v48 = vld [vmem:[#allocation7 + $0x148] sm:$0xf]  ;;  %v291_v58 = vld [vmem:[%s3447_s12 + $0x138] sm:$0xff]  ;;  %v3582_v62 = vpack.c.bf16 %v290_v53, %v288_v52  ;;  %v294_v16 = vld [vmem:[%s3447_s12 + $0x150] sm:$0xff] }
  0x7e   : > { %834 = vmatmul.bf16.gmra.mxu1 %v3482_v5  ;;  %923 = vmatmul.bf16.gmra.mxu2 %v3480_v4  ;;  %v2770_v56 = vor.u32 %v2908_v51, %v2769_v48  ;;  %v293_v17 = vld [vmem:[%s3447_s12 + $0x148] sm:$0xff]  ;;  %v295_v20 = vld [vmem:[%s3447_s12 + $0x158] sm:$0xff] }
  0x7f   : > { %1012 = vmatmul.bf16.gmra.mxu3 %v3482_v5  ;;  %1270 = vmatpush.bf16.msrb.mxu2 %v2662_v1  ;;  %v3584_v1 = vpack.c.bf16 %v291_v58, %v289_v57  ;;  %v2627_v37 = vld [vmem:[#allocation7 + $0x38] sm:$0xf0]  ;;  %v2625_v52 = vld [vmem:[#allocation7 + $0x28] sm:$0xf]  ;;  %v2872_v53 = vld [vmem:[#allocation7 + $0x34] sm:$0xf0] }
  0x80   : > { %1359 = vmatpush.bf16.msrb.mxu3 %v2790_v3  ;;  %1092 = vmatpush.bf16.msrb.mxu0 %v2658_v9  ;;  %v2626_v57 = vor.u32 %v2872_v53, %v2625_v52  ;;  %v2904_v58 = vld [vmem:[#allocation7 + $0x134] sm:$0xf0] }
  0x81   : > { %1181 = vmatpush.bf16.msrb.mxu1 %v2786_v15  ;;  %v292_v15 = vld [vmem:[%s3447_s12 + $0x140] sm:$0xff] }
  0x82   : > { %v3602_v22 = vpack.c.bf16 %v294_v16, %v292_v15 }
  0x83   : > { %1271 = vmatpush.bf16.msrb.mxu2 %v2646_v36  ;;  %v2870_v36 = vld [vmem:[#allocation7 + $0x2c] sm:$0xf] }
  0x84   : > { %1360 = vmatpush.bf16.msrb.mxu3 %v2774_v39  ;;  %1093 = vmatpush.bf16.msrb.mxu0 %v2642_v50  ;;  %v2630_v39 = vor.u32 %v2870_v36, %v2627_v37 }
  0x85   : > { %1182 = vmatpush.bf16.msrb.mxu1 %v2770_v56  ;;  %v2753_v56 = vld [vmem:[#allocation7 + $0x128] sm:$0xf] }
  0x87   : > { %1272 = vmatpush.bf16.msrb.mxu2 %v2630_v39  ;;  %v300_v39 = vld [vmem:[%s3447_s12 + $0x180] sm:$0xff] }
  0x88   : > { %1094 = vmatpush.bf16.msrb.mxu0 %v2626_v57 }
  0x8d   : > { %750 = vmatmul.bf16.gmra.mxu0 %v3492_v10 }
  0x8e   : > { %839 = vmatmul.bf16.gmra.mxu1 %v3494_v11  ;;  %928 = vmatmul.bf16.gmra.mxu2 %v3492_v10 }
  0x8f   : > { %1017 = vmatmul.bf16.gmra.mxu3 %v3494_v11 }
  0x9d   : > { %755 = vmatmul.bf16.gmra.mxu0 %v3504_v28 }
  0x9e   : > { %844 = vmatmul.bf16.gmra.mxu1 %v3506_v29  ;;  %933 = vmatmul.bf16.gmra.mxu2 %v3504_v28 }
  0x9f   : > { %1022 = vmatmul.bf16.gmra.mxu3 %v3506_v29 }
  0xad   : > { %760 = vmatmul.bf16.gmra.mxu0 %v3516_v34 }
  0xae   : > { %849 = vmatmul.bf16.gmra.mxu1 %v3518_v35  ;;  %938 = vmatmul.bf16.gmra.mxu2 %v3516_v34 }
  0xaf   : > { %1027 = vmatmul.bf16.gmra.mxu3 %v3518_v35 }
  0xbd   : > { %765 = vmatmul.bf16.gmra.mxu0 %v3528_v54 }
  0xbe   : > { %854 = vmatmul.bf16.gmra.mxu1 %v3530_v55  ;;  %943 = vmatmul.bf16.gmra.mxu2 %v3528_v54 }
  0xbf   : > { %1032 = vmatmul.bf16.gmra.mxu3 %v3530_v55 }
  0xcd   : > { %770 = vmatmul.bf16.gmra.mxu0 %v3540_v60 }
  0xce   : > { %859 = vmatmul.bf16.gmra.mxu1 %v3542_v61  ;;  %948 = vmatmul.bf16.gmra.mxu2 %v3540_v60 }
  0xcf   : > { %1037 = vmatmul.bf16.gmra.mxu3 %v3542_v61 }
  0xdd   : > { %775 = vmatmul.bf16.gmra.mxu0 %v3552_v18 }
  0xde   : > { %864 = vmatmul.bf16.gmra.mxu1 %v3554_v19  ;;  %953 = vmatmul.bf16.gmra.mxu2 %v3552_v18 }
  0xdf   : > { %1042 = vmatmul.bf16.gmra.mxu3 %v3554_v19 }
  0xea   : > { %v741_v25 = vpop.f32.mrf.mxu0 }
  0xeb   : > { %v830_v27 = vpop.f32.mrf.mxu1 }
  0xec   : > { %v3568_v30 = vadd.f32 %v830_v27, %v741_v25  ;;  %v3604_v27 = vpack.c.bf16 %v295_v20, %v293_v17 }
  0xed   : > { %780 = vmatmul.bf16.gmra.mxu0 %v3564_v24 }
  0xee   : > { %5152 = vst [vmem:[#allocation19_spill] sm:$0xff] %v3568_v30  ;;  %869 = vmatmul.bf16.gmra.mxu1 %v3566_v26  ;;  %958 = vmatmul.bf16.gmra.mxu2 %v3564_v24 }
  0xef   : > { %1047 = vmatmul.bf16.gmra.mxu3 %v3566_v26 }
  0xf1   : > { %v919_v38 = vpop.f32.mrf.mxu2 }
  0xf2   : > { %v1008_v40 = vpop.f32.mrf.mxu3  ;;  %v743_v41 = vpop.f32.mrf.mxu0 }
  0xf3   : > { %v3574_v42 = vadd.f32 %v1008_v40, %v919_v38  ;;  %v832_v43 = vpop.f32.mrf.mxu1  ;;  %v2902_v38 = vld [vmem:[#allocation7 + $0x12c] sm:$0xf]  ;;  %v2755_v40 = vld [vmem:[#allocation7 + $0x138] sm:$0xf0] }
  0xf4   : > { %v3576_v44 = vadd.f32 %v832_v43, %v743_v41  ;;  %v2758_v43 = vor.u32 %v2902_v38, %v2755_v40  ;;  %v302_v40 = vld [vmem:[%s3447_s12 + $0x190] sm:$0xff] }
  0xf5   : > { %5153 = vst [vmem:[#allocation20_spill] sm:$0xff] %v3574_v42 }
  0xf6   : > { %5154 = vst [vmem:[#allocation21_spill] sm:$0xff] %v3576_v44  ;;  %1361 = vmatpush.bf16.msrb.mxu3 %v2758_v43  ;;  %v303_v43 = vld [vmem:[%s3447_s12 + $0x198] sm:$0xff] }
  0xf9   : > { %v921_v59 = vpop.f32.mrf.mxu2 }
  0xfa   : > { %v1010_v63 = vpop.f32.mrf.mxu3  ;;  %v746_v0 = vpop.f32.mrf.mxu0 }
  0xfb   : > { %v3586_v2 = vadd.f32 %v1010_v63, %v921_v59  ;;  %v835_v3 = vpop.f32.mrf.mxu1  ;;  %v296_v59 = vld [vmem:[%s3447_s12 + $0x160] sm:$0xff]  ;;  %v298_v63 = vld [vmem:[%s3447_s12 + $0x170] sm:$0xff] }
  0xfc   : > { %v3588_v6 = vadd.f32 %v835_v3, %v746_v0  ;;  %v2754_v0 = vor.u32 %v2904_v58, %v2753_v56  ;;  %v297_v3 = vld [vmem:[%s3447_s12 + $0x168] sm:$0xff] }
  0xfd   : > { %5155 = vst [vmem:[#allocation22_spill] sm:$0xff] %v3586_v2  ;;  %785 = vmatmul.bf16.gmra.mxu0 %v3582_v62 }
  0xfe   : > { %5156 = vst [vmem:[#allocation23_spill] sm:$0xff] %v3588_v6  ;;  %874 = vmatmul.bf16.gmra.mxu1 %v3584_v1  ;;  %963 = vmatmul.bf16.gmra.mxu2 %v3582_v62 }
  0xff   : > { %1052 = vmatmul.bf16.gmra.mxu3 %v3584_v1  ;;  %1183 = vmatpush.bf16.msrb.mxu1 %v2754_v0  ;;  %v2898_v0 = vld [vmem:[#allocation7 + $0x10c] sm:$0xf] }
 0x101   : > { %v924_v7 = vpop.f32.mrf.mxu2 }
 0x102   : > { %v1013_v8 = vpop.f32.mrf.mxu3  ;;  %v748_v9 = vpop.f32.mrf.mxu0 }
 0x103   : > { %v3594_v12 = vadd.f32 %v1013_v8, %v924_v7  ;;  %v837_v13 = vpop.f32.mrf.mxu1  ;;  %v299_v7 = vld [vmem:[%s3447_s12 + $0x178] sm:$0xff] }
 0x104   : > { %v3596_v14 = vadd.f32 %v837_v13, %v748_v9  ;;  %v3622_v9 = vpack.c.bf16 %v298_v63, %v296_v59  ;;  %v3624_v16 = vpack.c.bf16 %v299_v7, %v297_v3  ;;  %v2866_v59 = vld [vmem:[#allocation7 + $0xc] sm:$0xf]  ;;  %v2611_v63 = vld [vmem:[#allocation7 + $0x18] sm:$0xf0] }
 0x105   : > { %5157 = vst [vmem:[#allocation24_spill] sm:$0xff] %v3594_v12  ;;  %v2614_v3 = vor.u32 %v2866_v59, %v2611_v63  ;;  %v2739_v7 = vld [vmem:[#allocation7 + $0x118] sm:$0xf0] }
 0x106   : > { %5158 = vst [vmem:[#allocation25_spill] sm:$0xff] %v3596_v14  ;;  %v307_v59 = vld [vmem:[%s3447_s12 + $0x1b8] sm:$0xff] }
 0x107   : > { %1273 = vmatpush.bf16.msrb.mxu2 %v2614_v3 }
 0x109   : > { %v926_v21 = vpop.f32.mrf.mxu2 }
 0x10a   : > { %v1015_v23 = vpop.f32.mrf.mxu3  ;;  %v751_v25 = vpop.f32.mrf.mxu0 }
 0x10b   : > { %v3606_v31 = vadd.f32 %v1015_v23, %v926_v21  ;;  %v840_v32 = vpop.f32.mrf.mxu1 }
 0x10c   : > { %v3608_v33 = vadd.f32 %v840_v32, %v751_v25 }
 0x10d   : > { %5159 = vst [vmem:[#allocation26_spill] sm:$0xff] %v3606_v31  ;;  %790 = vmatmul.bf16.gmra.mxu0 %v3602_v22 }
 0x10e   : > { %5160 = vst [vmem:[#allocation27_spill] sm:$0xff] %v3608_v33  ;;  %879 = vmatmul.bf16.gmra.mxu1 %v3604_v27  ;;  %968 = vmatmul.bf16.gmra.mxu2 %v3602_v22 }
 0x10f   : > { %1057 = vmatmul.bf16.gmra.mxu3 %v3604_v27 }
 0x111   : > { %v929_v41 = vpop.f32.mrf.mxu2 }
 0x112   : > { %v1018_v46 = vpop.f32.mrf.mxu3  ;;  %v753_v47 = vpop.f32.mrf.mxu0 }
 0x113   : > { %v3614_v48 = vadd.f32 %v1018_v46, %v929_v41  ;;  %v842_v50 = vpop.f32.mrf.mxu1  ;;  %v301_v41 = vld [vmem:[%s3447_s12 + $0x188] sm:$0xff] }
 0x114   : > { %v3616_v51 = vadd.f32 %v842_v50, %v753_v47  ;;  %v3642_v47 = vpack.c.bf16 %v302_v40, %v300_v39  ;;  %v3644_v53 = vpack.c.bf16 %v303_v43, %v301_v41  ;;  %v2868_v39 = vld [vmem:[#allocation7 + $0x14] sm:$0xf0]  ;;  %v2737_v40 = vld [vmem:[#allocation7 + $0x108] sm:$0xf] }
 0x115   : > { %5161 = vst [vmem:[#allocation28_spill] sm:$0xff] %v3614_v48  ;;  %v2900_v43 = vld [vmem:[#allocation7 + $0x114] sm:$0xf0] }
 0x116   : > { %5162 = vst [vmem:[#allocation29_spill] sm:$0xff] %v3616_v51 }
 0x119   : > { %v931_v8 = vpop.f32.mrf.mxu2 }
 0x11a   : > { %v1020_v13 = vpop.f32.mrf.mxu3  ;;  %v756_v15 = vpop.f32.mrf.mxu0 }
 0x11b   : > { %v3626_v17 = vadd.f32 %v1020_v13, %v931_v8  ;;  %v845_v20 = vpop.f32.mrf.mxu1  ;;  %v2742_v13 = vor.u32 %v2898_v0, %v2739_v7 }
 0x11c   : > { %v3628_v21 = vadd.f32 %v845_v20, %v756_v15 }
 0x11d   : > { %5163 = vst [vmem:[#allocation30_spill] sm:$0xff] %v3626_v17  ;;  %795 = vmatmul.bf16.gmra.mxu0 %v3622_v9  ;;  %1362 = vmatpush.bf16.msrb.mxu3 %v2742_v13 }
 0x11e   : > { %5164 = vst [vmem:[#allocation31_spill] sm:$0xff] %v3628_v21  ;;  %884 = vmatmul.bf16.gmra.mxu1 %v3624_v16  ;;  %973 = vmatmul.bf16.gmra.mxu2 %v3622_v9 }
 0x11f   : > { %1062 = vmatmul.bf16.gmra.mxu3 %v3624_v16 }
 0x121   : > { %v934_v23 = vpop.f32.mrf.mxu2 }
 0x122   : > { %v1023_v25 = vpop.f32.mrf.mxu3  ;;  %v758_v32 = vpop.f32.mrf.mxu0 }
 0x123   : > { %v3634_v36 = vadd.f32 %v1023_v25, %v934_v23  ;;  %v847_v37 = vpop.f32.mrf.mxu1 }
 0x124   : > { %v3636_v38 = vadd.f32 %v847_v37, %v758_v32  ;;  %v2609_v37 = vld [vmem:[#allocation7 + $0x8] sm:$0xf] }
 0x125   : > { %5165 = vst [vmem:[#allocation32_spill] sm:$0xff] %v3634_v36  ;;  %v2610_v41 = vor.u32 %v2868_v39, %v2609_v37 }
 0x126   : > { %5166 = vst [vmem:[#allocation33_spill] sm:$0xff] %v3636_v38 }
 0x127   : > { %1095 = vmatpush.bf16.msrb.mxu0 %v2610_v41 }
 0x129   : > { %v936_v46 = vpop.f32.mrf.mxu2 }
 0x12a   : > { %v1025_v50 = vpop.f32.mrf.mxu3  ;;  %v761_v52 = vpop.f32.mrf.mxu0 }
 0x12b   : > { %v3646_v56 = vadd.f32 %v1025_v50, %v936_v46  ;;  %v850_v57 = vpop.f32.mrf.mxu1  ;;  %v304_v46 = vld [vmem:[%s3447_s12 + $0x1a0] sm:$0xff]  ;;  %v306_v50 = vld [vmem:[%s3447_s12 + $0x1b0] sm:$0xff] }
 0x12c   : > { %v3648_v58 = vadd.f32 %v850_v57, %v761_v52  ;;  %v2738_v52 = vor.u32 %v2900_v43, %v2737_v40  ;;  %v305_v57 = vld [vmem:[%s3447_s12 + $0x1a8] sm:$0xff]  ;;  %v3662_v0 = vpack.c.bf16 %v306_v50, %v304_v46  ;;  %v308_v46 = vld [vmem:[%s3447_s12 + $0x1c0] sm:$0xff]  ;;  %v310_v50 = vld [vmem:[%s3447_s12 + $0x1d0] sm:$0xff] }
 0x12d   : > { %5167 = vst [vmem:[#allocation34_spill] sm:$0xff] %v3646_v56  ;;  %800 = vmatmul.bf16.gmra.mxu0 %v3642_v47 }
 0x12e   : > { %5168 = vst [vmem:[#allocation35_spill] sm:$0xff] %v3648_v58  ;;  %889 = vmatmul.bf16.gmra.mxu1 %v3644_v53  ;;  %978 = vmatmul.bf16.gmra.mxu2 %v3642_v47 }
 0x12f   : > { %1067 = vmatmul.bf16.gmra.mxu3 %v3644_v53  ;;  %1184 = vmatpush.bf16.msrb.mxu1 %v2738_v52  ;;  %v309_v52 = vld [vmem:[%s3447_s12 + $0x1c8] sm:$0xff] }
 0x131   : > { %v939_v8 = vpop.f32.mrf.mxu2 }
 0x132   : > { %v1028_v15 = vpop.f32.mrf.mxu3  ;;  %v763_v20 = vpop.f32.mrf.mxu0 }
 0x133   : > { %v3654_v23 = vadd.f32 %v1028_v15, %v939_v8  ;;  %v852_v25 = vpop.f32.mrf.mxu1  ;;  %v3664_v8 = vpack.c.bf16 %v307_v59, %v305_v57  ;;  %v311_v57 = vld [vmem:[%s3447_s12 + $0x1d8] sm:$0xff] }
 0x134   : > { %v3656_v32 = vadd.f32 %v852_v25, %v763_v20 }
 0x135   : > { %5169 = vst [vmem:[#allocation36_spill] sm:$0xff] %v3654_v23 }
 0x136   : > { %5170 = vst [vmem:[#allocation37_spill] sm:$0xff] %v3656_v32 }
 0x139   : > { %v941_v63 = vpop.f32.mrf.mxu2 }
 0x13a   : > { %v1030_v3 = vpop.f32.mrf.mxu3  ;;  %v766_v7 = vpop.f32.mrf.mxu0 }
 0x13b   : > { %v3666_v13 = vadd.f32 %v1030_v3, %v941_v63  ;;  %v855_v15 = vpop.f32.mrf.mxu1  ;;  %v3682_v63 = vpack.c.bf16 %v310_v50, %v308_v46 }
 0x13c   : > { %v3668_v20 = vadd.f32 %v855_v15, %v766_v7  ;;  %v3684_v15 = vpack.c.bf16 %v311_v57, %v309_v52 }
 0x13d   : > { %5171 = vst [vmem:[#allocation38_spill] sm:$0xff] %v3666_v13  ;;  %805 = vmatmul.bf16.gmra.mxu0 %v3662_v0 }
 0x13e   : > { %5172 = vst [vmem:[#allocation39_spill] sm:$0xff] %v3668_v20  ;;  %894 = vmatmul.bf16.gmra.mxu1 %v3664_v8  ;;  %983 = vmatmul.bf16.gmra.mxu2 %v3662_v0 }
 0x13f   : > { %1072 = vmatmul.bf16.gmra.mxu3 %v3664_v8 }
 0x141   : > { %v944_v25 = vpop.f32.mrf.mxu2 }
 0x142   : > { %v1033_v37 = vpop.f32.mrf.mxu3  ;;  %v768_v39 = vpop.f32.mrf.mxu0 }
 0x143   : > { %v3674_v40 = vadd.f32 %v1033_v37, %v944_v25  ;;  %v857_v41 = vpop.f32.mrf.mxu1 }
 0x144   : > { %v3676_v43 = vadd.f32 %v857_v41, %v768_v39 }
 0x145   : > { %5173 = vst [vmem:[#allocation40_spill] sm:$0xff] %v3674_v40 }
 0x146   : > { %5174 = vst [vmem:[#allocation41_spill] sm:$0xff] %v3676_v43 }
 0x149   : > { %v946_v59 = vpop.f32.mrf.mxu2 }
 0x14a   : > { %v1035_v3 = vpop.f32.mrf.mxu3  ;;  %v771_v7 = vpop.f32.mrf.mxu0 }
 0x14b   : > { %v3686_v20 = vadd.f32 %v1035_v3, %v946_v59  ;;  %v860_v25 = vpop.f32.mrf.mxu1  ;;  %v312_v59 = vld [vmem:[%s3447_s12 + $0x1e0] sm:$0xff]  ;;  %v314_v3 = vld [vmem:[%s3447_s12 + $0x1f0] sm:$0xff] }
 0x14c   : > { %v3688_v37 = vadd.f32 %v860_v25, %v771_v7  ;;  %v313_v7 = vld [vmem:[%s3447_s12 + $0x1e8] sm:$0xff]  ;;  %v315_v25 = vld [vmem:[%s3447_s12 + $0x1f8] sm:$0xff] }
 0x14d   : > { %5175 = vst [vmem:[#allocation42_spill] sm:$0xff] %v3686_v20  ;;  %810 = vmatmul.bf16.gmra.mxu0 %v3682_v63  ;;  %v3702_v20 = vpack.c.bf16 %v314_v3, %v312_v59  ;;  %v3704_v13 = vpack.c.bf16 %v315_v25, %v313_v7 }
 0x14e   : > { %5176 = vst [vmem:[#allocation43_spill] sm:$0xff] %v3688_v37  ;;  %899 = vmatmul.bf16.gmra.mxu1 %v3684_v15  ;;  %988 = vmatmul.bf16.gmra.mxu2 %v3682_v63 }
 0x14f   : > { %1077 = vmatmul.bf16.gmra.mxu3 %v3684_v15 }
 0x151   : > { %v949_v39 = vpop.f32.mrf.mxu2 }
 0x152   : > { %v1038_v41 = vpop.f32.mrf.mxu3  ;;  %v773_v46 = vpop.f32.mrf.mxu0 }
 0x153   : > { %v3694_v50 = vadd.f32 %v1038_v41, %v949_v39  ;;  %v862_v52 = vpop.f32.mrf.mxu1 }
 0x154   : > { %v3696_v57 = vadd.f32 %v862_v52, %v773_v46 }
 0x155   : > { %5177 = vst [vmem:[#allocation44_spill] sm:$0xff] %v3694_v50 }
 0x156   : > { %5178 = vst [vmem:[#allocation45_spill] sm:$0xff] %v3696_v57 }
 0x159   : > { %v951_v37 = vpop.f32.mrf.mxu2 }
 0x15a   : > { %v1040_v43 = vpop.f32.mrf.mxu3  ;;  %v776_v40 = vpop.f32.mrf.mxu0 }
 0x15b   : > { %v3706_v32 = vadd.f32 %v1040_v43, %v951_v37  ;;  %v865_v23 = vpop.f32.mrf.mxu1 }
 0x15c   : > { %v3708_v58 = vadd.f32 %v865_v23, %v776_v40 }
 0x15d   : > { %5179 = vst [vmem:[#allocation46_spill] sm:$0xff] %v3706_v32  ;;  %815 = vmatmul.bf16.gmra.mxu0 %v3702_v20 }
 0x15e   : > { %5180 = vst [vmem:[#allocation47_spill] sm:$0xff] %v3708_v58  ;;  %904 = vmatmul.bf16.gmra.mxu1 %v3704_v13  ;;  %993 = vmatmul.bf16.gmra.mxu2 %v3702_v20 }
 0x15f   : > { %1082 = vmatmul.bf16.gmra.mxu3 %v3704_v13 }
 0x161   : > { %v954_v39 = vpop.f32.mrf.mxu2 }
 0x162   : > { %v1043_v41 = vpop.f32.mrf.mxu3  ;;  %v778_v46 = vpop.f32.mrf.mxu0 }
 0x163   : > { %v3714_v52 = vadd.f32 %v1043_v41, %v954_v39  ;;  %v867_v59 = vpop.f32.mrf.mxu1 }
 0x164   : > { %v3716_v3 = vadd.f32 %v867_v59, %v778_v46 }
 0x165   : > { %5181 = vst [vmem:[#allocation48_spill] sm:$0xff] %v3714_v52 }
 0x166   : > { %5182 = vst [vmem:[#allocation49_spill] sm:$0xff] %v3716_v3 }
 0x169   : > { %v956_v43 = vpop.f32.mrf.mxu2 }
 0x16a   : > { %v1045_v37 = vpop.f32.mrf.mxu3  ;;  %v781_v23 = vpop.f32.mrf.mxu0 }
 0x16b   : > { %v3718_v40 = vadd.f32 %v1045_v37, %v956_v43  ;;  %v870_v7 = vpop.f32.mrf.mxu1 }
 0x16c   : > { %v3720_v25 = vadd.f32 %v870_v7, %v781_v23 }
 0x16d   : > { %5183 = vst [vmem:[#allocation50_spill] sm:$0xff] %v3718_v40  ;;  %1096 = vmatmul.bf16.vlgmr.msrb.gmra.mxu0 %v3468_v45 }
 0x16e   : > { %5184 = vst [vmem:[#allocation51_spill] sm:$0xff] %v3720_v25  ;;  %1185 = vmatmul.bf16.vlgmr.msrb.gmra.mxu1 %v3470_v49  ;;  %1274 = vmatmul.bf16.vlgmr.msrb.gmra.mxu2 %v3468_v45 }
 0x16f   : > { %1363 = vmatmul.bf16.vlgmr.msrb.gmra.mxu3 %v3470_v49 }
 0x171   : > { %v959_v39 = vpop.f32.mrf.mxu2 }
 0x172   : > { %v1048_v41 = vpop.f32.mrf.mxu3  ;;  %v783_v46 = vpop.f32.mrf.mxu0 }
 0x173   : > { %v3726_v59 = vadd.f32 %v1048_v41, %v959_v39  ;;  %v872_v3 = vpop.f32.mrf.mxu1 }
 0x174   : > { %v3728_v52 = vadd.f32 %v872_v3, %v783_v46 }
 0x175   : > { %5185 = vst [vmem:[#allocation52_spill] sm:$0xff] %v3726_v59 }
 0x176   : > { %5186 = vst [vmem:[#allocation53_spill] sm:$0xff] %v3728_v52 }
 0x179   : > { %v961_v43 = vpop.f32.mrf.mxu2 }
 0x17a   : > { %v1050_v37 = vpop.f32.mrf.mxu3  ;;  %v786_v23 = vpop.f32.mrf.mxu0 }
 0x17b   : > { %v3730_v7 = vadd.f32 %v1050_v37, %v961_v43  ;;  %v875_v25 = vpop.f32.mrf.mxu1 }
 0x17c   : > { %v3732_v40 = vadd.f32 %v875_v25, %v786_v23 }
 0x17d   : > { %5187 = vst [vmem:[#allocation54_spill] sm:$0xff] %v3730_v7  ;;  %1101 = vmatmul.bf16.gmra.mxu0 %v3480_v4 }
 0x17e   : > { %5188 = vst [vmem:[#allocation55_spill] sm:$0xff] %v3732_v40  ;;  %1190 = vmatmul.bf16.gmra.mxu1 %v3482_v5  ;;  %1279 = vmatmul.bf16.gmra.mxu2 %v3480_v4 }
 0x17f   : > { %1368 = vmatmul.bf16.gmra.mxu3 %v3482_v5 }
 0x181   : > { %v964_v45 = vpop.f32.mrf.mxu2 }
 0x182   : > { %v1053_v49 = vpop.f32.mrf.mxu3  ;;  %v788_v3 = vpop.f32.mrf.mxu0 }
 0x183   : > { %v3738_v39 = vadd.f32 %v1053_v49, %v964_v45  ;;  %v877_v41 = vpop.f32.mrf.mxu1 }
 0x184   : > { %v3740_v46 = vadd.f32 %v877_v41, %v788_v3 }
 0x185   : > { %5189 = vst [vmem:[#allocation56_spill] sm:$0xff] %v3738_v39 }
 0x186   : > { %5190 = vst [vmem:[#allocation57_spill] sm:$0xff] %v3740_v46 }
 0x189   : > { %v966_v43 = vpop.f32.mrf.mxu2 }
 0x18a   : > { %v1055_v37 = vpop.f32.mrf.mxu3  ;;  %v791_v25 = vpop.f32.mrf.mxu0 }
 0x18b   : > { %v3742_v23 = vadd.f32 %v1055_v37, %v966_v43  ;;  %v880_v40 = vpop.f32.mrf.mxu1 }
 0x18c   : > { %v3744_v7 = vadd.f32 %v880_v40, %v791_v25 }
 0x18d   : > { %5191 = vst [vmem:[#allocation58_spill] sm:$0xff] %v3742_v23  ;;  %1106 = vmatmul.bf16.gmra.mxu0 %v3492_v10 }
 0x18e   : > { %5192 = vst [vmem:[#allocation59_spill] sm:$0xff] %v3744_v7  ;;  %1195 = vmatmul.bf16.gmra.mxu1 %v3494_v11  ;;  %1284 = vmatmul.bf16.gmra.mxu2 %v3492_v10 }
 0x18f   : > { %1373 = vmatmul.bf16.gmra.mxu3 %v3494_v11 }
 0x191   : > { %v969_v4 = vpop.f32.mrf.mxu2 }
 0x192   : > { %v1058_v5 = vpop.f32.mrf.mxu3  ;;  %v793_v45 = vpop.f32.mrf.mxu0 }
 0x193   : > { %v3750_v49 = vadd.f32 %v1058_v5, %v969_v4  ;;  %v882_v3 = vpop.f32.mrf.mxu1 }
 0x194   : > { %v3752_v41 = vadd.f32 %v882_v3, %v793_v45 }
 0x195   : > { %5193 = vst [vmem:[#allocation60_spill] sm:$0xff] %v3750_v49 }
 0x196   : > { %5194 = vst [vmem:[#allocation61_spill] sm:$0xff] %v3752_v41 }
 0x199   : > { %v971_v43 = vpop.f32.mrf.mxu2 }
 0x19a   : > { %v1060_v37 = vpop.f32.mrf.mxu3  ;;  %v796_v40 = vpop.f32.mrf.mxu0 }
 0x19b   : > { %v3754_v25 = vadd.f32 %v1060_v37, %v971_v43  ;;  %v885_v7 = vpop.f32.mrf.mxu1 }
 0x19c   : > { %v3756_v23 = vadd.f32 %v885_v7, %v796_v40 }
 0x19d   : > { %5195 = vst [vmem:[#allocation62_spill] sm:$0xff] %v3754_v25  ;;  %1111 = vmatmul.bf16.gmra.mxu0 %v3504_v28 }
 0x19e   : > { %5196 = vst [vmem:[#allocation63_spill] sm:$0xff] %v3756_v23  ;;  %1200 = vmatmul.bf16.gmra.mxu1 %v3506_v29  ;;  %1289 = vmatmul.bf16.gmra.mxu2 %v3504_v28 }
 0x19f   : > { %1378 = vmatmul.bf16.gmra.mxu3 %v3506_v29 }
 0x1a1   : > { %v974_v10 = vpop.f32.mrf.mxu2 }
 0x1a2   : > { %v1063_v11 = vpop.f32.mrf.mxu3  ;;  %v798_v4 = vpop.f32.mrf.mxu0 }
 0x1a3   : > { %v3762_v5 = vadd.f32 %v1063_v11, %v974_v10  ;;  %v887_v45 = vpop.f32.mrf.mxu1 }
 0x1a4   : > { %v3764_v3 = vadd.f32 %v887_v45, %v798_v4 }
 0x1a5   : > { %5197 = vst [vmem:[#allocation64_spill] sm:$0xff] %v3762_v5 }
 0x1a6   : > { %5198 = vst [vmem:[#allocation65_spill] sm:$0xff] %v3764_v3 }
 0x1a9   : > { %v976_v43 = vpop.f32.mrf.mxu2 }
 0x1aa   : > { %v1065_v37 = vpop.f32.mrf.mxu3  ;;  %v801_v7 = vpop.f32.mrf.mxu0 }
 0x1ab   : > { %v3766_v40 = vadd.f32 %v1065_v37, %v976_v43  ;;  %v890_v23 = vpop.f32.mrf.mxu1 }
 0x1ac   : > { %v3768_v25 = vadd.f32 %v890_v23, %v801_v7 }
 0x1ad   : > { %5199 = vst [vmem:[#allocation66_spill] sm:$0xff] %v3766_v40  ;;  %1116 = vmatmul.bf16.gmra.mxu0 %v3516_v34 }
 0x1ae   : > { %5200 = vst [vmem:[#allocation67_spill] sm:$0xff] %v3768_v25  ;;  %1205 = vmatmul.bf16.gmra.mxu1 %v3518_v35  ;;  %1294 = vmatmul.bf16.gmra.mxu2 %v3516_v34 }
 0x1af   : > { %1383 = vmatmul.bf16.gmra.mxu3 %v3518_v35 }
 0x1b1   : > { %v979_v28 = vpop.f32.mrf.mxu2 }
 0x1b2   : > { %v1068_v29 = vpop.f32.mrf.mxu3  ;;  %v803_v10 = vpop.f32.mrf.mxu0 }
 0x1b3   : > { %v3774_v11 = vadd.f32 %v1068_v29, %v979_v28  ;;  %v892_v4 = vpop.f32.mrf.mxu1 }
 0x1b4   : > { %v3776_v45 = vadd.f32 %v892_v4, %v803_v10 }
 0x1b5   : > { %5201 = vst [vmem:[#allocation68_spill] sm:$0xff] %v3774_v11 }
 0x1b6   : > { %5202 = vst [vmem:[#allocation69_spill] sm:$0xff] %v3776_v45 }
 0x1b9   : > { %v981_v43 = vpop.f32.mrf.mxu2 }
 0x1ba   : > { %v1070_v37 = vpop.f32.mrf.mxu3  ;;  %v806_v23 = vpop.f32.mrf.mxu0 }
 0x1bb   : > { %v3778_v7 = vadd.f32 %v1070_v37, %v981_v43  ;;  %v895_v25 = vpop.f32.mrf.mxu1 }
 0x1bc   : > { %v3780_v40 = vadd.f32 %v895_v25, %v806_v23 }
 0x1bd   : > { %5203 = vst [vmem:[#allocation70_spill] sm:$0xff] %v3778_v7  ;;  %1121 = vmatmul.bf16.gmra.mxu0 %v3528_v54 }
 0x1be   : > { %5204 = vst [vmem:[#allocation71_spill] sm:$0xff] %v3780_v40  ;;  %1210 = vmatmul.bf16.gmra.mxu1 %v3530_v55  ;;  %1299 = vmatmul.bf16.gmra.mxu2 %v3528_v54 }
 0x1bf   : > { %1388 = vmatmul.bf16.gmra.mxu3 %v3530_v55 }
 0x1c1   : > { %v984_v34 = vpop.f32.mrf.mxu2 }
 0x1c2   : > { %v1073_v35 = vpop.f32.mrf.mxu3  ;;  %v808_v28 = vpop.f32.mrf.mxu0 }
 0x1c3   : > { %v3786_v29 = vadd.f32 %v1073_v35, %v984_v34  ;;  %v897_v10 = vpop.f32.mrf.mxu1 }
 0x1c4   : > { %v3788_v4 = vadd.f32 %v897_v10, %v808_v28 }
 0x1c5   : > { %5205 = vst [vmem:[#allocation72_spill] sm:$0xff] %v3786_v29 }
 0x1c6   : > { %5206 = vst [vmem:[#allocation73_spill] sm:$0xff] %v3788_v4 }
 0x1c9   : > { %v986_v43 = vpop.f32.mrf.mxu2 }
 0x1ca   : > { %v1075_v37 = vpop.f32.mrf.mxu3  ;;  %v811_v25 = vpop.f32.mrf.mxu0 }
 0x1cb   : > { %v3790_v23 = vadd.f32 %v1075_v37, %v986_v43  ;;  %v900_v40 = vpop.f32.mrf.mxu1 }
 0x1cc   : > { %v3792_v7 = vadd.f32 %v900_v40, %v811_v25 }
 0x1cd   : > { %5207 = vst [vmem:[#allocation74_spill] sm:$0xff] %v3790_v23  ;;  %1126 = vmatmul.bf16.gmra.mxu0 %v3540_v60 }
 0x1ce   : > { %5208 = vst [vmem:[#allocation75_spill] sm:$0xff] %v3792_v7  ;;  %1215 = vmatmul.bf16.gmra.mxu1 %v3542_v61  ;;  %1304 = vmatmul.bf16.gmra.mxu2 %v3540_v60 }
 0x1cf   : > { %1393 = vmatmul.bf16.gmra.mxu3 %v3542_v61 }
 0x1d1   : > { %v989_v54 = vpop.f32.mrf.mxu2 }
 0x1d2   : > { %v1078_v55 = vpop.f32.mrf.mxu3  ;;  %v813_v34 = vpop.f32.mrf.mxu0 }
 0x1d3   : > { %v3798_v35 = vadd.f32 %v1078_v55, %v989_v54  ;;  %v902_v28 = vpop.f32.mrf.mxu1 }
 0x1d4   : > { %v3800_v10 = vadd.f32 %v902_v28, %v813_v34 }
 0x1d5   : > { %5209 = vst [vmem:[#allocation76_spill] sm:$0xff] %v3798_v35 }
 0x1d6   : > { %5210 = vst [vmem:[#allocation77_spill] sm:$0xff] %v3800_v10 }
 0x1d9   : > { %v991_v43 = vpop.f32.mrf.mxu2 }
 0x1da   : > { %v1080_v37 = vpop.f32.mrf.mxu3  ;;  %v816_v40 = vpop.f32.mrf.mxu0 }
 0x1db   : > { %v3802_v25 = vadd.f32 %v1080_v37, %v991_v43  ;;  %v905_v7 = vpop.f32.mrf.mxu1 }
 0x1dc   : > { %v3804_v23 = vadd.f32 %v905_v7, %v816_v40 }
 0x1dd   : > { %5211 = vst [vmem:[#allocation78_spill] sm:$0xff] %v3802_v25  ;;  %1131 = vmatmul.bf16.gmra.mxu0 %v3552_v18 }
 0x1de   : > { %5212 = vst [vmem:[#allocation79_spill] sm:$0xff] %v3804_v23  ;;  %1220 = vmatmul.bf16.gmra.mxu1 %v3554_v19  ;;  %1309 = vmatmul.bf16.gmra.mxu2 %v3552_v18 }
 0x1df   : > { %1398 = vmatmul.bf16.gmra.mxu3 %v3554_v19 }
 0x1e1   : > { %v994_v60 = vpop.f32.mrf.mxu2 }
 0x1e2   : > { %v1083_v61 = vpop.f32.mrf.mxu3  ;;  %v818_v54 = vpop.f32.mrf.mxu0 }
 0x1e3   : > { %v3810_v55 = vadd.f32 %v1083_v61, %v994_v60  ;;  %v907_v34 = vpop.f32.mrf.mxu1 }
 0x1e4   : > { %v3812_v28 = vadd.f32 %v907_v34, %v818_v54 }
 0x1e5   : > { %5213 = vst [vmem:[#allocation80_spill] sm:$0xff] %v3810_v55 }
 0x1e6   : > { %5214 = vst [vmem:[#allocation81_spill] sm:$0xff] %v3812_v28 }
 0x1e9   : > { %v996_v43 = vpop.f32.mrf.mxu2 }
 0x1ea   : > { %v1085_v37 = vpop.f32.mrf.mxu3  ;;  %v1097_v7 = vpop.f32.mrf.mxu0 }
 0x1eb   : > { %v3814_v40 = vadd.f32 %v1085_v37, %v996_v43  ;;  %v1186_v23 = vpop.f32.mrf.mxu1 }
 0x1ec   : > { %v3816_v25 = vadd.f32 %v1186_v23, %v1097_v7 }
 0x1ed   : > { %5215 = vst [vmem:[#allocation82_spill] sm:$0xff] %v3814_v40  ;;  %1136 = vmatmul.bf16.gmra.mxu0 %v3564_v24 }
 0x1ee   : > { %5216 = vst [vmem:[#allocation83_spill] sm:$0xff] %v3816_v25  ;;  %1225 = vmatmul.bf16.gmra.mxu1 %v3566_v26  ;;  %1314 = vmatmul.bf16.gmra.mxu2 %v3564_v24 }
 0x1ef   : > { %1403 = vmatmul.bf16.gmra.mxu3 %v3566_v26 }
 0x1f1   : > { %v1275_v18 = vpop.f32.mrf.mxu2 }
 0x1f2   : > { %v1364_v19 = vpop.f32.mrf.mxu3  ;;  %v1099_v60 = vpop.f32.mrf.mxu0 }
 0x1f3   : > { %v3822_v61 = vadd.f32 %v1364_v19, %v1275_v18  ;;  %v1188_v54 = vpop.f32.mrf.mxu1 }
 0x1f4   : > { %v3824_v34 = vadd.f32 %v1188_v54, %v1099_v60 }
 0x1f5   : > { %5217 = vst [vmem:[#allocation84_spill] sm:$0xff] %v3822_v61 }
 0x1f6   : > { %5218 = vst [vmem:[#allocation85_spill] sm:$0xff] %v3824_v34 }
 0x1f9   : > { %v1277_v43 = vpop.f32.mrf.mxu2 }
 0x1fa   : > { %v1366_v37 = vpop.f32.mrf.mxu3  ;;  %v1102_v23 = vpop.f32.mrf.mxu0 }
 0x1fb   : > { %v3826_v7 = vadd.f32 %v1366_v37, %v1277_v43  ;;  %v1191_v40 = vpop.f32.mrf.mxu1 }
 0x1fc   : > { %v3828_v28 = vadd.f32 %v1191_v40, %v1102_v23 }
 0x1fd   : > { %5219 = vst [vmem:[#allocation86_spill] sm:$0xff] %v3826_v7  ;;  %1141 = vmatmul.bf16.gmra.mxu0 %v3582_v62 }
 0x1fe   : > { %5220 = vst [vmem:[#allocation87_spill] sm:$0xff] %v3828_v28  ;;  %1230 = vmatmul.bf16.gmra.mxu1 %v3584_v1  ;;  %1319 = vmatmul.bf16.gmra.mxu2 %v3582_v62 }
 0x1ff   : > { %1408 = vmatmul.bf16.gmra.mxu3 %v3584_v1 }
 0x201   : > { %v1280_v24 = vpop.f32.mrf.mxu2 }
 0x202   : > { %v1369_v26 = vpop.f32.mrf.mxu3  ;;  %v1104_v18 = vpop.f32.mrf.mxu0 }
 0x203   : > { %v3834_v19 = vadd.f32 %v1369_v26, %v1280_v24  ;;  %v1193_v60 = vpop.f32.mrf.mxu1 }
 0x204   : > { %v3836_v54 = vadd.f32 %v1193_v60, %v1104_v18 }
 0x205   : > { %5221 = vst [vmem:[#allocation88_spill] sm:$0xff] %v3834_v19 }
 0x206   : > { %5222 = vst [vmem:[#allocation89_spill] sm:$0xff] %v3836_v54 }
 0x209   : > { %v1282_v43 = vpop.f32.mrf.mxu2 }
 0x20a   : > { %v1371_v37 = vpop.f32.mrf.mxu3  ;;  %v1107_v40 = vpop.f32.mrf.mxu0 }
 0x20b   : > { %v3838_v23 = vadd.f32 %v1371_v37, %v1282_v43  ;;  %v1196_v55 = vpop.f32.mrf.mxu1 }
 0x20c   : > { %v3840_v10 = vadd.f32 %v1196_v55, %v1107_v40 }
 0x20d   : > { %5223 = vst [vmem:[#allocation90_spill] sm:$0xff] %v3838_v23  ;;  %1146 = vmatmul.bf16.gmra.mxu0 %v3602_v22 }
 0x20e   : > { %5224 = vst [vmem:[#allocation91_spill] sm:$0xff] %v3840_v10  ;;  %1235 = vmatmul.bf16.gmra.mxu1 %v3604_v27  ;;  %1324 = vmatmul.bf16.gmra.mxu2 %v3602_v22 }
 0x20f   : > { %1413 = vmatmul.bf16.gmra.mxu3 %v3604_v27 }
 0x211   : > { %v1285_v62 = vpop.f32.mrf.mxu2 }
 0x212   : > { %v1374_v1 = vpop.f32.mrf.mxu3  ;;  %v1109_v24 = vpop.f32.mrf.mxu0 }
 0x213   : > { %v3846_v26 = vadd.f32 %v1374_v1, %v1285_v62  ;;  %v1198_v18 = vpop.f32.mrf.mxu1 }
 0x214   : > { %v3848_v60 = vadd.f32 %v1198_v18, %v1109_v24 }
 0x215   : > { %5225 = vst [vmem:[#allocation92_spill] sm:$0xff] %v3846_v26 }
 0x216   : > { %5226 = vst [vmem:[#allocation93_spill] sm:$0xff] %v3848_v60 }
 0x219   : > { %v1287_v43 = vpop.f32.mrf.mxu2 }
 0x21a   : > { %v1376_v37 = vpop.f32.mrf.mxu3  ;;  %v1112_v55 = vpop.f32.mrf.mxu0 }
 0x21b   : > { %v3850_v40 = vadd.f32 %v1376_v37, %v1287_v43  ;;  %v1201_v35 = vpop.f32.mrf.mxu1 }
 0x21c   : > { %v3852_v4 = vadd.f32 %v1201_v35, %v1112_v55 }
 0x21d   : > { %5227 = vst [vmem:[#allocation94_spill] sm:$0xff] %v3850_v40  ;;  %1151 = vmatmul.bf16.gmra.mxu0 %v3622_v9 }
 0x21e   : > { %5228 = vst [vmem:[#allocation95_spill] sm:$0xff] %v3852_v4  ;;  %1240 = vmatmul.bf16.gmra.mxu1 %v3624_v16  ;;  %1329 = vmatmul.bf16.gmra.mxu2 %v3622_v9 }
 0x21f   : > { %1418 = vmatmul.bf16.gmra.mxu3 %v3624_v16 }
 0x221   : > { %v1290_v22 = vpop.f32.mrf.mxu2 }
 0x222   : > { %v1379_v27 = vpop.f32.mrf.mxu3  ;;  %v1114_v62 = vpop.f32.mrf.mxu0 }
 0x223   : > { %v3858_v1 = vadd.f32 %v1379_v27, %v1290_v22  ;;  %v1203_v24 = vpop.f32.mrf.mxu1 }
 0x224   : > { %v3860_v18 = vadd.f32 %v1203_v24, %v1114_v62 }
 0x225   : > { %5229 = vst [vmem:[#allocation96_spill] sm:$0xff] %v3858_v1 }
 0x226   : > { %5230 = vst [vmem:[#allocation97_spill] sm:$0xff] %v3860_v18 }
 0x229   : > { %v1292_v43 = vpop.f32.mrf.mxu2 }
 0x22a   : > { %v1381_v37 = vpop.f32.mrf.mxu3  ;;  %v1117_v35 = vpop.f32.mrf.mxu0 }
 0x22b   : > { %v3862_v55 = vadd.f32 %v1381_v37, %v1292_v43  ;;  %v1206_v29 = vpop.f32.mrf.mxu1 }
 0x22c   : > { %v3864_v45 = vadd.f32 %v1206_v29, %v1117_v35 }
 0x22d   : > { %5231 = vst [vmem:[#allocation98_spill] sm:$0xff] %v3862_v55  ;;  %1156 = vmatmul.bf16.gmra.mxu0 %v3642_v47 }
 0x22e   : > { %5232 = vst [vmem:[#allocation99_spill] sm:$0xff] %v3864_v45  ;;  %1245 = vmatmul.bf16.gmra.mxu1 %v3644_v53  ;;  %1334 = vmatmul.bf16.gmra.mxu2 %v3642_v47 }
 0x22f   : > { %1423 = vmatmul.bf16.gmra.mxu3 %v3644_v53 }
 0x231   : > { %v1295_v9 = vpop.f32.mrf.mxu2 }
 0x232   : > { %v1384_v16 = vpop.f32.mrf.mxu3  ;;  %v1119_v22 = vpop.f32.mrf.mxu0 }
 0x233   : > { %v3870_v27 = vadd.f32 %v1384_v16, %v1295_v9  ;;  %v1208_v62 = vpop.f32.mrf.mxu1 }
 0x234   : > { %v3872_v24 = vadd.f32 %v1208_v62, %v1119_v22 }
 0x235   : > { %5233 = vst [vmem:[#allocation100_spill] sm:$0xff] %v3870_v27 }
 0x239   : > { %v1297_v43 = vpop.f32.mrf.mxu2 }
 0x23a   : > { %v1386_v37 = vpop.f32.mrf.mxu3  ;;  %v1122_v29 = vpop.f32.mrf.mxu0 }
 0x23b   : > { %v3874_v35 = vadd.f32 %v1386_v37, %v1297_v43  ;;  %v1211_v11 = vpop.f32.mrf.mxu1 }
 0x23c   : > { %v3876_v3 = vadd.f32 %v1211_v11, %v1122_v29 }
 0x23d   : > { %1161 = vmatmul.bf16.gmra.mxu0 %v3662_v0 }
 0x23e   : > { %1250 = vmatmul.bf16.gmra.mxu1 %v3664_v8  ;;  %1339 = vmatmul.bf16.gmra.mxu2 %v3662_v0 }
 0x23f   : > { %1428 = vmatmul.bf16.gmra.mxu3 %v3664_v8 }
 0x241   : > { %v1300_v47 = vpop.f32.mrf.mxu2 }
 0x242   : > { %v1389_v53 = vpop.f32.mrf.mxu3  ;;  %v1124_v9 = vpop.f32.mrf.mxu0 }
 0x243   : > { %v3882_v16 = vadd.f32 %v1389_v53, %v1300_v47  ;;  %v1213_v22 = vpop.f32.mrf.mxu1 }
 0x244   : > { %v3884_v62 = vadd.f32 %v1213_v22, %v1124_v9 }
 0x245   : > { %5234 = vst [vmem:[#allocation101_spill] sm:$0xff] %v3882_v16 }
 0x246   : > { %5235 = vst [vmem:[#allocation102_spill] sm:$0xff] %v3884_v62 }
 0x249   : > { %v1302_v43 = vpop.f32.mrf.mxu2 }
 0x24a   : > { %v1391_v37 = vpop.f32.mrf.mxu3  ;;  %v1127_v11 = vpop.f32.mrf.mxu0 }
 0x24b   : > { %v3886_v29 = vadd.f32 %v1391_v37, %v1302_v43  ;;  %v1216_v5 = vpop.f32.mrf.mxu1 }
 0x24c   : > { %v3888_v41 = vadd.f32 %v1216_v5, %v1127_v11 }
 0x24d   : > { %5236 = vst [vmem:[#allocation103_spill] sm:$0xff] %v3886_v29  ;;  %1166 = vmatmul.bf16.gmra.mxu0 %v3682_v63 }
 0x24e   : > { %5237 = vst [vmem:[#allocation104_spill] sm:$0xff] %v3888_v41  ;;  %1255 = vmatmul.bf16.gmra.mxu1 %v3684_v15  ;;  %1344 = vmatmul.bf16.gmra.mxu2 %v3682_v63 }
 0x24f   : > { %1433 = vmatmul.bf16.gmra.mxu3 %v3684_v15 }
 0x251   : > { %v1305_v0 = vpop.f32.mrf.mxu2 }
 0x252   : > { %v1394_v8 = vpop.f32.mrf.mxu3  ;;  %v1129_v47 = vpop.f32.mrf.mxu0 }
 0x253   : > { %v3894_v53 = vadd.f32 %v1394_v8, %v1305_v0  ;;  %v1218_v9 = vpop.f32.mrf.mxu1 }
 0x254   : > { %v3896_v22 = vadd.f32 %v1218_v9, %v1129_v47 }
 0x255   : > { %5238 = vst [vmem:[#allocation105_spill] sm:$0xff] %v3894_v53 }
 0x256   : > { %5239 = vst [vmem:[#allocation106_spill] sm:$0xff] %v3896_v22 }
 0x259   : > { %v1307_v43 = vpop.f32.mrf.mxu2 }
 0x25a   : > { %v1396_v37 = vpop.f32.mrf.mxu3  ;;  %v1132_v5 = vpop.f32.mrf.mxu0 }
 0x25b   : > { %v3898_v11 = vadd.f32 %v1396_v37, %v1307_v43  ;;  %v1221_v49 = vpop.f32.mrf.mxu1 }
 0x25c   : > { %v3900_v46 = vadd.f32 %v1221_v49, %v1132_v5 }
 0x25d   : > { %5240 = vst [vmem:[#allocation107_spill] sm:$0xff] %v3898_v11  ;;  %1171 = vmatmul.bf16.gmra.mxu0 %v3702_v20 }
 0x25e   : > { %5241 = vst [vmem:[#allocation108_spill] sm:$0xff] %v3900_v46  ;;  %1260 = vmatmul.bf16.gmra.mxu1 %v3704_v13  ;;  %1349 = vmatmul.bf16.gmra.mxu2 %v3702_v20 }
 0x25f   : > { %1438 = vmatmul.bf16.gmra.mxu3 %v3704_v13 }
 0x261   : > { %v1310_v63 = vpop.f32.mrf.mxu2 }
 0x262   : > { %v1399_v15 = vpop.f32.mrf.mxu3  ;;  %v1134_v0 = vpop.f32.mrf.mxu0 }
 0x263   : > { %v3906_v8 = vadd.f32 %v1399_v15, %v1310_v63  ;;  %v1223_v47 = vpop.f32.mrf.mxu1 }
 0x264   : > { %v3908_v9 = vadd.f32 %v1223_v47, %v1134_v0 }
 0x265   : > { %5242 = vst [vmem:[#allocation109_spill] sm:$0xff] %v3906_v8 }
 0x266   : > { %5243 = vst [vmem:[#allocation110_spill] sm:$0xff] %v3908_v9 }
 0x269   : > { %v1312_v43 = vpop.f32.mrf.mxu2 }
 0x26a   : > { %v1401_v37 = vpop.f32.mrf.mxu3  ;;  %v1137_v49 = vpop.f32.mrf.mxu0 }
 0x26b   : > { %v3910_v5 = vadd.f32 %v1401_v37, %v1312_v43  ;;  %v1226_v39 = vpop.f32.mrf.mxu1 }
 0x26c   : > { %v3912_v52 = vadd.f32 %v1226_v39, %v1137_v49 }
 0x26d   : > { %5244 = vst [vmem:[#allocation111_spill] sm:$0xff] %v3910_v5 }
 0x26e   : > { %5245 = vst [vmem:[#allocation112_spill] sm:$0xff] %v3912_v52 }
 0x271   : > { %v1315_v59 = vpop.f32.mrf.mxu2 }
 0x272   : > { %v1404_v20 = vpop.f32.mrf.mxu3  ;;  %v1139_v46 = vpop.f32.mrf.mxu0 }
 0x273   : > { %v3914_v13 = vadd.f32 %v1404_v20, %v1315_v59  ;;  %v1228_v58 = vpop.f32.mrf.mxu1 }
 0x274   : > { %v3916_v11 = vadd.f32 %v1228_v58, %v1139_v46 }
 0x275   : > { %5246 = vst [vmem:[#allocation113_spill] sm:$0xff] %v3914_v13 }
 0x276   : > { %5247 = vst [vmem:[#allocation114_spill] sm:$0xff] %v3916_v11 }
 0x279   : > { %v1317_v63 = vpop.f32.mrf.mxu2 }
 0x27a   : > { %v1406_v15 = vpop.f32.mrf.mxu3  ;;  %v1142_v0 = vpop.f32.mrf.mxu0 }
 0x27b   : > { %v3918_v47 = vadd.f32 %v1406_v15, %v1317_v63  ;;  %v1231_v9 = vpop.f32.mrf.mxu1 }
 0x27c   : > { %v3920_v8 = vadd.f32 %v1231_v9, %v1142_v0 }
 0x27d   : > { %5248 = vst [vmem:[#allocation115_spill] sm:$0xff] %v3918_v47 }
 0x27e   : > { %5249 = vst [vmem:[#allocation116_spill] sm:$0xff] %v3920_v8 }
 0x281   : > { %v1320_v43 = vpop.f32.mrf.mxu2 }
 0x282   : > { %v1409_v37 = vpop.f32.mrf.mxu3  ;;  %v1144_v39 = vpop.f32.mrf.mxu0 }
 0x283   : > { %v3922_v49 = vadd.f32 %v1409_v37, %v1320_v43  ;;  %v1233_v52 = vpop.f32.mrf.mxu1 }
 0x284   : > { %v3924_v5 = vadd.f32 %v1233_v52, %v1144_v39 }
 0x285   : > { %5250 = vst [vmem:[#allocation117_spill] sm:$0xff] %v3922_v49 }
 0x286   : > { %5251 = vst [vmem:[#allocation118_spill] sm:$0xff] %v3924_v5 }
 0x289   : > { %v1322_v59 = vpop.f32.mrf.mxu2 }
 0x28a   : > { %v1411_v20 = vpop.f32.mrf.mxu3  ;;  %v1147_v58 = vpop.f32.mrf.mxu0 }
 0x28b   : > { %v3926_v46 = vadd.f32 %v1411_v20, %v1322_v59  ;;  %v1236_v11 = vpop.f32.mrf.mxu1 }
 0x28c   : > { %v3928_v13 = vadd.f32 %v1236_v11, %v1147_v58 }
 0x28d   : > { %5252 = vst [vmem:[#allocation119_spill] sm:$0xff] %v3926_v46 }
 0x28e   : > { %5253 = vst [vmem:[#allocation120_spill] sm:$0xff] %v3928_v13 }
 0x291   : > { %v1325_v63 = vpop.f32.mrf.mxu2 }
 0x292   : > { %v1414_v15 = vpop.f32.mrf.mxu3  ;;  %v1149_v9 = vpop.f32.mrf.mxu0 }
 0x293   : > { %v3930_v0 = vadd.f32 %v1414_v15, %v1325_v63  ;;  %v1238_v8 = vpop.f32.mrf.mxu1 }
 0x294   : > { %v3932_v47 = vadd.f32 %v1238_v8, %v1149_v9 }
 0x295   : > { %5254 = vst [vmem:[#allocation121_spill] sm:$0xff] %v3930_v0 }
 0x296   : > { %5255 = vst [vmem:[#allocation122_spill] sm:$0xff] %v3932_v47 }
 0x299   : > { %v1327_v43 = vpop.f32.mrf.mxu2 }
 0x29a   : > { %v1416_v37 = vpop.f32.mrf.mxu3  ;;  %v1152_v52 = vpop.f32.mrf.mxu0 }
 0x29b   : > { %v3934_v39 = vadd.f32 %v1416_v37, %v1327_v43  ;;  %v1241_v5 = vpop.f32.mrf.mxu1 }
 0x29c   : > { %v3936_v49 = vadd.f32 %v1241_v5, %v1152_v52 }
 0x29d   : > { %5256 = vst [vmem:[#allocation123_spill] sm:$0xff] %v3934_v39 }
 0x29e   : > { %5257 = vst [vmem:[#allocation124_spill] sm:$0xff] %v3936_v49 }
 0x2a1   : > { %v1330_v59 = vpop.f32.mrf.mxu2 }
 0x2a2   : > { %v1419_v20 = vpop.f32.mrf.mxu3  ;;  %v1154_v11 = vpop.f32.mrf.mxu0 }
 0x2a3   : > { %v3938_v58 = vadd.f32 %v1419_v20, %v1330_v59  ;;  %v1243_v13 = vpop.f32.mrf.mxu1 }
 0x2a4   : > { %v3940_v46 = vadd.f32 %v1243_v13, %v1154_v11 }
 0x2a5   : > { %5258 = vst [vmem:[#allocation125_spill] sm:$0xff] %v3938_v58 }
 0x2a6   : > { %5259 = vst [vmem:[#allocation126_spill] sm:$0xff] %v3940_v46 }
 0x2a9   : > { %v1332_v63 = vpop.f32.mrf.mxu2 }
 0x2aa   : > { %v1421_v15 = vpop.f32.mrf.mxu3  ;;  %v1157_v8 = vpop.f32.mrf.mxu0 }
 0x2ab   : > { %v3942_v9 = vadd.f32 %v1421_v15, %v1332_v63  ;;  %v1246_v47 = vpop.f32.mrf.mxu1 }
 0x2ac   : > { %v3944_v0 = vadd.f32 %v1246_v47, %v1157_v8 }
 0x2ad   : > { %5260 = vst [vmem:[#allocation127_spill] sm:$0xff] %v3942_v9 }
 0x2ae   : > { %5261 = vst [vmem:[#allocation128_spill] sm:$0xff] %v3944_v0 }
 0x2b1   : > { %v1335_v43 = vpop.f32.mrf.mxu2 }
 0x2b2   : > { %v1424_v37 = vpop.f32.mrf.mxu3  ;;  %v1159_v5 = vpop.f32.mrf.mxu0 }
 0x2b3   : > { %v3946_v52 = vadd.f32 %v1424_v37, %v1335_v43  ;;  %v1248_v49 = vpop.f32.mrf.mxu1 }
 0x2b4   : > { %v3948_v39 = vadd.f32 %v1248_v49, %v1159_v5 }
 0x2b5   : > { %5262 = vst [vmem:[#allocation129_spill] sm:$0xff] %v3946_v52 }
 0x2b6   : > { %5263 = vst [vmem:[#allocation130_spill] sm:$0xff] %v3948_v39 }
 0x2b9   : > { %v1337_v59 = vpop.f32.mrf.mxu2 }
 0x2ba   : > { %v1426_v20 = vpop.f32.mrf.mxu3  ;;  %v1162_v13 = vpop.f32.mrf.mxu0 }
 0x2bb   : > { %v3950_v11 = vadd.f32 %v1426_v20, %v1337_v59  ;;  %v1251_v46 = vpop.f32.mrf.mxu1 }
 0x2bc   : > { %v3952_v58 = vadd.f32 %v1251_v46, %v1162_v13 }
 0x2bd   : > { %5264 = vst [vmem:[#allocation131_spill] sm:$0xff] %v3950_v11 }
 0x2be   : > { %5265 = vst [vmem:[#allocation132_spill] sm:$0xff] %v3952_v58 }
 0x2c1   : > { %v1340_v63 = vpop.f32.mrf.mxu2 }
 0x2c2   : > { %v1429_v15 = vpop.f32.mrf.mxu3  ;;  %v1164_v47 = vpop.f32.mrf.mxu0 }
 0x2c3   : > { %v3954_v8 = vadd.f32 %v1429_v15, %v1340_v63  ;;  %v1253_v0 = vpop.f32.mrf.mxu1 }
 0x2c4   : > { %v3956_v9 = vadd.f32 %v1253_v0, %v1164_v47 }
 0x2c5   : > { %5266 = vst [vmem:[#allocation133_spill] sm:$0xff] %v3954_v8 }
 0x2c6   : > { %5267 = vst [vmem:[#allocation134_spill] sm:$0xff] %v3956_v9 }
 0x2c9   : > { %v1342_v43 = vpop.f32.mrf.mxu2 }
 0x2ca   : > { %v1431_v37 = vpop.f32.mrf.mxu3  ;;  %v1167_v49 = vpop.f32.mrf.mxu0 }
 0x2cb   : > { %v3958_v5 = vadd.f32 %v1431_v37, %v1342_v43  ;;  %v1256_v39 = vpop.f32.mrf.mxu1 }
 0x2cc   : > { %v3960_v52 = vadd.f32 %v1256_v39, %v1167_v49 }
 0x2cd   : > { %5268 = vst [vmem:[#allocation135_spill] sm:$0xff] %v3958_v5 }
 0x2ce   : > { %5269 = vst [vmem:[#allocation136_spill] sm:$0xff] %v3960_v52 }
 0x2d1   : > { %v1345_v59 = vpop.f32.mrf.mxu2 }
 0x2d2   : > { %v1434_v20 = vpop.f32.mrf.mxu3  ;;  %v1169_v46 = vpop.f32.mrf.mxu0 }
 0x2d3   : > { %v3962_v13 = vadd.f32 %v1434_v20, %v1345_v59  ;;  %v1258_v58 = vpop.f32.mrf.mxu1 }
 0x2d4   : > { %v3964_v11 = vadd.f32 %v1258_v58, %v1169_v46 }
 0x2d5   : > { %5270 = vst [vmem:[#allocation137_spill] sm:$0xff] %v3962_v13 }
 0x2d6   : > { %5271 = vst [vmem:[#allocation138_spill] sm:$0xff] %v3964_v11 }
 0x2d9   : > { %v1347_v63 = vpop.f32.mrf.mxu2 }
 0x2da   : > { %v1436_v15 = vpop.f32.mrf.mxu3  ;;  %v1172_v0 = vpop.f32.mrf.mxu0 }
 0x2db   : > { %v3966_v47 = vadd.f32 %v1436_v15, %v1347_v63  ;;  %v1261_v9 = vpop.f32.mrf.mxu1 }
 0x2dc   : > { %v3968_v8 = vadd.f32 %v1261_v9, %v1172_v0 }
 0x2dd   : > { %5272 = vst [vmem:[#allocation139_spill] sm:$0xff] %v3966_v47 }
 0x2de   : > { %5273 = vst [vmem:[#allocation140_spill] sm:$0xff] %v3968_v8 }
 0x2e1   : > { %v1350_v43 = vpop.f32.mrf.mxu2 }
 0x2e2   : > { %v1439_v37 = vpop.f32.mrf.mxu3  ;;  %v1174_v39 = vpop.f32.mrf.mxu0 }
 0x2e3   : > { %v3970_v49 = vadd.f32 %v1439_v37, %v1350_v43  ;;  %v1263_v52 = vpop.f32.mrf.mxu1 }
 0x2e4   : > { %v3972_v5 = vadd.f32 %v1263_v52, %v1174_v39 }
 0x2e5   : > { %5274 = vst [vmem:[#allocation141_spill] sm:$0xff] %v3970_v49 }
 0x2e6   : > { %5275 = vst [vmem:[#allocation142_spill] sm:$0xff] %v3972_v5 }
 0x2e9   : > { %v1352_v59 = vpop.f32.mrf.mxu2  ;;  %1446 = sbr.rel (%p2855_p1) target bundleno = 900 (0x384), region = 52 }
 0x2ea   : > { %v1441_v20 = vpop.f32.mrf.mxu3 }
 0x2eb   : > { %v3974_v58 = vadd.f32 %v1441_v20, %v1352_v59 }
 0x2ed   : > { %5276 = vst [vmem:[#allocation143_spill] sm:$0xff] %v3974_v58 }
 0x2ee   : > { %v1448_v46 = vadd.f32 %v3576_v44, %v3568_v30  ;;  %v1485_v9 = vadd.f32 %v3586_v2, %v3574_v42  ;;  %v1522_v63 = vadd.f32 %v3824_v34, %v3816_v25  ;;  %v1559_v52 = vadd.f32 %v3826_v7, %v3822_v61 }
 0x2ef   : > { %vm1603_vm1 = vcmask 1040384   ;;  %vm1605_vm2 = vcmask 1042434   ;;  %vm1607_vm3 = vcmask 1041408  }
 0x2f0   : > { %v1449_v15 = vadd.f32 %v1448_v46, %v3588_v6  ;;  %v1486_v0 = vadd.f32 %v1485_v9, %v3594_v12  ;;  %v1523_v43 = vadd.f32 %v1522_v63, %v3828_v28  ;;  %v1560_v37 = vadd.f32 %v1559_v52, %v3834_v19 }
 0x2f2   : > { %v1450_v39 = vadd.f32 %v1449_v15, %v3596_v14  ;;  %v1487_v59 = vadd.f32 %v1486_v0, %v3606_v31  ;;  %v1524_v20 = vadd.f32 %v1523_v43, %v3836_v54  ;;  %v1561_v58 = vadd.f32 %v1560_v37, %v3838_v23 }
 0x2f4   : > { %v1451_v5 = vadd.f32 %v1450_v39, %v3608_v33  ;;  %v1488_v49 = vadd.f32 %v1487_v59, %v3614_v48  ;;  %v1525_v46 = vadd.f32 %v1524_v20, %v3840_v10  ;;  %v1562_v9 = vadd.f32 %v1561_v58, %v3846_v26 }
 0x2f6   : > { %v1452_v63 = vadd.f32 %v1451_v5, %v3616_v51  ;;  %v1489_v52 = vadd.f32 %v1488_v49, %v3626_v17  ;;  %v1526_v15 = vadd.f32 %v1525_v46, %v3848_v60  ;;  %v1563_v0 = vadd.f32 %v1562_v9, %v3850_v40  ;;  %v5277_v17 = vld [vmem:[#allocation35_spill] sm:$0xff]  ;;  %v5278_v60 = vld [vmem:[#allocation36_spill] sm:$0xff] }
 0x2f8   : > { %v1453_v43 = vadd.f32 %v1452_v63, %v3628_v21  ;;  %v1490_v37 = vadd.f32 %v1489_v52, %v3634_v36  ;;  %v1527_v39 = vadd.f32 %v1526_v15, %v3852_v4  ;;  %v1564_v59 = vadd.f32 %v1563_v0, %v3858_v1  ;;  %v5279_v36 = vld [vmem:[#allocation37_spill] sm:$0xff]  ;;  %v5280_v4 = vld [vmem:[#allocation38_spill] sm:$0xff] }
 0x2fa   : > { %v1454_v20 = vadd.f32 %v1453_v43, %v3636_v38  ;;  %v1491_v58 = vadd.f32 %v1490_v37, %v3646_v56  ;;  %v1528_v5 = vadd.f32 %v1527_v39, %v3860_v18  ;;  %v1565_v49 = vadd.f32 %v1564_v59, %v3862_v55  ;;  %v5281_v56 = vld [vmem:[#allocation39_spill] sm:$0xff]  ;;  %v5282_v18 = vld [vmem:[#allocation40_spill] sm:$0xff] }
 0x2fc   : > { %v1455_v46 = vadd.f32 %v1454_v20, %v5277_v17  ;;  %v1492_v9 = vadd.f32 %v1491_v58, %v5278_v60  ;;  %v1529_v63 = vadd.f32 %v1528_v5, %v3864_v45  ;;  %v1566_v52 = vadd.f32 %v1565_v49, %v3870_v27  ;;  %v5283_v60 = vld [vmem:[#allocation41_spill] sm:$0xff]  ;;  %v5284_v45 = vld [vmem:[#allocation42_spill] sm:$0xff]  ;;  %v5285_v27 = vld [vmem:[#allocation43_spill] sm:$0xff] }
 0x2fe   : > { %v1456_v15 = vadd.f32 %v1455_v46, %v5279_v36  ;;  %v1493_v0 = vadd.f32 %v1492_v9, %v5280_v4  ;;  %v1530_v43 = vadd.f32 %v1529_v63, %v3872_v24  ;;  %v1567_v37 = vadd.f32 %v1566_v52, %v3874_v35 }
 0x300   : > { %v1457_v39 = vadd.f32 %v1456_v15, %v5281_v56  ;;  %v1494_v59 = vadd.f32 %v1493_v0, %v5282_v18  ;;  %v1531_v20 = vadd.f32 %v1530_v43, %v3876_v3  ;;  %v1568_v58 = vadd.f32 %v1567_v37, %v3882_v16  ;;  %v5286_v16 = vld [vmem:[#allocation107_spill] sm:$0xff] }
 0x302   : > { %v1458_v5 = vadd.f32 %v1457_v39, %v5283_v60  ;;  %v1495_v49 = vadd.f32 %v1494_v59, %v5284_v45  ;;  %v1532_v46 = vadd.f32 %v1531_v20, %v3884_v62  ;;  %v1569_v9 = vadd.f32 %v1568_v58, %v3886_v29  ;;  %v5287_v45 = vld [vmem:[#allocation47_spill] sm:$0xff]  ;;  %v5288_v62 = vld [vmem:[#allocation48_spill] sm:$0xff] }
 0x303   : > { %v5289_v29 = vld [vmem:[#allocation108_spill] sm:$0xff] }
 0x304   : > { %v1459_v63 = vadd.f32 %v1458_v5, %v5285_v27  ;;  %v1496_v52 = vadd.f32 %v1495_v49, %v3694_v50  ;;  %v1533_v15 = vadd.f32 %v1532_v46, %v3888_v41  ;;  %v1570_v0 = vadd.f32 %v1569_v9, %v3894_v53  ;;  %v5290_v27 = vld [vmem:[#allocation109_spill] sm:$0xff]  ;;  %v5292_v41 = vld [vmem:[#allocation50_spill] sm:$0xff] }
 0x305   : > { %v5291_v50 = vld [vmem:[#allocation49_spill] sm:$0xff]  ;;  %v5293_v53 = vld [vmem:[#allocation110_spill] sm:$0xff] }
 0x306   : > { %v1460_v43 = vadd.f32 %v1459_v63, %v3696_v57  ;;  %v1497_v37 = vadd.f32 %v1496_v52, %v3706_v32  ;;  %v1534_v39 = vadd.f32 %v1533_v15, %v3896_v22  ;;  %v1571_v59 = vadd.f32 %v1570_v0, %v5286_v16  ;;  %v5294_v57 = vld [vmem:[#allocation111_spill] sm:$0xff]  ;;  %v5296_v22 = vld [vmem:[#allocation52_spill] sm:$0xff] }
 0x307   : > { %v5295_v32 = vld [vmem:[#allocation51_spill] sm:$0xff]  ;;  %v5297_v16 = vld [vmem:[#allocation112_spill] sm:$0xff] }
 0x308   : > { %v1461_v20 = vadd.f32 %v1460_v43, %v5287_v45  ;;  %v1498_v58 = vadd.f32 %v1497_v37, %v5288_v62  ;;  %v1535_v5 = vadd.f32 %v1534_v39, %v5289_v29  ;;  %v1572_v49 = vadd.f32 %v1571_v59, %v5290_v27  ;;  %v5298_v45 = vld [vmem:[#allocation113_spill] sm:$0xff]  ;;  %v5300_v29 = vld [vmem:[#allocation54_spill] sm:$0xff] }
 0x309   : > { %v5299_v62 = vld [vmem:[#allocation53_spill] sm:$0xff]  ;;  %v5301_v27 = vld [vmem:[#allocation114_spill] sm:$0xff] }
 0x30a   : > { %v1462_v46 = vadd.f32 %v1461_v20, %v5291_v50  ;;  %v1499_v9 = vadd.f32 %v1498_v58, %v5292_v41  ;;  %v1536_v63 = vadd.f32 %v1535_v5, %v5293_v53  ;;  %v1573_v52 = vadd.f32 %v1572_v49, %v5294_v57  ;;  %v5302_v50 = vld [vmem:[#allocation115_spill] sm:$0xff]  ;;  %v5304_v53 = vld [vmem:[#allocation56_spill] sm:$0xff] }
 0x30b   : > { %v5303_v41 = vld [vmem:[#allocation55_spill] sm:$0xff]  ;;  %v5305_v57 = vld [vmem:[#allocation116_spill] sm:$0xff] }
 0x30c   : > { %v1463_v15 = vadd.f32 %v1462_v46, %v5295_v32  ;;  %v1500_v0 = vadd.f32 %v1499_v9, %v5296_v22  ;;  %v1537_v43 = vadd.f32 %v1536_v63, %v5297_v16  ;;  %v1574_v37 = vadd.f32 %v1573_v52, %v5298_v45  ;;  %v5306_v32 = vld [vmem:[#allocation117_spill] sm:$0xff]  ;;  %v5308_v16 = vld [vmem:[#allocation58_spill] sm:$0xff] }
 0x30d   : > { %v5307_v22 = vld [vmem:[#allocation57_spill] sm:$0xff]  ;;  %v5309_v45 = vld [vmem:[#allocation118_spill] sm:$0xff] }
 0x30e   : > { %v1464_v39 = vadd.f32 %v1463_v15, %v5299_v62  ;;  %v1501_v59 = vadd.f32 %v1500_v0, %v5300_v29  ;;  %v1538_v20 = vadd.f32 %v1537_v43, %v5301_v27  ;;  %v1575_v58 = vadd.f32 %v1574_v37, %v5302_v50  ;;  %v5310_v62 = vld [vmem:[#allocation119_spill] sm:$0xff]  ;;  %v5312_v27 = vld [vmem:[#allocation60_spill] sm:$0xff] }
 0x30f   : > { %v5311_v29 = vld [vmem:[#allocation59_spill] sm:$0xff]  ;;  %v5313_v50 = vld [vmem:[#allocation120_spill] sm:$0xff] }
 0x310   : > { %v1465_v5 = vadd.f32 %v1464_v39, %v5303_v41  ;;  %v1502_v49 = vadd.f32 %v1501_v59, %v5304_v53  ;;  %v1539_v46 = vadd.f32 %v1538_v20, %v5305_v57  ;;  %v1576_v9 = vadd.f32 %v1575_v58, %v5306_v32  ;;  %v5314_v41 = vld [vmem:[#allocation121_spill] sm:$0xff]  ;;  %v5316_v57 = vld [vmem:[#allocation62_spill] sm:$0xff] }
 0x311   : > { %v5315_v53 = vld [vmem:[#allocation61_spill] sm:$0xff]  ;;  %v5317_v32 = vld [vmem:[#allocation122_spill] sm:$0xff] }
 0x312   : > { %v1466_v63 = vadd.f32 %v1465_v5, %v5307_v22  ;;  %v1503_v52 = vadd.f32 %v1502_v49, %v5308_v16  ;;  %v1540_v15 = vadd.f32 %v1539_v46, %v5309_v45  ;;  %v1577_v0 = vadd.f32 %v1576_v9, %v5310_v62  ;;  %v5318_v22 = vld [vmem:[#allocation123_spill] sm:$0xff]  ;;  %v5320_v45 = vld [vmem:[#allocation64_spill] sm:$0xff] }
 0x313   : > { %v5319_v16 = vld [vmem:[#allocation63_spill] sm:$0xff]  ;;  %v5321_v62 = vld [vmem:[#allocation124_spill] sm:$0xff] }
 0x314   : > { %v1467_v43 = vadd.f32 %v1466_v63, %v5311_v29  ;;  %v1504_v37 = vadd.f32 %v1503_v52, %v5312_v27  ;;  %v1541_v39 = vadd.f32 %v1540_v15, %v5313_v50  ;;  %v1578_v59 = vadd.f32 %v1577_v0, %v5314_v41  ;;  %v5322_v29 = vld [vmem:[#allocation125_spill] sm:$0xff]  ;;  %v5324_v50 = vld [vmem:[#allocation66_spill] sm:$0xff] }
 0x315   : > { %v5323_v27 = vld [vmem:[#allocation65_spill] sm:$0xff]  ;;  %v5325_v41 = vld [vmem:[#allocation126_spill] sm:$0xff] }
 0x316   : > { %v1468_v20 = vadd.f32 %v1467_v43, %v5315_v53  ;;  %v1505_v58 = vadd.f32 %v1504_v37, %v5316_v57  ;;  %v1542_v5 = vadd.f32 %v1541_v39, %v5317_v32  ;;  %v1579_v49 = vadd.f32 %v1578_v59, %v5318_v22  ;;  %v5326_v53 = vld [vmem:[#allocation127_spill] sm:$0xff]  ;;  %v5328_v32 = vld [vmem:[#allocation68_spill] sm:$0xff] }
 0x317   : > { %v5327_v57 = vld [vmem:[#allocation67_spill] sm:$0xff]  ;;  %v5329_v22 = vld [vmem:[#allocation128_spill] sm:$0xff] }
 0x318   : > { %v1469_v46 = vadd.f32 %v1468_v20, %v5319_v16  ;;  %v1506_v9 = vadd.f32 %v1505_v58, %v5320_v45  ;;  %v1543_v63 = vadd.f32 %v1542_v5, %v5321_v62  ;;  %v1580_v52 = vadd.f32 %v1579_v49, %v5322_v29  ;;  %v5330_v16 = vld [vmem:[#allocation129_spill] sm:$0xff]  ;;  %v5332_v62 = vld [vmem:[#allocation70_spill] sm:$0xff] }
 0x319   : > { %v5331_v45 = vld [vmem:[#allocation69_spill] sm:$0xff]  ;;  %v5333_v29 = vld [vmem:[#allocation130_spill] sm:$0xff] }
 0x31a   : > { %v1470_v15 = vadd.f32 %v1469_v46, %v5323_v27  ;;  %v1507_v0 = vadd.f32 %v1506_v9, %v5324_v50  ;;  %v1544_v43 = vadd.f32 %v1543_v63, %v5325_v41  ;;  %v1581_v37 = vadd.f32 %v1580_v52, %v5326_v53  ;;  %v5334_v27 = vld [vmem:[#allocation131_spill] sm:$0xff] }
 0x31b   : > { %v4083_v63 = vmul.f32 %v3568_v30, %v3568_v30  ;;  %v4087_v52 = vmul.f32 %v3574_v42, %v3574_v42  ;;  %v5338_v30 = vld [vmem:[#allocation133_spill] sm:$0xff]  ;;  %v4103_v42 = vmul.f32 %v3576_v44, %v3576_v44  ;;  %v5342_v44 = vld [vmem:[#allocation135_spill] sm:$0xff] }
 0x31c   : > { %v1471_v39 = vadd.f32 %v1470_v15, %v5327_v57  ;;  %v1508_v59 = vadd.f32 %v1507_v0, %v5328_v32  ;;  %v1545_v20 = vadd.f32 %v1544_v43, %v5329_v22  ;;  %v1582_v58 = vadd.f32 %v1581_v37, %v5330_v16  ;;  %v5335_v43 = vld [vmem:[#allocation71_spill] sm:$0xff] }
 0x31d   : > { %v4091_v15 = vmul.f32 %v3816_v25, %v3816_v25  ;;  %v4095_v0 = vmul.f32 %v3822_v61, %v3822_v61  ;;  %v4107_v25 = vmul.f32 %v3586_v2, %v3586_v2  ;;  %v4111_v61 = vmul.f32 %v3824_v34, %v3824_v34 }
 0x31e   : > { %v1472_v5 = vadd.f32 %v1471_v39, %v5331_v45  ;;  %v1509_v49 = vadd.f32 %v1508_v59, %v5332_v62  ;;  %v1546_v46 = vadd.f32 %v1545_v20, %v5333_v29  ;;  %v1583_v9 = vadd.f32 %v1582_v58, %v5334_v27  ;;  %v5336_v39 = vld [vmem:[#allocation72_spill] sm:$0xff] }
 0x31f   : > { %v5337_v20 = vld [vmem:[#allocation132_spill] sm:$0xff]  ;;  %v4123_v2 = vmul.f32 %v3588_v6, %v3588_v6  ;;  %v4127_v34 = vmul.f32 %v3594_v12, %v3594_v12  ;;  %v4143_v12 = vmul.f32 %v3596_v14, %v3596_v14 }
 0x320   : > { %v1473_v37 = vadd.f32 %v1472_v5, %v5335_v43  ;;  %v1510_v59 = vadd.f32 %v1509_v49, %v5336_v39  ;;  %v1547_v58 = vadd.f32 %v1546_v46, %v5337_v20  ;;  %v1584_v27 = vadd.f32 %v1583_v9, %v5338_v30  ;;  %v5339_v49 = vld [vmem:[#allocation73_spill] sm:$0xff]  ;;  %v5340_v20 = vld [vmem:[#allocation74_spill] sm:$0xff] }
 0x321   : > { %v4115_v5 = vmul.f32 %v3826_v7, %v3826_v7  ;;  %v5341_v30 = vld [vmem:[#allocation134_spill] sm:$0xff]  ;;  %v4131_v7 = vmul.f32 %v3828_v28, %v3828_v28  ;;  %v4147_v28 = vmul.f32 %v3606_v31, %v3606_v31  ;;  %v4163_v31 = vmul.f32 %v3608_v33, %v3608_v33  ;;  %v5350_v33 = vld [vmem:[#allocation141_spill] sm:$0xff] }
 0x322   : > { %v1474_v46 = vadd.f32 %v1473_v37, %v5339_v49  ;;  %v1511_v9 = vadd.f32 %v1510_v59, %v5340_v20  ;;  %v1548_v39 = vadd.f32 %v1547_v58, %v5341_v30  ;;  %v1585_v43 = vadd.f32 %v1584_v27, %v5342_v44  ;;  %v5343_v59 = vld [vmem:[#allocation75_spill] sm:$0xff]  ;;  %v5344_v30 = vld [vmem:[#allocation76_spill] sm:$0xff] }
 0x323   : > { %v4135_v37 = vmul.f32 %v3834_v19, %v3834_v19  ;;  %v5345_v44 = vld [vmem:[#allocation136_spill] sm:$0xff]  ;;  %v4151_v19 = vmul.f32 %v3836_v54, %v3836_v54  ;;  %v4167_v54 = vmul.f32 %v3614_v48, %v3614_v48  ;;  %v4183_v48 = vmul.f32 %v3616_v51, %v3616_v51  ;;  %v5356_v51 = vld [vmem:[#allocation143_spill] sm:$0xff] }
 0x324   : > { %v1475_v58 = vadd.f32 %v1474_v46, %v5343_v59  ;;  %v1512_v27 = vadd.f32 %v1511_v9, %v5344_v30  ;;  %v1549_v20 = vadd.f32 %v1548_v39, %v5345_v44  ;;  %v1586_v6 = vadd.f32 %v1585_v43, %v3962_v13  ;;  %v5346_v9 = vld [vmem:[#allocation77_spill] sm:$0xff]  ;;  %v5347_v44 = vld [vmem:[#allocation78_spill] sm:$0xff]  ;;  %v5357_v59 = vld [vmem:[#allocation32_spill] sm:$0xff] }
 0x325   : > { %v4155_v46 = vmul.f32 %v3838_v23, %v3838_v23  ;;  %v4171_v23 = vmul.f32 %v3840_v10, %v3840_v10  ;;  %v5352_v30 = vld [vmem:[#allocation93_spill] sm:$0xff]  ;;  %v5358_v49 = vld [vmem:[#allocation95_spill] sm:$0xff]  ;;  %v1856_v57 = vadd.f32 %v4115_v5, %v4095_v0 }
 0x326   : > { %v1476_v39 = vadd.f32 %v1475_v58, %v5346_v9  ;;  %v1513_v43 = vadd.f32 %v1512_v27, %v5347_v44  ;;  %v1550_v13 = vadd.f32 %v1549_v20, %v3964_v11  ;;  %v1587_v14 = vadd.f32 %v1586_v6, %v3966_v47  ;;  %v5348_v27 = vld [vmem:[#allocation79_spill] sm:$0xff]  ;;  %v5349_v11 = vld [vmem:[#allocation80_spill] sm:$0xff]  ;;  %v5351_v9 = vld [vmem:[#allocation30_spill] sm:$0xff] }
 0x327   : > { %v4175_v58 = vmul.f32 %v3846_v26, %v3846_v26  ;;  %v4187_v10 = vmul.f32 %v5351_v9, %v5351_v9  ;;  %v4191_v26 = vmul.f32 %v5352_v30, %v5352_v30  ;;  %v4203_v9 = vmul.f32 %v3628_v21, %v3628_v21 }
 0x328   : > { %v1477_v20 = vadd.f32 %v1476_v39, %v5348_v27  ;;  %v1514_v6 = vadd.f32 %v1513_v43, %v5349_v11  ;;  %v1551_v47 = vadd.f32 %v1550_v13, %v3968_v8  ;;  %v1588_v44 = vadd.f32 %v1587_v14, %v5350_v33  ;;  %v5353_v43 = vld [vmem:[#allocation81_spill] sm:$0xff]  ;;  %v5354_v8 = vld [vmem:[#allocation82_spill] sm:$0xff] }
 0x329   : > { %v4195_v39 = vmul.f32 %v3850_v40, %v3850_v40  ;;  %v5355_v33 = vld [vmem:[#allocation142_spill] sm:$0xff]  ;;  %v4207_v30 = vmul.f32 %v5357_v59, %v5357_v59  ;;  %v4211_v40 = vmul.f32 %v5358_v49, %v5358_v49  ;;  %v4219_v21 = vmul.f32 %v3636_v38, %v3636_v38 }
 0x32a   : > { %v1478_v13 = vadd.f32 %v1477_v20, %v5353_v43  ;;  %v1515_v14 = vadd.f32 %v1514_v6, %v5354_v8  ;;  %v1552_v11 = vadd.f32 %v1551_v47, %v5355_v33  ;;  %v1589_v27 = vadd.f32 %v1588_v44, %v5356_v51  ;;  %v5359_v51 = vld [vmem:[#allocation34_spill] sm:$0xff]  ;;  %v5360_v8 = vld [vmem:[#allocation97_spill] sm:$0xff] }
 0x32b   : > { %v4215_v20 = vmul.f32 %v3858_v1, %v3858_v1  ;;  %v4223_v59 = vmul.f32 %v5359_v51, %v5359_v51  ;;  %v4227_v49 = vmul.f32 %v5360_v8, %v5360_v8  ;;  %v4231_v1 = vmul.f32 %v3862_v55, %v3862_v55  ;;  %v5361_v51 = vld [vmem:[#allocation36_spill] sm:$0xff] }
 0x32c   : > { %v1479_v6 = vrot.slane %v1478_v13, 4  ;;  %v1516_v47 = vrot.slane %v1515_v14, 4  ;;  %v1553_v33 = vrot.slane %v1552_v11, 4  ;;  %v1590_v44 = vrot.slane %v1589_v27, 4 }
 0x32d   : > { %v4235_v38 = vmul.f32 %v5277_v17, %v5277_v17  ;;  %v4239_v45 = vmul.f32 %v5361_v51, %v5361_v51  ;;  %v1611_v55 = vlaneseq }
 0x32e   : > { %v1480_v43 = vadd.f32 %v1479_v6, %v1478_v13  ;;  %v1517_v16 = vadd.f32 %v1516_v47, %v1515_v14  ;;  %v1554_v29 = vadd.f32 %v1553_v33, %v1552_v11  ;;  %v1591_v62 = vadd.f32 %v1590_v44, %v1589_v27 }
 0x32f   : > { %v1745_v13 = vadd.f32 %v4103_v42, %v4083_v63  ;;  %v1782_v33 = vadd.f32 %v4107_v25, %v4087_v52  ;;  %v1819_v11 = vadd.f32 %v4111_v61, %v4091_v15  ;;  %vm4266_vm4 = vcmp.lt.s32.totalorder %v1611_v55, 512 }
 0x330   : > { %v1481_v8 = vrot.slane %v1480_v43, 2  ;;  %v1518_v53 = vrot.slane %v1517_v16, 2  ;;  %v1555_v22 = vrot.slane %v1554_v29, 2  ;;  %v1592_v32 = vrot.slane %v1591_v62, 2 }
 0x331   : > { %v1746_v47 = vadd.f32 %v1745_v13, %v4123_v2  ;;  %v1783_v44 = vadd.f32 %v1782_v33, %v4127_v34  ;;  %v1820_v51 = vadd.f32 %v1819_v11, %v4131_v7  ;;  %v1653_v13 = vmul.f32 %v5279_v36, %v5279_v36 }
 0x332   : > { %v1482_v17 = vadd.f32 %v1481_v8, %v1480_v43  ;;  %v1519_v27 = vadd.f32 %v1518_v53, %v1517_v16  ;;  %v1556_v14 = vadd.f32 %v1555_v22, %v1554_v29  ;;  %v1593_v6 = vadd.f32 %v1592_v32, %v1591_v62 }
 0x333   : > { %v1747_v52 = vadd.f32 %v1746_v47, %v4143_v12  ;;  %v1784_v61 = vadd.f32 %v1783_v44, %v4147_v28  ;;  %v1821_v16 = vadd.f32 %v1820_v51, %v4151_v19  ;;  %v1857_v32 = vadd.f32 %v1856_v57, %v4135_v37  ;;  %v1447_v28 = vld [vmem:[#allocation2] sm:$0xf] }
 0x334   : > { %v1483_v42 = vrot.slane %v1482_v17, 1  ;;  %v1520_v63 = vrot.slane %v1519_v27, 1  ;;  %v1557_v41 = vrot.slane %v1556_v14, 1  ;;  %v1594_v25 = vrot.slane %v1593_v6, 1 }
 0x335   : > { %v1748_v7 = vadd.f32 %v1747_v52, %v4163_v31  ;;  %v1785_v53 = vadd.f32 %v1784_v61, %v4167_v54  ;;  %v1822_v22 = vadd.f32 %v1821_v16, %v4171_v23  ;;  %v1858_v15 = vadd.f32 %v1857_v32, %v4155_v46  ;;  %v5364_v46 = vld [vmem:[#allocation99_spill] sm:$0xff]  ;;  %v5370_v16 = vld [vmem:[#allocation44_spill] sm:$0xff] }
 0x336   : > { %v1484_v2 = vadd.f32 %v1483_v42, %v1482_v17  ;;  %v1521_v62 = vadd.f32 %v1520_v63, %v1519_v27  ;;  %v1558_v34 = vadd.f32 %v1557_v41, %v1556_v14  ;;  %v1595_v29 = vadd.f32 %v1594_v25, %v1593_v6  ;;  %v5368_v25 = vld [vmem:[#allocation101_spill] sm:$0xff]  ;;  %v5369_v52 = vld [vmem:[#allocation43_spill] sm:$0xff] }
 0x337   : > { %v1749_v19 = vadd.f32 %v1748_v7, %v4183_v48  ;;  %v1786_v57 = vadd.f32 %v1785_v53, %v4187_v10  ;;  %v1823_v41 = vadd.f32 %v1822_v22, %v4191_v26  ;;  %v1859_v37 = vadd.f32 %v1858_v15, %v4175_v58  ;;  %v5372_v7 = vld [vmem:[#allocation103_spill] sm:$0xff]  ;;  %v5373_v22 = vld [vmem:[#allocation45_spill] sm:$0xff] }
 0x338   : > { %v1600_v0 = vrot.slane %v1521_v62, 7  ;;  %v1601_v12 = vrot.slane %v1558_v34, 6  ;;  %v1602_v5 = vrot.slane %v1595_v29, 5  ;;  %v1651_v43 = vmul.f32 %v5364_v46, %v5364_v46  ;;  %v5377_v46 = vld [vmem:[#allocation47_spill] sm:$0xff] }
 0x339   : > { %v1750_v48 = vadd.f32 %v1749_v19, %v4203_v9  ;;  %v1787_v10 = vadd.f32 %v1786_v57, %v4207_v30  ;;  %v1824_v26 = vadd.f32 %v1823_v41, %v4211_v40  ;;  %v1654_v55 = vmul.f32 %v5280_v4, %v5280_v4  ;;  %v5365_v40 = vld [vmem:[#allocation100_spill] sm:$0xff] }
 0x33a   : > { %v1604_v31 = vsel %vm1603_vm1, %v1484_v2, %v1600_v0  ;;  %v1606_v54 = vsel %vm1605_vm2, %v1601_v12, %v1602_v5  ;;  %v1860_v33 = vadd.f32 %v1859_v37, %v4195_v39  ;;  %v1655_v11 = vmul.f32 %v3872_v24, %v3872_v24  ;;  %v5371_v2 = vld [vmem:[#allocation104_spill] sm:$0xff]  ;;  %v5374_v0 = vld [vmem:[#allocation46_spill] sm:$0xff] }
 0x33b   : > { %v1608_v8 = vsel %vm1607_vm3, %v1604_v31, %v1606_v54  ;;  %v1751_v17 = vadd.f32 %v1750_v48, %v4219_v21  ;;  %v1788_v9 = vadd.f32 %v1787_v10, %v4223_v59  ;;  %v1825_v30 = vadd.f32 %v1824_v26, %v4227_v49  ;;  %v5376_v31 = vld [vmem:[#allocation105_spill] sm:$0xff]  ;;  %v5379_v26 = vld [vmem:[#allocation108_spill] sm:$0xff] }
 0x33c   : > { %v1610_v58 = vadd.f32 %v1608_v8, %v1447_v28  ;;  %v1652_v36 = vmul.f32 %v5365_v40, %v5365_v40  ;;  %v1657_v4 = vmul.f32 %v5281_v56, %v5281_v56  ;;  %v1658_v39 = vmul.f32 %v5282_v18, %v5282_v18  ;;  %v5366_v56 = vld [vmem:[#allocation42_spill] sm:$0xff]  ;;  %v5378_v8 = vld [vmem:[#allocation48_spill] sm:$0xff] }
 0x33d   : > { %v1861_v27 = vadd.f32 %v1860_v33, %v4215_v20  ;;  %v1659_v21 = vmul.f32 %v3876_v3, %v3876_v3  ;;  %v1752_v59 = vadd.f32 %v1751_v17, %v4235_v38  ;;  %v1789_v49 = vadd.f32 %v1788_v9, %v4239_v45  ;;  %v5367_v20 = vld [vmem:[#allocation102_spill] sm:$0xff]  ;;  %v5381_v9 = vld [vmem:[#allocation49_spill] sm:$0xff] }
 0x33e   : > { %1615 = vst.msk [vmem:[#allocation2] sm:$0xf] %vm4266_vm4, %v1610_v58  ;;  %v1826_v14 = vadd.f32 %v1825_v30, %v1651_v43  ;;  %v1656_v6 = vmul.f32 %v3874_v35, %v3874_v35  ;;  %v1661_v47 = vmul.f32 %v5283_v60, %v5283_v60  ;;  %v1662_v44 = vmul.f32 %v5366_v56, %v5366_v56  ;;  %v5375_v28 = vld [vmem:[#allocation106_spill] sm:$0xff] }
 0x33f   : > { %v1862_v18 = vadd.f32 %v1861_v27, %v4231_v1  ;;  %v1663_v51 = vmul.f32 %v5367_v20, %v5367_v20  ;;  %v1753_v42 = vadd.f32 %v1752_v59, %v1653_v13  ;;  %v1790_v63 = vadd.f32 %v1789_v49, %v1654_v55  ;;  %v5382_v40 = vld [vmem:[#allocation50_spill] sm:$0xff] }
 0x340   : > { %v1827_v38 = vadd.f32 %v1826_v14, %v1655_v11  ;;  %v1660_v45 = vmul.f32 %v5368_v25, %v5368_v25  ;;  %v1665_v61 = vmul.f32 %v5369_v52, %v5369_v52  ;;  %v1666_v60 = vmul.f32 %v5370_v16, %v5370_v16  ;;  %v5380_v11 = vld [vmem:[#allocation107_spill] sm:$0xff]  ;;  %v5384_v14 = vld [vmem:[#allocation109_spill] sm:$0xff] }
 0x341   : > { %v1863_v32 = vadd.f32 %v1862_v18, %v1652_v36  ;;  %v1667_v62 = vmul.f32 %v5371_v2, %v5371_v2  ;;  %v1754_v1 = vadd.f32 %v1753_v42, %v1657_v4  ;;  %v1791_v34 = vadd.f32 %v1790_v63, %v1658_v39  ;;  %v5383_v39 = vld [vmem:[#allocation110_spill] sm:$0xff] }
 0x342   : > { %v1828_v29 = vadd.f32 %v1827_v38, %v1659_v21  ;;  %v1664_v53 = vmul.f32 %v5372_v7, %v5372_v7  ;;  %v1669_v15 = vmul.f32 %v5373_v22, %v5373_v22  ;;  %v1670_v12 = vmul.f32 %v5374_v0, %v5374_v0 }
 0x343   : > { %v1864_v5 = vadd.f32 %v1863_v32, %v1656_v6  ;;  %v1671_v19 = vmul.f32 %v5375_v28, %v5375_v28  ;;  %v1755_v57 = vadd.f32 %v1754_v1, %v1661_v47  ;;  %v1792_v41 = vadd.f32 %v1791_v34, %v1662_v44  ;;  %v5385_v47 = vld [vmem:[#allocation51_spill] sm:$0xff]  ;;  %v5386_v44 = vld [vmem:[#allocation52_spill] sm:$0xff] }
 0x344   : > { %v1829_v37 = vadd.f32 %v1828_v29, %v1663_v51  ;;  %v1668_v54 = vmul.f32 %v5376_v31, %v5376_v31  ;;  %v1673_v43 = vmul.f32 %v5377_v46, %v5377_v46  ;;  %v1674_v48 = vmul.f32 %v5378_v8, %v5378_v8  ;;  %v5387_v51 = vld [vmem:[#allocation112_spill] sm:$0xff] }
 0x345   : > { %v1865_v10 = vadd.f32 %v1864_v5, %v1660_v45  ;;  %v1675_v58 = vmul.f32 %v5379_v26, %v5379_v26  ;;  %v1756_v13 = vadd.f32 %v1755_v57, %v1665_v61  ;;  %v1793_v55 = vadd.f32 %v1792_v41, %v1666_v60  ;;  %v5388_v45 = vld [vmem:[#allocation111_spill] sm:$0xff]  ;;  %v5389_v61 = vld [vmem:[#allocation53_spill] sm:$0xff]  ;;  %v5390_v60 = vld [vmem:[#allocation54_spill] sm:$0xff] }
 0x346   : > { %v1830_v33 = vadd.f32 %v1829_v37, %v1667_v62  ;;  %v1672_v17 = vmul.f32 %v5380_v11, %v5380_v11  ;;  %v1677_v30 = vmul.f32 %v5381_v9, %v5381_v9  ;;  %v1678_v36 = vmul.f32 %v5382_v40, %v5382_v40  ;;  %v5391_v62 = vld [vmem:[#allocation114_spill] sm:$0xff] }
 0x347   : > { %v1866_v4 = vadd.f32 %v1865_v10, %v1664_v53  ;;  %v1679_v27 = vmul.f32 %v5383_v39, %v5383_v39  ;;  %v1757_v21 = vadd.f32 %v1756_v13, %v1669_v15  ;;  %v1794_v59 = vadd.f32 %v1793_v55, %v1670_v12  ;;  %v5392_v53 = vld [vmem:[#allocation113_spill] sm:$0xff]  ;;  %v5393_v15 = vld [vmem:[#allocation55_spill] sm:$0xff]  ;;  %v5394_v12 = vld [vmem:[#allocation56_spill] sm:$0xff] }
 0x348   : > { %v1831_v49 = vadd.f32 %v1830_v33, %v1671_v19  ;;  %v1676_v6 = vmul.f32 %v5384_v14, %v5384_v14  ;;  %v1681_v56 = vmul.f32 %v5385_v47, %v5385_v47  ;;  %v1682_v18 = vmul.f32 %v5386_v44, %v5386_v44  ;;  %v5395_v19 = vld [vmem:[#allocation116_spill] sm:$0xff] }
 0x349   : > { %v1867_v20 = vadd.f32 %v1866_v4, %v1668_v54  ;;  %v1683_v42 = vmul.f32 %v5387_v51, %v5387_v51  ;;  %v1758_v63 = vadd.f32 %v1757_v21, %v1673_v43  ;;  %v1795_v38 = vadd.f32 %v1794_v59, %v1674_v48  ;;  %v5396_v54 = vld [vmem:[#allocation115_spill] sm:$0xff]  ;;  %v5397_v43 = vld [vmem:[#allocation57_spill] sm:$0xff]  ;;  %v5398_v48 = vld [vmem:[#allocation58_spill] sm:$0xff] }
 0x34a   : > { %v1832_v25 = vadd.f32 %v1831_v49, %v1675_v58  ;;  %v1680_v52 = vmul.f32 %v5388_v45, %v5388_v45  ;;  %v1685_v16 = vmul.f32 %v5389_v61, %v5389_v61  ;;  %v1686_v32 = vmul.f32 %v5390_v60, %v5390_v60  ;;  %v5399_v58 = vld [vmem:[#allocation118_spill] sm:$0xff] }
 0x34b   : > { %v1868_v2 = vadd.f32 %v1867_v20, %v1672_v17  ;;  %v1687_v1 = vmul.f32 %v5391_v62, %v5391_v62  ;;  %v1759_v34 = vadd.f32 %v1758_v63, %v1677_v30  ;;  %v1796_v29 = vadd.f32 %v1795_v38, %v1678_v36  ;;  %v5400_v17 = vld [vmem:[#allocation117_spill] sm:$0xff]  ;;  %v5401_v30 = vld [vmem:[#allocation59_spill] sm:$0xff]  ;;  %v5402_v36 = vld [vmem:[#allocation60_spill] sm:$0xff] }
 0x34c   : > { %v1833_v7 = vadd.f32 %v1832_v25, %v1679_v27  ;;  %v1684_v22 = vmul.f32 %v5392_v53, %v5392_v53  ;;  %v1689_v0 = vmul.f32 %v5393_v15, %v5393_v15  ;;  %v1690_v5 = vmul.f32 %v5394_v12, %v5394_v12  ;;  %v5403_v27 = vld [vmem:[#allocation120_spill] sm:$0xff] }
 0x34d   : > { %v1869_v28 = vadd.f32 %v1868_v2, %v1676_v6  ;;  %v1691_v57 = vmul.f32 %v5395_v19, %v5395_v19  ;;  %v1760_v41 = vadd.f32 %v1759_v34, %v1681_v56  ;;  %v1797_v37 = vadd.f32 %v1796_v29, %v1682_v18  ;;  %v5404_v6 = vld [vmem:[#allocation119_spill] sm:$0xff]  ;;  %v5405_v56 = vld [vmem:[#allocation61_spill] sm:$0xff]  ;;  %v5406_v18 = vld [vmem:[#allocation62_spill] sm:$0xff] }
 0x34e   : > { %v1834_v31 = vadd.f32 %v1833_v7, %v1683_v42  ;;  %v1688_v46 = vmul.f32 %v5396_v54, %v5396_v54  ;;  %v1693_v8 = vmul.f32 %v5397_v43, %v5397_v43  ;;  %v1694_v10 = vmul.f32 %v5398_v48, %v5398_v48  ;;  %v5407_v42 = vld [vmem:[#allocation122_spill] sm:$0xff]  ;;  %v5415_v54 = vld [vmem:[#allocation125_spill] sm:$0xff]  ;;  %v5416_v43 = vld [vmem:[#allocation67_spill] sm:$0xff] }
 0x34f   : > { %v1870_v26 = vadd.f32 %v1869_v28, %v1680_v52  ;;  %v1695_v13 = vmul.f32 %v5399_v58, %v5399_v58  ;;  %v1761_v55 = vadd.f32 %v1760_v41, %v1685_v16  ;;  %v1798_v33 = vadd.f32 %v1797_v37, %v1686_v32  ;;  %v5408_v52 = vld [vmem:[#allocation121_spill] sm:$0xff]  ;;  %v5409_v16 = vld [vmem:[#allocation63_spill] sm:$0xff]  ;;  %v5410_v32 = vld [vmem:[#allocation64_spill] sm:$0xff] }
 0x350   : > { %v1835_v11 = vadd.f32 %v1834_v31, %v1687_v1  ;;  %v1692_v9 = vmul.f32 %v5400_v17, %v5400_v17  ;;  %v1697_v40 = vmul.f32 %v5401_v30, %v5401_v30  ;;  %v1698_v4 = vmul.f32 %v5402_v36, %v5402_v36  ;;  %v5411_v1 = vld [vmem:[#allocation124_spill] sm:$0xff]  ;;  %v5414_v19 = vld [vmem:[#allocation126_spill] sm:$0xff] }
 0x351   : > { %v1871_v39 = vadd.f32 %v1870_v26, %v1684_v22  ;;  %v1699_v21 = vmul.f32 %v5403_v27, %v5403_v27  ;;  %v1762_v59 = vadd.f32 %v1761_v55, %v1689_v0  ;;  %v1799_v49 = vadd.f32 %v1798_v33, %v1690_v5  ;;  %v5412_v22 = vld [vmem:[#allocation123_spill] sm:$0xff]  ;;  %v5413_v0 = vld [vmem:[#allocation65_spill] sm:$0xff]  ;;  %v5417_v48 = vld [vmem:[#allocation68_spill] sm:$0xff] }
 0x352   : > { %v1836_v14 = vadd.f32 %v1835_v11, %v1691_v57  ;;  %v1696_v47 = vmul.f32 %v5404_v6, %v5404_v6  ;;  %v1701_v44 = vmul.f32 %v5405_v56, %v5405_v56  ;;  %v1702_v20 = vmul.f32 %v5406_v18, %v5406_v18  ;;  %v5418_v58 = vld [vmem:[#allocation128_spill] sm:$0xff]  ;;  %v5419_v11 = vld [vmem:[#allocation127_spill] sm:$0xff] }
 0x353   : > { %v1872_v51 = vadd.f32 %v1871_v39, %v1688_v46  ;;  %v1703_v63 = vmul.f32 %v5407_v42, %v5407_v42  ;;  %v1763_v38 = vadd.f32 %v1762_v59, %v1693_v8  ;;  %v1800_v25 = vadd.f32 %v1799_v49, %v1694_v10  ;;  %v5422_v39 = vld [vmem:[#allocation130_spill] sm:$0xff] }
 0x354   : > { %v1837_v45 = vadd.f32 %v1836_v14, %v1695_v13  ;;  %v1700_v61 = vmul.f32 %v5408_v52, %v5408_v52  ;;  %v1705_v60 = vmul.f32 %v5409_v16, %v5409_v16  ;;  %v1706_v2 = vmul.f32 %v5410_v32, %v5410_v32  ;;  %v5423_v14 = vld [vmem:[#allocation129_spill] sm:$0xff] }
 0x355   : > { %v1873_v62 = vadd.f32 %v1872_v51, %v1692_v9  ;;  %v1707_v34 = vmul.f32 %v5411_v1, %v5411_v1  ;;  %v1764_v29 = vadd.f32 %v1763_v38, %v1697_v40  ;;  %v1801_v7 = vadd.f32 %v1800_v25, %v1698_v4  ;;  %v5420_v9 = vld [vmem:[#allocation69_spill] sm:$0xff]  ;;  %v5421_v40 = vld [vmem:[#allocation70_spill] sm:$0xff]  ;;  %v5426_v51 = vld [vmem:[#allocation132_spill] sm:$0xff] }
 0x356   : > { %v1838_v53 = vadd.f32 %v1837_v45, %v1699_v21  ;;  %v1704_v15 = vmul.f32 %v5412_v22, %v5412_v22  ;;  %v1709_v12 = vmul.f32 %v5413_v0, %v5413_v0  ;;  %v1710_v5 = vmul.f32 %v5324_v50, %v5324_v50  ;;  %v5427_v45 = vld [vmem:[#allocation131_spill] sm:$0xff] }
 0x357   : > { %v1874_v28 = vadd.f32 %v1873_v62, %v1696_v47  ;;  %v1711_v57 = vmul.f32 %v5414_v19, %v5414_v19  ;;  %v1765_v41 = vadd.f32 %v1764_v29, %v1701_v44  ;;  %v1802_v37 = vadd.f32 %v1801_v7, %v1702_v20  ;;  %v5424_v47 = vld [vmem:[#allocation71_spill] sm:$0xff]  ;;  %v5425_v44 = vld [vmem:[#allocation72_spill] sm:$0xff]  ;;  %v5430_v62 = vld [vmem:[#allocation134_spill] sm:$0xff] }
 0x358   : > { %v1839_v31 = vadd.f32 %v1838_v53, %v1703_v63  ;;  %v1708_v46 = vmul.f32 %v5415_v54, %v5415_v54  ;;  %v1713_v8 = vmul.f32 %v5416_v43, %v5416_v43  ;;  %v1714_v10 = vmul.f32 %v5417_v48, %v5417_v48  ;;  %v5431_v53 = vld [vmem:[#allocation133_spill] sm:$0xff]  ;;  %v5434_v19 = vld [vmem:[#allocation136_spill] sm:$0xff]  ;;  %v5435_v54 = vld [vmem:[#allocation135_spill] sm:$0xff] }
 0x359   : > { %v1875_v26 = vadd.f32 %v1874_v28, %v1700_v61  ;;  %v1715_v50 = vmul.f32 %v5418_v58, %v5418_v58  ;;  %v1766_v13 = vadd.f32 %v1765_v41, %v1705_v60  ;;  %v1803_v55 = vadd.f32 %v1802_v37, %v1706_v2  ;;  %v5428_v61 = vld [vmem:[#allocation73_spill] sm:$0xff]  ;;  %v5429_v60 = vld [vmem:[#allocation74_spill] sm:$0xff] }
 0x35a   : > { %v1840_v33 = vadd.f32 %v1839_v31, %v1707_v34  ;;  %v1712_v17 = vmul.f32 %v5419_v11, %v5419_v11  ;;  %v1717_v30 = vmul.f32 %v5420_v9, %v5420_v9  ;;  %v1718_v36 = vmul.f32 %v5421_v40, %v5421_v40  ;;  %v5436_v43 = vld [vmem:[#allocation77_spill] sm:$0xff]  ;;  %v5437_v48 = vld [vmem:[#allocation78_spill] sm:$0xff]  ;;  %v5440_v9 = vld [vmem:[#allocation79_spill] sm:$0xff] }
 0x35b   : > { %v1876_v4 = vadd.f32 %v1875_v26, %v1704_v15  ;;  %v1719_v27 = vmul.f32 %v5422_v39, %v5422_v39  ;;  %v1767_v21 = vadd.f32 %v1766_v13, %v1709_v12  ;;  %v1804_v59 = vadd.f32 %v1803_v55, %v1710_v5  ;;  %v5432_v15 = vld [vmem:[#allocation75_spill] sm:$0xff]  ;;  %v5433_v12 = vld [vmem:[#allocation76_spill] sm:$0xff]  ;;  %v5438_v58 = vld [vmem:[#allocation138_spill] sm:$0xff] }
 0x35c   : > { %v1841_v49 = vadd.f32 %v1840_v33, %v1711_v57  ;;  %v1716_v6 = vmul.f32 %v5423_v14, %v5423_v14  ;;  %v1721_v56 = vmul.f32 %v5424_v47, %v5424_v47  ;;  %v1722_v18 = vmul.f32 %v5425_v44, %v5425_v44  ;;  %v5439_v11 = vld [vmem:[#allocation137_spill] sm:$0xff]  ;;  %v5441_v40 = vld [vmem:[#allocation80_spill] sm:$0xff]  ;;  %v5443_v14 = vld [vmem:[#allocation139_spill] sm:$0xff] }
 0x35d   : > { %v1877_v20 = vadd.f32 %v1876_v4, %v1708_v46  ;;  %v1723_v42 = vmul.f32 %v5426_v51, %v5426_v51  ;;  %v1768_v63 = vadd.f32 %v1767_v21, %v1713_v8  ;;  %v1805_v38 = vadd.f32 %v1804_v59, %v1714_v10  ;;  %v5442_v39 = vld [vmem:[#allocation140_spill] sm:$0xff]  ;;  %v5444_v47 = vld [vmem:[#allocation81_spill] sm:$0xff]  ;;  %v5445_v44 = vld [vmem:[#allocation82_spill] sm:$0xff] }
 0x35e   : > { %v1842_v25 = vadd.f32 %v1841_v49, %v1715_v50  ;;  %v1720_v52 = vmul.f32 %v5427_v45, %v5427_v45  ;;  %v1725_v16 = vmul.f32 %v5428_v61, %v5428_v61  ;;  %v1726_v32 = vmul.f32 %v5429_v60, %v5429_v60  ;;  %v5446_v51 = vld [vmem:[#allocation142_spill] sm:$0xff]  ;;  %v5447_v45 = vld [vmem:[#allocation141_spill] sm:$0xff] }
 0x35f   : > { %v1878_v2 = vadd.f32 %v1877_v20, %v1712_v17  ;;  %v1727_v1 = vmul.f32 %v5430_v62, %v5430_v62  ;;  %v1769_v34 = vadd.f32 %v1768_v63, %v1717_v30  ;;  %v1806_v29 = vadd.f32 %v1805_v38, %v1718_v36 }
 0x360   : > { %v1843_v7 = vadd.f32 %v1842_v25, %v1719_v27  ;;  %v1724_v22 = vmul.f32 %v5431_v53, %v5431_v53  ;;  %v1729_v0 = vmul.f32 %v5432_v15, %v5432_v15  ;;  %v1730_v5 = vmul.f32 %v5433_v12, %v5433_v12 }
 0x361   : > { %v1879_v28 = vadd.f32 %v1878_v2, %v1716_v6  ;;  %v1731_v57 = vmul.f32 %v5434_v19, %v5434_v19  ;;  %v1770_v41 = vadd.f32 %v1769_v34, %v1721_v56  ;;  %v1807_v37 = vadd.f32 %v1806_v29, %v1722_v18  ;;  %v5448_v2 = vld [vmem:[#allocation143_spill] sm:$0xff] }
 0x362   : > { %v1844_v31 = vadd.f32 %v1843_v7, %v1723_v42  ;;  %v1728_v46 = vmul.f32 %v5435_v54, %v5435_v54  ;;  %v1733_v8 = vmul.f32 %v5436_v43, %v5436_v43  ;;  %v1734_v10 = vmul.f32 %v5437_v48, %v5437_v48 }
 0x363   : > { %v1880_v26 = vadd.f32 %v1879_v28, %v1720_v52  ;;  %v1735_v50 = vmul.f32 %v5438_v58, %v5438_v58  ;;  %v1771_v13 = vadd.f32 %v1770_v41, %v1725_v16  ;;  %v1808_v55 = vadd.f32 %v1807_v37, %v1726_v32 }
 0x364   : > { %v1845_v33 = vadd.f32 %v1844_v31, %v1727_v1  ;;  %v1732_v17 = vmul.f32 %v5439_v11, %v5439_v11  ;;  %v1737_v30 = vmul.f32 %v5440_v9, %v5440_v9  ;;  %v1738_v36 = vmul.f32 %v5441_v40, %v5441_v40 }
 0x365   : > { %v1881_v4 = vadd.f32 %v1880_v26, %v1724_v22  ;;  %v1739_v27 = vmul.f32 %v5442_v39, %v5442_v39  ;;  %v1772_v21 = vadd.f32 %v1771_v13, %v1729_v0  ;;  %v1809_v59 = vadd.f32 %v1808_v55, %v1730_v5 }
 0x366   : > { %v1846_v49 = vadd.f32 %v1845_v33, %v1731_v57  ;;  %v1736_v6 = vmul.f32 %v5443_v14, %v5443_v14  ;;  %v1741_v56 = vmul.f32 %v5444_v47, %v5444_v47  ;;  %v1742_v18 = vmul.f32 %v5445_v44, %v5445_v44 }
 0x367   : > { %v1882_v20 = vadd.f32 %v1881_v4, %v1728_v46  ;;  %v1743_v42 = vmul.f32 %v5446_v51, %v5446_v51  ;;  %v1773_v63 = vadd.f32 %v1772_v21, %v1733_v8  ;;  %v1810_v38 = vadd.f32 %v1809_v59, %v1734_v10  ;;  %v1616_v4 = vld [vmem:[#allocation3] sm:$0xf] }
 0x368   : > { %v1847_v25 = vadd.f32 %v1846_v49, %v1735_v50  ;;  %v1740_v52 = vmul.f32 %v5447_v45, %v5447_v45  ;;  %v1744_v62 = vmul.f32 %v5448_v2, %v5448_v2 }
 0x369   : > { %v1883_v61 = vadd.f32 %v1882_v20, %v1732_v17  ;;  %v1774_v16 = vadd.f32 %v1773_v63, %v1737_v30  ;;  %v1811_v60 = vadd.f32 %v1810_v38, %v1738_v36 }
 0x36a   : > { %v1848_v32 = vadd.f32 %v1847_v25, %v1739_v27 }
 0x36b   : > { %v1884_v1 = vadd.f32 %v1883_v61, %v1736_v6  ;;  %v1775_v34 = vadd.f32 %v1774_v16, %v1741_v56  ;;  %v1812_v29 = vadd.f32 %v1811_v60, %v1742_v18 }
 0x36c   : > { %v1849_v7 = vadd.f32 %v1848_v32, %v1743_v42 }
 0x36d   : > { %v1885_v53 = vadd.f32 %v1884_v1, %v1740_v52  ;;  %v1776_v22 = vrot.slane %v1775_v34, 4  ;;  %v1813_v15 = vrot.slane %v1812_v29, 4 }
 0x36e   : > { %v1850_v0 = vrot.slane %v1849_v7, 4 }
 0x36f   : > { %v1886_v12 = vadd.f32 %v1885_v53, %v1744_v62  ;;  %v1777_v5 = vadd.f32 %v1776_v22, %v1775_v34  ;;  %v1814_v28 = vadd.f32 %v1813_v15, %v1812_v29 }
 0x370   : > { %v1851_v19 = vadd.f32 %v1850_v0, %v1849_v7 }
 0x371   : > { %v1887_v57 = vrot.slane %v1886_v12, 4  ;;  %v1778_v41 = vrot.slane %v1777_v5, 2  ;;  %v1815_v37 = vrot.slane %v1814_v28, 2 }
 0x372   : > { %v1852_v31 = vrot.slane %v1851_v19, 2 }
 0x373   : > { %v1888_v54 = vadd.f32 %v1887_v57, %v1886_v12  ;;  %v1779_v46 = vadd.f32 %v1778_v41, %v1777_v5  ;;  %v1816_v43 = vadd.f32 %v1815_v37, %v1814_v28 }
 0x374   : > { %v1853_v8 = vadd.f32 %v1852_v31, %v1851_v19 }
 0x375   : > { %v1889_v48 = vrot.slane %v1888_v54, 2  ;;  %v1780_v10 = vrot.slane %v1779_v46, 1  ;;  %v1817_v26 = vrot.slane %v1816_v43, 1 }
 0x376   : > { %v1854_v58 = vrot.slane %v1853_v8, 1 }
 0x377   : > { %v1890_v50 = vadd.f32 %v1889_v48, %v1888_v54  ;;  %v1818_v13 = vadd.f32 %v1817_v26, %v1816_v43  ;;  %v1781_v33 = vadd.f32 %v1780_v10, %v1779_v46 }
 0x378   : > { %v1855_v55 = vadd.f32 %v1854_v58, %v1853_v8 }
 0x379   : > { %v1891_v11 = vrot.slane %v1890_v50, 1  ;;  %v1897_v17 = vrot.slane %v1818_v13, 7 }
 0x37a   : > { %v1898_v30 = vrot.slane %v1855_v55, 6 }
 0x37b   : > { %v1892_v9 = vadd.f32 %v1891_v11, %v1890_v50  ;;  %v1900_v36 = vsel %vm1603_vm1, %v1781_v33, %v1897_v17 }
 0x37d   : > { %v1899_v40 = vrot.slane %v1892_v9, 5 }
 0x37f   : > { %v1901_v39 = vsel %vm1605_vm2, %v1898_v30, %v1899_v40 }
 0x380   : > { %v1902_v27 = vsel %vm1607_vm3, %v1900_v36, %v1901_v39 }
 0x381   : > { %v1904_v21 = vadd.f32 %v1902_v27, %v1616_v4 }
 0x383   : > { %1905 = vst.msk [vmem:[#allocation3] sm:$0xf] %vm4266_vm4, %v1904_v21 }
 0x384 PF: > { %p2856_p4 = scmp.ne.s32.totalorder %s3265_s19, 1 }
 0x386   : > { %1909 = sbr.rel (%p2856_p4) target bundleno = 1056 (0x420), region = 56 }
 0x38b   : > { %v1910_v59 = vld [vmem:[#allocation2] sm:$0xf]  ;;  %v1912_v49 = vld [vmem:[#allocation3] sm:$0xf]  ;;  %v5449_v1 = vld [vmem:[#allocation19_spill] sm:$0xff] }
 0x38c   : > { %v1911_v14 = vmul.f32 0.001953125, %v1910_v59  ;;  %v1913_v6 = vmul.f32 0.001953125, %v1912_v49  ;;  %v1916_v63 = vld [vmem:[#allocation9] ss:$2 sm:$0xf]  ;;  %v5450_v29 = vld [vmem:[#allocation20_spill] sm:$0xff] }
 0x38d   : > { %v1918_v52 = vld [vmem:[#allocation9 + $0x1] ss:$2 sm:$0xf]  ;;  %v5451_v53 = vld [vmem:[#allocation83_spill] sm:$0xff]  ;;  %v5452_v15 = vld [vmem:[#allocation84_spill] sm:$0xff] }
 0x38e   : > { %v1914_v47 = vmul.f32 %v1911_v14, %v1911_v14  ;;  %v5453_v12 = vld [vmem:[#allocation21_spill] sm:$0xff]  ;;  %v5454_v28 = vld [vmem:[#allocation22_spill] sm:$0xff]  ;;  %v5457_v48 = vld [vmem:[#allocation23_spill] sm:$0xff] }
 0x38f   : > { %v5455_v57 = vld [vmem:[#allocation85_spill] sm:$0xff]  ;;  %v5456_v43 = vld [vmem:[#allocation86_spill] sm:$0xff]  ;;  %v5458_v26 = vld [vmem:[#allocation24_spill] sm:$0xff] }
 0x390   : > { %v1915_v56 = vsub.f32 %v1913_v6, %v1914_v47  ;;  %v5459_v50 = vld [vmem:[#allocation87_spill] sm:$0xff] }
 0x392   : > { %v1919_v44 = vadd.f32 1e-05, %v1915_v56 }
 0x394   : > { %3059 = vrsqrt.f32 %v1919_v44  ;;  %vm1926_vm5 = vweird.f32 %v1919_v44 }
 0x39a   : > { %v3060_v18 = vpop.eup %3059 }
 0x39b   : > { %v1921_v20 = vmul.f32 %v3060_v18, %v1919_v44  ;;  %vm1927_vm6 = vweird.f32 %v3060_v18 }
 0x39c   : > { %vm1928_vm7 = vmor %vm1926_vm5, %vm1927_vm6 }
 0x39d   : > { %v1922_v51 = vmul.f32 %v3060_v18, %v1921_v20 }
 0x39f   : > { %v1923_v42 = vmul.f32 0.5, %v1922_v51 }
 0x3a1   : > { %v1924_v23 = vsub.f32 1.5, %v1923_v42  ;;  %v5460_v42 = vld [vmem:[#allocation88_spill] sm:$0xff] }
 0x3a3   : > { %v1925_v38 = vmul.f32 %v3060_v18, %v1924_v23 }
 0x3a5   : > { %v1929_v25 = vsel %vm1928_vm7, %v3060_v18, %v1925_v38 }
 0x3a6   : > { %v1930_v45 = vmul.f32 %v1929_v25, %v1916_v63 }
 0x3a8   : > { %v1931_v61 = vmul.f32 %v1930_v45, %v1911_v14  ;;  %v4478_v16 = vperm.slane %v1930_v45, 0  ;;  %v4480_v60 = vperm.slane %v1930_v45, 1  ;;  %v4482_v32 = vperm.slane %v1930_v45, 2 }
 0x3a9   : > { %v4484_v2 = vperm.slane %v1930_v45, 3  ;;  %v5461_v45 = vld [vmem:[#allocation25_spill] sm:$0xff] }
 0x3aa   : > { %v1932_v62 = vsub.f32 %v1918_v52, %v1931_v61  ;;  %v1942_v34 = vmul.f32 %v4478_v16, %v5449_v1  ;;  %v1943_v7 = vmul.f32 %v4480_v60, %v5450_v29  ;;  %v1944_v22 = vmul.f32 %v4482_v32, %v5451_v53  ;;  %v5462_v61 = vld [vmem:[#allocation26_spill] sm:$0xff]  ;;  %v5463_v29 = vld [vmem:[#allocation89_spill] sm:$0xff] }
 0x3ab   : > { %v1945_v0 = vmul.f32 %v4484_v2, %v5452_v15  ;;  %v1946_v5 = vmul.f32 %v4478_v16, %v5453_v12  ;;  %v1947_v19 = vmul.f32 %v4480_v60, %v5454_v28  ;;  %v1948_v41 = vmul.f32 %v4482_v32, %v5455_v57  ;;  %v5464_v53 = vld [vmem:[#allocation90_spill] sm:$0xff] }
 0x3ac   : > { %v4500_v37 = vperm.slane %v1932_v62, 0  ;;  %v4502_v31 = vperm.slane %v1932_v62, 1  ;;  %v4504_v54 = vperm.slane %v1932_v62, 2  ;;  %v4506_v46 = vperm.slane %v1932_v62, 3 }
 0x3ad   : > { %v1949_v8 = vmul.f32 %v4484_v2, %v5456_v43  ;;  %v1950_v10 = vmul.f32 %v4478_v16, %v5457_v48  ;;  %v1951_v58 = vmul.f32 %v4480_v60, %v5458_v26  ;;  %v1952_v13 = vmul.f32 %v4482_v32, %v5459_v50  ;;  %v5466_v43 = vld [vmem:[#allocation28_spill] sm:$0xff] }
 0x3ae   : > { %v2079_v55 = vadd.f32 %v4500_v37, %v1942_v34  ;;  %v2080_v33 = vadd.f32 %v4502_v31, %v1943_v7  ;;  %v2081_v11 = vadd.f32 %v4504_v54, %v1944_v22  ;;  %v2082_v17 = vadd.f32 %v4506_v46, %v1945_v0 }
 0x3af   : > { %v2083_v9 = vadd.f32 %v4500_v37, %v1946_v5  ;;  %v2084_v30 = vadd.f32 %v4502_v31, %v1947_v19  ;;  %v2085_v40 = vadd.f32 %v4504_v54, %v1948_v41  ;;  %v2086_v36 = vadd.f32 %v4506_v46, %v1949_v8  ;;  %v5465_v5 = vld [vmem:[#allocation27_spill] sm:$0xff] }
 0x3b0   : > { %v2207_v4 = vmax.f32 %v2079_v55, 0.0  ;;  %v2208_v39 = vmax.f32 %v2080_v33, 0.0  ;;  %v2209_v27 = vmax.f32 %v2081_v11, 0.0  ;;  %v2210_v21 = vmax.f32 %v2082_v17, 0.0 }
 0x3b1   : > { %v2211_v59 = vmax.f32 %v2083_v9, 0.0  ;;  %v2212_v49 = vmax.f32 %v2084_v30, 0.0  ;;  %v2213_v14 = vmax.f32 %v2085_v40, 0.0  ;;  %v2214_v6 = vmax.f32 %v2086_v36, 0.0  ;;  %v5468_v30 = vld [vmem:[#allocation92_spill] sm:$0xff] }
 0x3b2   : > { %v2335_v47 = vpack.c.bf16 %v2208_v39, %v2207_v4  ;;  %v2336_v56 = vpack.c.bf16 %v2210_v21, %v2209_v27  ;;  %v2087_v44 = vadd.f32 %v4500_v37, %v1950_v10  ;;  %v2088_v18 = vadd.f32 %v4502_v31, %v1951_v58  ;;  %v5467_v58 = vld [vmem:[#allocation91_spill] sm:$0xff]  ;;  %v5469_v27 = vld [vmem:[#allocation29_spill] sm:$0xff] }
 0x3b3   : > { %v2337_v20 = vpack.c.bf16 %v2212_v49, %v2211_v59  ;;  %v2338_v51 = vpack.c.bf16 %v2214_v6, %v2213_v14  ;;  %v1953_v23 = vmul.f32 %v4484_v2, %v5460_v42  ;;  %v2089_v63 = vadd.f32 %v4504_v54, %v1952_v13  ;;  %v5470_v59 = vld [vmem:[#allocation30_spill] sm:$0xff] }
 0x3b4   : > { %2399 = vst [vmem:[%s3462_s29] sm:$0xff] %v2335_v47  ;;  %v2215_v38 = vmax.f32 %v2087_v44, 0.0  ;;  %v2216_v25 = vmax.f32 %v2088_v18, 0.0  ;;  %v1954_v52 = vmul.f32 %v4478_v16, %v5461_v45  ;;  %v1955_v62 = vmul.f32 %v4480_v60, %v5462_v61  ;;  %v5471_v47 = vld [vmem:[#allocation93_spill] sm:$0xff]  ;;  %v5472_v44 = vld [vmem:[#allocation94_spill] sm:$0xff] }
 0x3b5   : > { %2400 = vst [vmem:[%s3462_s29 + $0x8] sm:$0xff] %v2336_v56  ;;  %v2090_v1 = vadd.f32 %v4506_v46, %v1953_v23  ;;  %v2217_v34 = vmax.f32 %v2089_v63, 0.0  ;;  %v1956_v7 = vmul.f32 %v4482_v32, %v5463_v29  ;;  %v1957_v22 = vmul.f32 %v4484_v2, %v5464_v53  ;;  %v5473_v23 = vld [vmem:[#allocation31_spill] sm:$0xff] }
 0x3b6   : > { %2401 = vst [vmem:[%s3462_s29 + $0x10] sm:$0xff] %v2337_v20  ;;  %v2339_v15 = vpack.c.bf16 %v2216_v25, %v2215_v38  ;;  %v2091_v0 = vadd.f32 %v4500_v37, %v1954_v52  ;;  %v2092_v12 = vadd.f32 %v4502_v31, %v1955_v62  ;;  %v1958_v28 = vmul.f32 %v4478_v16, %v5465_v5  ;;  %v5474_v52 = vld [vmem:[#allocation32_spill] sm:$0xff]  ;;  %v5475_v29 = vld [vmem:[#allocation95_spill] sm:$0xff] }
 0x3b7   : > { %2402 = vst [vmem:[%s3462_s29 + $0x18] sm:$0xff] %v2338_v51  ;;  %v2218_v19 = vmax.f32 %v2090_v1, 0.0  ;;  %v2093_v57 = vadd.f32 %v4504_v54, %v1956_v7  ;;  %v2094_v41 = vadd.f32 %v4506_v46, %v1957_v22  ;;  %v1959_v8 = vmul.f32 %v4480_v60, %v5466_v43 }
 0x3b8   : > { %2403 = vst [vmem:[%s3462_s29 + $0x20] sm:$0xff] %v2339_v15  ;;  %v2219_v48 = vmax.f32 %v2091_v0, 0.0  ;;  %v2220_v10 = vmax.f32 %v2092_v12, 0.0  ;;  %v2095_v26 = vadd.f32 %v4500_v37, %v1958_v28  ;;  %v1960_v50 = vmul.f32 %v4482_v32, %v5467_v58  ;;  %v5476_v28 = vld [vmem:[#allocation96_spill] sm:$0xff] }
 0x3b9   : > { %v2340_v13 = vpack.c.bf16 %v2218_v19, %v2217_v34  ;;  %v2221_v55 = vmax.f32 %v2093_v57, 0.0  ;;  %v2222_v33 = vmax.f32 %v2094_v41, 0.0  ;;  %v2096_v11 = vadd.f32 %v4502_v31, %v1959_v8  ;;  %v5477_v8 = vld [vmem:[#allocation33_spill] sm:$0xff] }
 0x3ba   : > { %v2341_v17 = vpack.c.bf16 %v2220_v10, %v2219_v48  ;;  %v2223_v9 = vmax.f32 %v2095_v26, 0.0  ;;  %v1961_v40 = vmul.f32 %v4484_v2, %v5468_v30  ;;  %v2097_v36 = vadd.f32 %v4504_v54, %v1960_v50  ;;  %v5478_v10 = vld [vmem:[#allocation34_spill] sm:$0xff] }
 0x3bb   : > { %2404 = vst [vmem:[%s3462_s29 + $0x28] sm:$0xff] %v2340_v13  ;;  %v2342_v4 = vpack.c.bf16 %v2222_v33, %v2221_v55  ;;  %v2224_v39 = vmax.f32 %v2096_v11, 0.0  ;;  %v1962_v21 = vmul.f32 %v4478_v16, %v5469_v27  ;;  %v1963_v49 = vmul.f32 %v4480_v60, %v5470_v59  ;;  %v5479_v13 = vld [vmem:[#allocation97_spill] sm:$0xff]  ;;  %v5480_v33 = vld [vmem:[#allocation98_spill] sm:$0xff] }
 0x3bc   : > { %2405 = vst [vmem:[%s3462_s29 + $0x30] sm:$0xff] %v2341_v17  ;;  %v2098_v14 = vadd.f32 %v4506_v46, %v1961_v40  ;;  %v2225_v6 = vmax.f32 %v2097_v36, 0.0  ;;  %v1964_v56 = vmul.f32 %v4482_v32, %v5471_v47  ;;  %v1965_v18 = vmul.f32 %v4484_v2, %v5472_v44  ;;  %v5481_v40 = vld [vmem:[#allocation35_spill] sm:$0xff] }
 0x3bd   : > { %2406 = vst [vmem:[%s3462_s29 + $0x38] sm:$0xff] %v2342_v4  ;;  %v2343_v20 = vpack.c.bf16 %v2224_v39, %v2223_v9  ;;  %v2099_v51 = vadd.f32 %v4500_v37, %v1962_v21  ;;  %v2100_v42 = vadd.f32 %v4502_v31, %v1963_v49  ;;  %v1966_v63 = vmul.f32 %v4478_v16, %v5473_v23  ;;  %v5482_v21 = vld [vmem:[#allocation36_spill] sm:$0xff]  ;;  %v5483_v47 = vld [vmem:[#allocation99_spill] sm:$0xff] }
 0x3be   : > { %v2226_v38 = vmax.f32 %v2098_v14, 0.0  ;;  %v2101_v25 = vadd.f32 %v4504_v54, %v1964_v56  ;;  %v2102_v45 = vadd.f32 %v4506_v46, %v1965_v18  ;;  %v1967_v61 = vmul.f32 %v4480_v60, %v5474_v52 }
 0x3bf   : > { %2407 = vst [vmem:[%s3462_s29 + $0x40] sm:$0xff] %v2343_v20  ;;  %v2227_v62 = vmax.f32 %v2099_v51, 0.0  ;;  %v2228_v1 = vmax.f32 %v2100_v42, 0.0  ;;  %v2103_v34 = vadd.f32 %v4500_v37, %v1966_v63  ;;  %v1968_v7 = vmul.f32 %v4482_v32, %v5475_v29  ;;  %v5484_v63 = vld [vmem:[#allocation100_spill] sm:$0xff] }
 0x3c0   : > { %v2344_v53 = vpack.c.bf16 %v2226_v38, %v2225_v6  ;;  %v2229_v22 = vmax.f32 %v2101_v25, 0.0  ;;  %v2230_v15 = vmax.f32 %v2102_v45, 0.0  ;;  %v2104_v0 = vadd.f32 %v4502_v31, %v1967_v61  ;;  %v5485_v61 = vld [vmem:[#allocation37_spill] sm:$0xff] }
 0x3c1   : > { %v2345_v12 = vpack.c.bf16 %v2228_v1, %v2227_v62  ;;  %v2231_v5 = vmax.f32 %v2103_v34, 0.0  ;;  %v1969_v19 = vmul.f32 %v4484_v2, %v5476_v28  ;;  %v2105_v57 = vadd.f32 %v4504_v54, %v1968_v7  ;;  %v5486_v1 = vld [vmem:[#allocation38_spill] sm:$0xff] }
 0x3c2   : > { %2408 = vst [vmem:[%s3462_s29 + $0x48] sm:$0xff] %v2344_v53  ;;  %v2346_v41 = vpack.c.bf16 %v2230_v15, %v2229_v22  ;;  %v2232_v43 = vmax.f32 %v2104_v0, 0.0  ;;  %v1970_v48 = vmul.f32 %v4478_v16, %v5477_v8  ;;  %v1971_v26 = vmul.f32 %v4480_v60, %v5478_v10 }
 0x3c3   : > { %2409 = vst [vmem:[%s3462_s29 + $0x50] sm:$0xff] %v2345_v12  ;;  %v2106_v58 = vadd.f32 %v4506_v46, %v1969_v19  ;;  %v2233_v50 = vmax.f32 %v2105_v57, 0.0  ;;  %v1972_v55 = vmul.f32 %v4482_v32, %v5479_v13  ;;  %v1973_v11 = vmul.f32 %v4484_v2, %v5480_v33 }
 0x3c4   : > { %2410 = vst [vmem:[%s3462_s29 + $0x58] sm:$0xff] %v2346_v41  ;;  %v2347_v17 = vpack.c.bf16 %v2232_v43, %v2231_v5  ;;  %v2107_v9 = vadd.f32 %v4500_v37, %v1970_v48  ;;  %v2108_v30 = vadd.f32 %v4502_v31, %v1971_v26  ;;  %v1974_v36 = vmul.f32 %v4478_v16, %v5481_v40  ;;  %v5487_v5 = vld [vmem:[#allocation39_spill] sm:$0xff]  ;;  %v5488_v43 = vld [vmem:[#allocation40_spill] sm:$0xff] }
 0x3c5   : > { %v2234_v4 = vmax.f32 %v2106_v58, 0.0  ;;  %v2109_v39 = vadd.f32 %v4504_v54, %v1972_v55  ;;  %v2110_v27 = vadd.f32 %v4506_v46, %v1973_v11  ;;  %v1975_v59 = vmul.f32 %v4480_v60, %v5482_v21  ;;  %v5489_v11 = vld [vmem:[#allocation101_spill] sm:$0xff] }
 0x3c6   : > { %2411 = vst [vmem:[%s3462_s29 + $0x60] sm:$0xff] %v2347_v17  ;;  %v2235_v49 = vmax.f32 %v2107_v9, 0.0  ;;  %v2236_v14 = vmax.f32 %v2108_v30, 0.0  ;;  %v2111_v6 = vadd.f32 %v4500_v37, %v1974_v36  ;;  %v1976_v56 = vmul.f32 %v4482_v32, %v5483_v47  ;;  %v5490_v36 = vld [vmem:[#allocation41_spill] sm:$0xff] }
 0x3c7   : > { %v2348_v44 = vpack.c.bf16 %v2234_v4, %v2233_v50  ;;  %v2237_v18 = vmax.f32 %v2109_v39, 0.0  ;;  %v2238_v20 = vmax.f32 %v2110_v27, 0.0  ;;  %v2112_v51 = vadd.f32 %v4502_v31, %v1975_v59  ;;  %v5492_v59 = vld [vmem:[#allocation102_spill] sm:$0xff] }
 0x3c8   : > { %v2349_v42 = vpack.c.bf16 %v2236_v14, %v2235_v49  ;;  %v2239_v23 = vmax.f32 %v2111_v6, 0.0  ;;  %v1977_v38 = vmul.f32 %v4484_v2, %v5484_v63  ;;  %v2113_v25 = vadd.f32 %v4504_v54, %v1976_v56  ;;  %v5493_v14 = vld [vmem:[#allocation103_spill] sm:$0xff]  ;;  %v5495_v63 = vld [vmem:[#allocation44_spill] sm:$0xff] }
 0x3c9   : > { %2412 = vst [vmem:[%s3462_s29 + $0x68] sm:$0xff] %v2348_v44  ;;  %v2350_v45 = vpack.c.bf16 %v2238_v20, %v2237_v18  ;;  %v2240_v52 = vmax.f32 %v2112_v51, 0.0  ;;  %v1978_v62 = vmul.f32 %v4478_v16, %v5485_v61  ;;  %v1979_v34 = vmul.f32 %v4480_v60, %v5486_v1  ;;  %v5494_v18 = vld [vmem:[#allocation43_spill] sm:$0xff]  ;;  %v5496_v61 = vld [vmem:[#allocation104_spill] sm:$0xff] }
 0x3ca   : > { %2413 = vst [vmem:[%s3462_s29 + $0x70] sm:$0xff] %v2349_v42  ;;  %v2114_v29 = vadd.f32 %v4506_v46, %v1977_v38  ;;  %v2241_v7 = vmax.f32 %v2113_v25, 0.0  ;;  %v1980_v53 = vmul.f32 %v4482_v32, %v3872_v24  ;;  %v1981_v22 = vmul.f32 %v4484_v2, %v3874_v35 }
 0x3cb   : > { %2414 = vst [vmem:[%s3462_s29 + $0x78] sm:$0xff] %v2350_v45  ;;  %v2351_v15 = vpack.c.bf16 %v2240_v52, %v2239_v23  ;;  %v2115_v0 = vadd.f32 %v4500_v37, %v1978_v62  ;;  %v2116_v12 = vadd.f32 %v4502_v31, %v1979_v34  ;;  %v1982_v28 = vmul.f32 %v4478_v16, %v5487_v5 }
 0x3cc   : > { %v2242_v19 = vmax.f32 %v2114_v29, 0.0  ;;  %v2117_v57 = vadd.f32 %v4504_v54, %v1980_v53  ;;  %v2118_v41 = vadd.f32 %v4506_v46, %v1981_v22  ;;  %v1983_v24 = vmul.f32 %v4480_v60, %v5488_v43 }
 0x3cd   : > { %2415 = vst [vmem:[%s3462_s29 + $0x80] sm:$0xff] %v2351_v15  ;;  %v2243_v35 = vmax.f32 %v2115_v0, 0.0  ;;  %v2244_v8 = vmax.f32 %v2116_v12, 0.0  ;;  %v2119_v48 = vadd.f32 %v4500_v37, %v1982_v28  ;;  %v1984_v10 = vmul.f32 %v4482_v32, %v3876_v3  ;;  %v5491_v3 = vld [vmem:[#allocation42_spill] sm:$0xff]  ;;  %v5497_v15 = vld [vmem:[#allocation105_spill] sm:$0xff] }
 0x3ce   : > { %v2352_v26 = vpack.c.bf16 %v2242_v19, %v2241_v7  ;;  %v2245_v58 = vmax.f32 %v2117_v57, 0.0  ;;  %v2246_v50 = vmax.f32 %v2118_v41, 0.0  ;;  %v2120_v13 = vadd.f32 %v4502_v31, %v1983_v24  ;;  %v5498_v19 = vld [vmem:[#allocation45_spill] sm:$0xff]  ;;  %v5499_v41 = vld [vmem:[#allocation46_spill] sm:$0xff] }
 0x3cf   : > { %v2353_v55 = vpack.c.bf16 %v2244_v8, %v2243_v35  ;;  %v2247_v33 = vmax.f32 %v2119_v48, 0.0  ;;  %v1985_v17 = vmul.f32 %v4484_v2, %v5489_v11  ;;  %v2121_v9 = vadd.f32 %v4504_v54, %v1984_v10  ;;  %v5500_v8 = vld [vmem:[#allocation106_spill] sm:$0xff]  ;;  %v5501_v10 = vld [vmem:[#allocation107_spill] sm:$0xff] }
 0x3d0   : > { %2416 = vst [vmem:[%s3462_s29 + $0x88] sm:$0xff] %v2352_v26  ;;  %v2354_v30 = vpack.c.bf16 %v2246_v50, %v2245_v58  ;;  %v2248_v40 = vmax.f32 %v2120_v13, 0.0  ;;  %v1986_v4 = vmul.f32 %v4478_v16, %v5490_v36  ;;  %v1987_v39 = vmul.f32 %v4480_v60, %v5491_v3 }
 0x3d1   : > { %2417 = vst [vmem:[%s3462_s29 + $0x90] sm:$0xff] %v2353_v55  ;;  %v2122_v27 = vadd.f32 %v4506_v46, %v1985_v17  ;;  %v2249_v21 = vmax.f32 %v2121_v9, 0.0  ;;  %v1988_v49 = vmul.f32 %v4482_v32, %v5492_v59  ;;  %v1989_v6 = vmul.f32 %v4484_v2, %v5493_v14  ;;  %v5502_v55 = vld [vmem:[#allocation47_spill] sm:$0xff] }
 0x3d2   : > { %2418 = vst [vmem:[%s3462_s29 + $0x98] sm:$0xff] %v2354_v30  ;;  %v2355_v47 = vpack.c.bf16 %v2248_v40, %v2247_v33  ;;  %v2123_v56 = vadd.f32 %v4500_v37, %v1986_v4  ;;  %v2124_v44 = vadd.f32 %v4502_v31, %v1987_v39  ;;  %v1990_v20 = vmul.f32 %v4478_v16, %v5494_v18  ;;  %v5503_v30 = vld [vmem:[#allocation48_spill] sm:$0xff] }
 0x3d3   : > { %v2250_v51 = vmax.f32 %v2122_v27, 0.0  ;;  %v2125_v42 = vadd.f32 %v4504_v54, %v1988_v49  ;;  %v2126_v23 = vadd.f32 %v4506_v46, %v1989_v6  ;;  %v1991_v38 = vmul.f32 %v4480_v60, %v5495_v63  ;;  %v5504_v39 = vld [vmem:[#allocation108_spill] sm:$0xff]  ;;  %v5507_v63 = vld [vmem:[#allocation50_spill] sm:$0xff] }
 0x3d4   : > { %2419 = vst [vmem:[%s3462_s29 + $0xa0] sm:$0xff] %v2355_v47  ;;  %v2251_v25 = vmax.f32 %v2123_v56, 0.0  ;;  %v2252_v45 = vmax.f32 %v2124_v44, 0.0  ;;  %v2127_v52 = vadd.f32 %v4500_v37, %v1990_v20  ;;  %v1992_v62 = vmul.f32 %v4482_v32, %v5496_v61  ;;  %v5505_v56 = vld [vmem:[#allocation109_spill] sm:$0xff] }
 0x3d5   : > { %v2356_v1 = vpack.c.bf16 %v2250_v51, %v2249_v21  ;;  %v2253_v34 = vmax.f32 %v2125_v42, 0.0  ;;  %v2254_v29 = vmax.f32 %v2126_v23, 0.0  ;;  %v2128_v7 = vadd.f32 %v4502_v31, %v1991_v38  ;;  %v5506_v42 = vld [vmem:[#allocation49_spill] sm:$0xff] }
 0x3d6   : > { %v2357_v53 = vpack.c.bf16 %v2252_v45, %v2251_v25  ;;  %v2255_v22 = vmax.f32 %v2127_v52, 0.0  ;;  %v1993_v0 = vmul.f32 %v4484_v2, %v5497_v15  ;;  %v2129_v12 = vadd.f32 %v4504_v54, %v1992_v62  ;;  %v5508_v52 = vld [vmem:[#allocation110_spill] sm:$0xff]  ;;  %v5509_v62 = vld [vmem:[#allocation111_spill] sm:$0xff] }
 0x3d7   : > { %2420 = vst [vmem:[%s3462_s29 + $0xa8] sm:$0xff] %v2356_v1  ;;  %v2358_v5 = vpack.c.bf16 %v2254_v29, %v2253_v34  ;;  %v2256_v28 = vmax.f32 %v2128_v7, 0.0  ;;  %v1994_v57 = vmul.f32 %v4478_v16, %v5498_v19  ;;  %v1995_v43 = vmul.f32 %v4480_v60, %v5499_v41 }
 0x3d8   : > { %2421 = vst [vmem:[%s3462_s29 + $0xb0] sm:$0xff] %v2357_v53  ;;  %v2130_v24 = vadd.f32 %v4506_v46, %v1993_v0  ;;  %v2257_v35 = vmax.f32 %v2129_v12, 0.0  ;;  %v1996_v48 = vmul.f32 %v4482_v32, %v5500_v8  ;;  %v1997_v26 = vmul.f32 %v4484_v2, %v5501_v10  ;;  %v5510_v53 = vld [vmem:[#allocation51_spill] sm:$0xff] }
 0x3d9   : > { %2422 = vst [vmem:[%s3462_s29 + $0xb8] sm:$0xff] %v2358_v5  ;;  %v2359_v58 = vpack.c.bf16 %v2256_v28, %v2255_v22  ;;  %v2131_v50 = vadd.f32 %v4500_v37, %v1994_v57  ;;  %v2132_v13 = vadd.f32 %v4502_v31, %v1995_v43  ;;  %v1998_v33 = vmul.f32 %v4478_v16, %v5502_v55  ;;  %v5511_v5 = vld [vmem:[#allocation52_spill] sm:$0xff] }
 0x3da   : > { %v2258_v11 = vmax.f32 %v2130_v24, 0.0  ;;  %v2133_v17 = vadd.f32 %v4504_v54, %v1996_v48  ;;  %v2134_v9 = vadd.f32 %v4506_v46, %v1997_v26  ;;  %v1999_v40 = vmul.f32 %v4480_v60, %v5503_v30  ;;  %v5512_v43 = vld [vmem:[#allocation112_spill] sm:$0xff]  ;;  %v5515_v30 = vld [vmem:[#allocation54_spill] sm:$0xff] }
 0x3db   : > { %2423 = vst [vmem:[%s3462_s29 + $0xc0] sm:$0xff] %v2359_v58  ;;  %v2259_v36 = vmax.f32 %v2131_v50, 0.0  ;;  %v2260_v4 = vmax.f32 %v2132_v13, 0.0  ;;  %v2135_v3 = vadd.f32 %v4500_v37, %v1998_v33  ;;  %v2000_v27 = vmul.f32 %v4482_v32, %v5504_v39  ;;  %v5513_v50 = vld [vmem:[#allocation113_spill] sm:$0xff] }
 0x3dc   : > { %v2360_v21 = vpack.c.bf16 %v2258_v11, %v2257_v35  ;;  %v2261_v59 = vmax.f32 %v2133_v17, 0.0  ;;  %v2262_v49 = vmax.f32 %v2134_v9, 0.0  ;;  %v2136_v14 = vadd.f32 %v4502_v31, %v1999_v40  ;;  %v5514_v17 = vld [vmem:[#allocation53_spill] sm:$0xff] }
 0x3dd   : > { %v2361_v6 = vpack.c.bf16 %v2260_v4, %v2259_v36  ;;  %v2263_v47 = vmax.f32 %v2135_v3, 0.0  ;;  %v2001_v44 = vmul.f32 %v4484_v2, %v5505_v56  ;;  %v2137_v18 = vadd.f32 %v4504_v54, %v2000_v27  ;;  %v5516_v3 = vld [vmem:[#allocation114_spill] sm:$0xff]  ;;  %v5517_v27 = vld [vmem:[#allocation115_spill] sm:$0xff] }
 0x3de   : > { %2424 = vst [vmem:[%s3462_s29 + $0xc8] sm:$0xff] %v2360_v21  ;;  %v2362_v20 = vpack.c.bf16 %v2262_v49, %v2261_v59  ;;  %v2264_v51 = vmax.f32 %v2136_v14, 0.0  ;;  %v2002_v23 = vmul.f32 %v4478_v16, %v5506_v42  ;;  %v2003_v38 = vmul.f32 %v4480_v60, %v5507_v63 }
 0x3df   : > { %2425 = vst [vmem:[%s3462_s29 + $0xd0] sm:$0xff] %v2361_v6  ;;  %v2138_v25 = vadd.f32 %v4506_v46, %v2001_v44  ;;  %v2265_v45 = vmax.f32 %v2137_v18, 0.0  ;;  %v2004_v61 = vmul.f32 %v4482_v32, %v5508_v52  ;;  %v2005_v1 = vmul.f32 %v4484_v2, %v5509_v62  ;;  %v5518_v6 = vld [vmem:[#allocation55_spill] sm:$0xff] }
 0x3e0   : > { %2426 = vst [vmem:[%s3462_s29 + $0xd8] sm:$0xff] %v2362_v20  ;;  %v2363_v34 = vpack.c.bf16 %v2264_v51, %v2263_v47  ;;  %v2139_v29 = vadd.f32 %v4500_v37, %v2002_v23  ;;  %v2140_v7 = vadd.f32 %v4502_v31, %v2003_v38  ;;  %v2006_v22 = vmul.f32 %v4478_v16, %v5510_v53  ;;  %v5519_v20 = vld [vmem:[#allocation56_spill] sm:$0xff] }
 0x3e1   : > { %v2266_v15 = vmax.f32 %v2138_v25, 0.0  ;;  %v2141_v0 = vadd.f32 %v4504_v54, %v2004_v61  ;;  %v2142_v12 = vadd.f32 %v4506_v46, %v2005_v1  ;;  %v2007_v28 = vmul.f32 %v4480_v60, %v5511_v5  ;;  %v5520_v38 = vld [vmem:[#allocation116_spill] sm:$0xff]  ;;  %v5523_v5 = vld [vmem:[#allocation58_spill] sm:$0xff] }
 0x3e2   : > { %2427 = vst [vmem:[%s3462_s29 + $0xe0] sm:$0xff] %v2363_v34  ;;  %v2267_v19 = vmax.f32 %v2139_v29, 0.0  ;;  %v2268_v57 = vmax.f32 %v2140_v7, 0.0  ;;  %v2143_v41 = vadd.f32 %v4500_v37, %v2006_v22  ;;  %v2008_v24 = vmul.f32 %v4482_v32, %v5512_v43  ;;  %v5521_v29 = vld [vmem:[#allocation117_spill] sm:$0xff] }
 0x3e3   : > { %v2364_v35 = vpack.c.bf16 %v2266_v15, %v2265_v45  ;;  %v2269_v8 = vmax.f32 %v2141_v0, 0.0  ;;  %v2270_v48 = vmax.f32 %v2142_v12, 0.0  ;;  %v2144_v10 = vadd.f32 %v4502_v31, %v2007_v28  ;;  %v5522_v0 = vld [vmem:[#allocation57_spill] sm:$0xff] }
 0x3e4   : > { %v2365_v26 = vpack.c.bf16 %v2268_v57, %v2267_v19  ;;  %v2271_v58 = vmax.f32 %v2143_v41, 0.0  ;;  %v2009_v13 = vmul.f32 %v4484_v2, %v5513_v50  ;;  %v2145_v55 = vadd.f32 %v4504_v54, %v2008_v24  ;;  %v5524_v41 = vld [vmem:[#allocation118_spill] sm:$0xff]  ;;  %v5525_v24 = vld [vmem:[#allocation119_spill] sm:$0xff] }
 0x3e5   : > { %2428 = vst [vmem:[%s3462_s29 + $0xe8] sm:$0xff] %v2364_v35  ;;  %v2366_v33 = vpack.c.bf16 %v2270_v48, %v2269_v8  ;;  %v2272_v11 = vmax.f32 %v2144_v10, 0.0  ;;  %v2010_v9 = vmul.f32 %v4478_v16, %v5514_v17  ;;  %v2011_v40 = vmul.f32 %v4480_v60, %v5515_v30 }
 0x3e6   : > { %2429 = vst [vmem:[%s3462_s29 + $0xf0] sm:$0xff] %v2365_v26  ;;  %v2146_v36 = vadd.f32 %v4506_v46, %v2009_v13  ;;  %v2273_v4 = vmax.f32 %v2145_v55, 0.0  ;;  %v2012_v39 = vmul.f32 %v4482_v32, %v5516_v3  ;;  %v2013_v21 = vmul.f32 %v4484_v2, %v5517_v27  ;;  %v5526_v26 = vld [vmem:[#allocation59_spill] sm:$0xff] }
 0x3e7   : > { %2430 = vst [vmem:[%s3462_s29 + $0xf8] sm:$0xff] %v2366_v33  ;;  %v2367_v59 = vpack.c.bf16 %v2272_v11, %v2271_v58  ;;  %v2147_v49 = vadd.f32 %v4500_v37, %v2010_v9  ;;  %v2148_v14 = vadd.f32 %v4502_v31, %v2011_v40  ;;  %v2014_v47 = vmul.f32 %v4478_v16, %v5518_v6  ;;  %v5527_v33 = vld [vmem:[#allocation60_spill] sm:$0xff] }
 0x3e8   : > { %v2274_v56 = vmax.f32 %v2146_v36, 0.0  ;;  %v2149_v44 = vadd.f32 %v4504_v54, %v2012_v39  ;;  %v2150_v18 = vadd.f32 %v4506_v46, %v2013_v21  ;;  %v2015_v51 = vmul.f32 %v4480_v60, %v5519_v20  ;;  %v5528_v40 = vld [vmem:[#allocation120_spill] sm:$0xff]  ;;  %v5531_v20 = vld [vmem:[#allocation62_spill] sm:$0xff] }
 0x3e9   : > { %2431 = vst [vmem:[%s3462_s29 + $0x100] sm:$0xff] %v2367_v59  ;;  %v2275_v42 = vmax.f32 %v2147_v49, 0.0  ;;  %v2276_v23 = vmax.f32 %v2148_v14, 0.0  ;;  %v2151_v63 = vadd.f32 %v4500_v37, %v2014_v47  ;;  %v2016_v25 = vmul.f32 %v4482_v32, %v5520_v38  ;;  %v5529_v49 = vld [vmem:[#allocation121_spill] sm:$0xff] }
 0x3ea   : > { %v2368_v45 = vpack.c.bf16 %v2274_v56, %v2273_v4  ;;  %v2277_v52 = vmax.f32 %v2149_v44, 0.0  ;;  %v2278_v61 = vmax.f32 %v2150_v18, 0.0  ;;  %v2152_v62 = vadd.f32 %v4502_v31, %v2015_v51  ;;  %v5530_v44 = vld [vmem:[#allocation61_spill] sm:$0xff] }
 0x3eb   : > { %v2369_v1 = vpack.c.bf16 %v2276_v23, %v2275_v42  ;;  %v2279_v34 = vmax.f32 %v2151_v63, 0.0  ;;  %v2017_v7 = vmul.f32 %v4484_v2, %v5521_v29  ;;  %v2153_v53 = vadd.f32 %v4504_v54, %v2016_v25  ;;  %v5532_v63 = vld [vmem:[#allocation122_spill] sm:$0xff]  ;;  %v5533_v25 = vld [vmem:[#allocation123_spill] sm:$0xff] }
 0x3ec   : > { %2432 = vst [vmem:[%s3462_s29 + $0x108] sm:$0xff] %v2368_v45  ;;  %v2370_v22 = vpack.c.bf16 %v2278_v61, %v2277_v52  ;;  %v2280_v15 = vmax.f32 %v2152_v62, 0.0  ;;  %v2018_v12 = vmul.f32 %v4478_v16, %v5522_v0  ;;  %v2019_v28 = vmul.f32 %v4480_v60, %v5523_v5 }
 0x3ed   : > { %2433 = vst [vmem:[%s3462_s29 + $0x110] sm:$0xff] %v2369_v1  ;;  %v2154_v19 = vadd.f32 %v4506_v46, %v2017_v7  ;;  %v2281_v57 = vmax.f32 %v2153_v53, 0.0  ;;  %v2020_v43 = vmul.f32 %v4482_v32, %v5524_v41  ;;  %v2021_v35 = vmul.f32 %v4484_v2, %v5525_v24  ;;  %v5534_v1 = vld [vmem:[#allocation63_spill] sm:$0xff] }
 0x3ee   : > { %2434 = vst [vmem:[%s3462_s29 + $0x118] sm:$0xff] %v2370_v22  ;;  %v2371_v8 = vpack.c.bf16 %v2280_v15, %v2279_v34  ;;  %v2155_v48 = vadd.f32 %v4500_v37, %v2018_v12  ;;  %v2156_v10 = vadd.f32 %v4502_v31, %v2019_v28  ;;  %v2022_v58 = vmul.f32 %v4478_v16, %v5526_v26  ;;  %v5535_v22 = vld [vmem:[#allocation64_spill] sm:$0xff] }
 0x3ef   : > { %v2282_v50 = vmax.f32 %v2154_v19, 0.0  ;;  %v2157_v13 = vadd.f32 %v4504_v54, %v2020_v43  ;;  %v2158_v55 = vadd.f32 %v4506_v46, %v2021_v35  ;;  %v2023_v11 = vmul.f32 %v4480_v60, %v5527_v33  ;;  %v5536_v28 = vld [vmem:[#allocation124_spill] sm:$0xff]  ;;  %v5539_v33 = vld [vmem:[#allocation66_spill] sm:$0xff] }
 0x3f0   : > { %2435 = vst [vmem:[%s3462_s29 + $0x120] sm:$0xff] %v2371_v8  ;;  %v2283_v17 = vmax.f32 %v2155_v48, 0.0  ;;  %v2284_v9 = vmax.f32 %v2156_v10, 0.0  ;;  %v2159_v30 = vadd.f32 %v4500_v37, %v2022_v58  ;;  %v2024_v36 = vmul.f32 %v4482_v32, %v5528_v40  ;;  %v5537_v48 = vld [vmem:[#allocation125_spill] sm:$0xff] }
 0x3f1   : > { %v2372_v4 = vpack.c.bf16 %v2282_v50, %v2281_v57  ;;  %v2285_v3 = vmax.f32 %v2157_v13, 0.0  ;;  %v2286_v39 = vmax.f32 %v2158_v55, 0.0  ;;  %v2160_v27 = vadd.f32 %v4502_v31, %v2023_v11  ;;  %v5538_v13 = vld [vmem:[#allocation65_spill] sm:$0xff] }
 0x3f2   : > { %v2373_v21 = vpack.c.bf16 %v2284_v9, %v2283_v17  ;;  %v2287_v59 = vmax.f32 %v2159_v30, 0.0  ;;  %v2025_v14 = vmul.f32 %v4484_v2, %v5529_v49  ;;  %v2161_v6 = vadd.f32 %v4504_v54, %v2024_v36  ;;  %v5540_v30 = vld [vmem:[#allocation126_spill] sm:$0xff]  ;;  %v5541_v36 = vld [vmem:[#allocation127_spill] sm:$0xff] }
 0x3f3   : > { %2436 = vst [vmem:[%s3462_s29 + $0x128] sm:$0xff] %v2372_v4  ;;  %v2374_v47 = vpack.c.bf16 %v2286_v39, %v2285_v3  ;;  %v2288_v56 = vmax.f32 %v2160_v27, 0.0  ;;  %v2026_v18 = vmul.f32 %v4478_v16, %v5530_v44  ;;  %v2027_v51 = vmul.f32 %v4480_v60, %v5531_v20 }
 0x3f4   : > { %2437 = vst [vmem:[%s3462_s29 + $0x130] sm:$0xff] %v2373_v21  ;;  %v2162_v42 = vadd.f32 %v4506_v46, %v2025_v14  ;;  %v2289_v23 = vmax.f32 %v2161_v6, 0.0  ;;  %v2028_v38 = vmul.f32 %v4482_v32, %v5532_v63  ;;  %v2029_v45 = vmul.f32 %v4484_v2, %v5533_v25  ;;  %v5542_v21 = vld [vmem:[#allocation67_spill] sm:$0xff] }
 0x3f5   : > { %2438 = vst [vmem:[%s3462_s29 + $0x138] sm:$0xff] %v2374_v47  ;;  %v2375_v52 = vpack.c.bf16 %v2288_v56, %v2287_v59  ;;  %v2163_v61 = vadd.f32 %v4500_v37, %v2026_v18  ;;  %v2164_v62 = vadd.f32 %v4502_v31, %v2027_v51  ;;  %v2030_v34 = vmul.f32 %v4478_v16, %v5534_v1  ;;  %v5543_v47 = vld [vmem:[#allocation68_spill] sm:$0xff] }
 0x3f6   : > { %v2290_v29 = vmax.f32 %v2162_v42, 0.0  ;;  %v2165_v7 = vadd.f32 %v4504_v54, %v2028_v38  ;;  %v2166_v53 = vadd.f32 %v4506_v46, %v2029_v45  ;;  %v2031_v15 = vmul.f32 %v4480_v60, %v5535_v22  ;;  %v5544_v51 = vld [vmem:[#allocation128_spill] sm:$0xff]  ;;  %v5547_v22 = vld [vmem:[#allocation70_spill] sm:$0xff] }
 0x3f7   : > { %2439 = vst [vmem:[%s3462_s29 + $0x140] sm:$0xff] %v2375_v52  ;;  %v2291_v0 = vmax.f32 %v2163_v61, 0.0  ;;  %v2292_v12 = vmax.f32 %v2164_v62, 0.0  ;;  %v2167_v5 = vadd.f32 %v4500_v37, %v2030_v34  ;;  %v2032_v19 = vmul.f32 %v4482_v32, %v5536_v28  ;;  %v5545_v61 = vld [vmem:[#allocation129_spill] sm:$0xff] }
 0x3f8   : > { %v2376_v57 = vpack.c.bf16 %v2290_v29, %v2289_v23  ;;  %v2293_v41 = vmax.f32 %v2165_v7, 0.0  ;;  %v2294_v43 = vmax.f32 %v2166_v53, 0.0  ;;  %v2168_v24 = vadd.f32 %v4502_v31, %v2031_v15  ;;  %v5546_v7 = vld [vmem:[#allocation69_spill] sm:$0xff] }
 0x3f9   : > { %v2377_v35 = vpack.c.bf16 %v2292_v12, %v2291_v0  ;;  %v2295_v8 = vmax.f32 %v2167_v5, 0.0  ;;  %v2033_v10 = vmul.f32 %v4484_v2, %v5537_v48  ;;  %v2169_v26 = vadd.f32 %v4504_v54, %v2032_v19  ;;  %v5548_v5 = vld [vmem:[#allocation130_spill] sm:$0xff]  ;;  %v5549_v19 = vld [vmem:[#allocation131_spill] sm:$0xff] }
 0x3fa   : > { %2440 = vst [vmem:[%s3462_s29 + $0x148] sm:$0xff] %v2376_v57  ;;  %v2378_v58 = vpack.c.bf16 %v2294_v43, %v2293_v41  ;;  %v2296_v50 = vmax.f32 %v2168_v24, 0.0  ;;  %v2034_v55 = vmul.f32 %v4478_v16, %v5538_v13  ;;  %v2035_v11 = vmul.f32 %v4480_v60, %v5539_v33 }
 0x3fb   : > { %2441 = vst [vmem:[%s3462_s29 + $0x150] sm:$0xff] %v2377_v35  ;;  %v2170_v17 = vadd.f32 %v4506_v46, %v2033_v10  ;;  %v2297_v9 = vmax.f32 %v2169_v26, 0.0  ;;  %v2036_v40 = vmul.f32 %v4482_v32, %v5540_v30  ;;  %v2037_v4 = vmul.f32 %v4484_v2, %v5541_v36  ;;  %v5550_v35 = vld [vmem:[#allocation71_spill] sm:$0xff] }
 0x3fc   : > { %2442 = vst [vmem:[%s3462_s29 + $0x158] sm:$0xff] %v2378_v58  ;;  %v2379_v3 = vpack.c.bf16 %v2296_v50, %v2295_v8  ;;  %v2171_v39 = vadd.f32 %v4500_v37, %v2034_v55  ;;  %v2172_v27 = vadd.f32 %v4502_v31, %v2035_v11  ;;  %v2038_v59 = vmul.f32 %v4478_v16, %v5542_v21  ;;  %v5551_v58 = vld [vmem:[#allocation72_spill] sm:$0xff] }
 0x3fd   : > { %v2298_v49 = vmax.f32 %v2170_v17, 0.0  ;;  %v2173_v14 = vadd.f32 %v4504_v54, %v2036_v40  ;;  %v2174_v6 = vadd.f32 %v4506_v46, %v2037_v4  ;;  %v2039_v56 = vmul.f32 %v4480_v60, %v5543_v47  ;;  %v5552_v11 = vld [vmem:[#allocation132_spill] sm:$0xff]  ;;  %v5555_v47 = vld [vmem:[#allocation74_spill] sm:$0xff] }
 0x3fe   : > { %2443 = vst [vmem:[%s3462_s29 + $0x160] sm:$0xff] %v2379_v3  ;;  %v2299_v44 = vmax.f32 %v2171_v39, 0.0  ;;  %v2300_v18 = vmax.f32 %v2172_v27, 0.0  ;;  %v2175_v20 = vadd.f32 %v4500_v37, %v2038_v59  ;;  %v2040_v42 = vmul.f32 %v4482_v32, %v5544_v51  ;;  %v5553_v39 = vld [vmem:[#allocation133_spill] sm:$0xff] }
 0x3ff   : > { %v2380_v23 = vpack.c.bf16 %v2298_v49, %v2297_v9  ;;  %v2301_v63 = vmax.f32 %v2173_v14, 0.0  ;;  %v2302_v38 = vmax.f32 %v2174_v6, 0.0  ;;  %v2176_v25 = vadd.f32 %v4502_v31, %v2039_v56  ;;  %v5554_v14 = vld [vmem:[#allocation73_spill] sm:$0xff] }
 0x400   : > { %v2381_v45 = vpack.c.bf16 %v2300_v18, %v2299_v44  ;;  %v2303_v52 = vmax.f32 %v2175_v20, 0.0  ;;  %v2041_v62 = vmul.f32 %v4484_v2, %v5545_v61  ;;  %v2177_v1 = vadd.f32 %v4504_v54, %v2040_v42  ;;  %v5556_v20 = vld [vmem:[#allocation134_spill] sm:$0xff]  ;;  %v5557_v42 = vld [vmem:[#allocation135_spill] sm:$0xff] }
 0x401   : > { %2444 = vst [vmem:[%s3462_s29 + $0x168] sm:$0xff] %v2380_v23  ;;  %v2382_v34 = vpack.c.bf16 %v2302_v38, %v2301_v63  ;;  %v2304_v29 = vmax.f32 %v2176_v25, 0.0  ;;  %v2042_v53 = vmul.f32 %v4478_v16, %v5546_v7  ;;  %v2043_v15 = vmul.f32 %v4480_v60, %v5547_v22 }
 0x402   : > { %2445 = vst [vmem:[%s3462_s29 + $0x170] sm:$0xff] %v2381_v45  ;;  %v2178_v0 = vadd.f32 %v4506_v46, %v2041_v62  ;;  %v2305_v12 = vmax.f32 %v2177_v1, 0.0  ;;  %v2044_v28 = vmul.f32 %v4482_v32, %v5548_v5  ;;  %v2045_v57 = vmul.f32 %v4484_v2, %v5549_v19  ;;  %v5558_v45 = vld [vmem:[#allocation75_spill] sm:$0xff] }
 0x403   : > { %2446 = vst [vmem:[%s3462_s29 + $0x178] sm:$0xff] %v2382_v34  ;;  %v2383_v41 = vpack.c.bf16 %v2304_v29, %v2303_v52  ;;  %v2179_v43 = vadd.f32 %v4500_v37, %v2042_v53  ;;  %v2180_v24 = vadd.f32 %v4502_v31, %v2043_v15  ;;  %v2046_v8 = vmul.f32 %v4478_v16, %v5550_v35  ;;  %v5559_v34 = vld [vmem:[#allocation76_spill] sm:$0xff] }
 0x404   : > { %v2306_v48 = vmax.f32 %v2178_v0, 0.0  ;;  %v2181_v10 = vadd.f32 %v4504_v54, %v2044_v28  ;;  %v2182_v26 = vadd.f32 %v4506_v46, %v2045_v57  ;;  %v2047_v50 = vmul.f32 %v4480_v60, %v5551_v58  ;;  %v5560_v15 = vld [vmem:[#allocation136_spill] sm:$0xff]  ;;  %v5563_v58 = vld [vmem:[#allocation78_spill] sm:$0xff] }
 0x405   : > { %2447 = vst [vmem:[%s3462_s29 + $0x180] sm:$0xff] %v2383_v41  ;;  %v2307_v13 = vmax.f32 %v2179_v43, 0.0  ;;  %v2308_v55 = vmax.f32 %v2180_v24, 0.0  ;;  %v2183_v33 = vadd.f32 %v4500_v37, %v2046_v8  ;;  %v2048_v17 = vmul.f32 %v4482_v32, %v5552_v11  ;;  %v5561_v43 = vld [vmem:[#allocation137_spill] sm:$0xff] }
 0x406   : > { %v2384_v9 = vpack.c.bf16 %v2306_v48, %v2305_v12  ;;  %v2309_v30 = vmax.f32 %v2181_v10, 0.0  ;;  %v2310_v40 = vmax.f32 %v2182_v26, 0.0  ;;  %v2184_v36 = vadd.f32 %v4502_v31, %v2047_v50  ;;  %v5562_v10 = vld [vmem:[#allocation77_spill] sm:$0xff] }
 0x407   : > { %v2385_v4 = vpack.c.bf16 %v2308_v55, %v2307_v13  ;;  %v2311_v3 = vmax.f32 %v2183_v33, 0.0  ;;  %v2049_v27 = vmul.f32 %v4484_v2, %v5553_v39  ;;  %v2185_v21 = vadd.f32 %v4504_v54, %v2048_v17  ;;  %v5564_v33 = vld [vmem:[#allocation138_spill] sm:$0xff]  ;;  %v5565_v17 = vld [vmem:[#allocation139_spill] sm:$0xff] }
 0x408   : > { %2448 = vst [vmem:[%s3462_s29 + $0x188] sm:$0xff] %v2384_v9  ;;  %v2386_v59 = vpack.c.bf16 %v2310_v40, %v2309_v30  ;;  %v2312_v49 = vmax.f32 %v2184_v36, 0.0  ;;  %v2050_v6 = vmul.f32 %v4478_v16, %v5554_v14  ;;  %v2051_v56 = vmul.f32 %v4480_v60, %v5555_v47 }
 0x409   : > { %2449 = vst [vmem:[%s3462_s29 + $0x190] sm:$0xff] %v2385_v4  ;;  %v2186_v44 = vadd.f32 %v4506_v46, %v2049_v27  ;;  %v2313_v18 = vmax.f32 %v2185_v21, 0.0  ;;  %v2052_v51 = vmul.f32 %v4482_v32, %v5556_v20  ;;  %v2053_v23 = vmul.f32 %v4484_v2, %v5557_v42  ;;  %v5566_v4 = vld [vmem:[#allocation79_spill] sm:$0xff] }
 0x40a   : > { %2450 = vst [vmem:[%s3462_s29 + $0x198] sm:$0xff] %v2386_v59  ;;  %v2387_v63 = vpack.c.bf16 %v2312_v49, %v2311_v3  ;;  %v2187_v38 = vadd.f32 %v4500_v37, %v2050_v6  ;;  %v2188_v25 = vadd.f32 %v4502_v31, %v2051_v56  ;;  %v2054_v52 = vmul.f32 %v4478_v16, %v5558_v45  ;;  %v5567_v59 = vld [vmem:[#allocation80_spill] sm:$0xff] }
 0x40b   : > { %v2314_v61 = vmax.f32 %v2186_v44, 0.0  ;;  %v2189_v62 = vadd.f32 %v4504_v54, %v2052_v51  ;;  %v2190_v1 = vadd.f32 %v4506_v46, %v2053_v23  ;;  %v2055_v29 = vmul.f32 %v4480_v60, %v5559_v34  ;;  %v5568_v56 = vld [vmem:[#allocation140_spill] sm:$0xff]  ;;  %v5571_v34 = vld [vmem:[#allocation82_spill] sm:$0xff] }
 0x40c   : > { %2451 = vst [vmem:[%s3462_s29 + $0x1a0] sm:$0xff] %v2387_v63  ;;  %v2315_v7 = vmax.f32 %v2187_v38, 0.0  ;;  %v2316_v53 = vmax.f32 %v2188_v25, 0.0  ;;  %v2191_v22 = vadd.f32 %v4500_v37, %v2054_v52  ;;  %v2056_v0 = vmul.f32 %v4482_v32, %v5560_v15  ;;  %v5569_v38 = vld [vmem:[#allocation141_spill] sm:$0xff] }
 0x40d   : > { %v2388_v12 = vpack.c.bf16 %v2314_v61, %v2313_v18  ;;  %v2317_v5 = vmax.f32 %v2189_v62, 0.0  ;;  %v2318_v28 = vmax.f32 %v2190_v1, 0.0  ;;  %v2192_v19 = vadd.f32 %v4502_v31, %v2055_v29  ;;  %v5570_v62 = vld [vmem:[#allocation81_spill] sm:$0xff] }
 0x40e   : > { %v2389_v57 = vpack.c.bf16 %v2316_v53, %v2315_v7  ;;  %v2319_v41 = vmax.f32 %v2191_v22, 0.0  ;;  %v2057_v24 = vmul.f32 %v4484_v2, %v5561_v43  ;;  %v2193_v35 = vadd.f32 %v4504_v54, %v2056_v0  ;;  %v5572_v22 = vld [vmem:[#allocation142_spill] sm:$0xff]  ;;  %v5573_v0 = vld [vmem:[#allocation143_spill] sm:$0xff] }
 0x40f   : > { %2452 = vst [vmem:[%s3462_s29 + $0x1a8] sm:$0xff] %v2388_v12  ;;  %v2390_v8 = vpack.c.bf16 %v2318_v28, %v2317_v5  ;;  %v2320_v48 = vmax.f32 %v2192_v19, 0.0  ;;  %v2058_v26 = vmul.f32 %v4478_v16, %v5562_v10  ;;  %v2059_v50 = vmul.f32 %v4480_v60, %v5563_v58 }
 0x410   : > { %2453 = vst [vmem:[%s3462_s29 + $0x1b0] sm:$0xff] %v2389_v57  ;;  %v2194_v13 = vadd.f32 %v4506_v46, %v2057_v24  ;;  %v2321_v55 = vmax.f32 %v2193_v35, 0.0  ;;  %v2060_v11 = vmul.f32 %v4482_v32, %v5564_v33  ;;  %v2061_v9 = vmul.f32 %v4484_v2, %v5565_v17 }
 0x411   : > { %2454 = vst [vmem:[%s3462_s29 + $0x1b8] sm:$0xff] %v2390_v8  ;;  %v2391_v30 = vpack.c.bf16 %v2320_v48, %v2319_v41  ;;  %v2195_v40 = vadd.f32 %v4500_v37, %v2058_v26  ;;  %v2196_v36 = vadd.f32 %v4502_v31, %v2059_v50  ;;  %v2062_v3 = vmul.f32 %v4478_v16, %v5566_v4 }
 0x412   : > { %v2322_v39 = vmax.f32 %v2194_v13, 0.0  ;;  %v2197_v27 = vadd.f32 %v4504_v54, %v2060_v11  ;;  %v2198_v21 = vadd.f32 %v4506_v46, %v2061_v9  ;;  %v2063_v49 = vmul.f32 %v4480_v60, %v5567_v59 }
 0x413   : > { %2455 = vst [vmem:[%s3462_s29 + $0x1c0] sm:$0xff] %v2391_v30  ;;  %v2323_v14 = vmax.f32 %v2195_v40, 0.0  ;;  %v2324_v6 = vmax.f32 %v2196_v36, 0.0  ;;  %v2199_v47 = vadd.f32 %v4500_v37, %v2062_v3  ;;  %v2064_v44 = vmul.f32 %v4482_v32, %v5568_v56 }
 0x414   : > { %v2392_v18 = vpack.c.bf16 %v2322_v39, %v2321_v55  ;;  %v2325_v20 = vmax.f32 %v2197_v27, 0.0  ;;  %v2326_v51 = vmax.f32 %v2198_v21, 0.0  ;;  %v2200_v42 = vadd.f32 %v4502_v31, %v2063_v49 }
 0x415   : > { %v2393_v23 = vpack.c.bf16 %v2324_v6, %v2323_v14  ;;  %v2327_v63 = vmax.f32 %v2199_v47, 0.0  ;;  %v2065_v25 = vmul.f32 %v4484_v2, %v5569_v38  ;;  %v2201_v45 = vadd.f32 %v4504_v54, %v2064_v44 }
 0x416   : > { %2456 = vst [vmem:[%s3462_s29 + $0x1c8] sm:$0xff] %v2392_v18  ;;  %v2394_v52 = vpack.c.bf16 %v2326_v51, %v2325_v20  ;;  %v2328_v61 = vmax.f32 %v2200_v42, 0.0  ;;  %v2066_v1 = vmul.f32 %v4478_v16, %v5570_v62  ;;  %v2067_v29 = vmul.f32 %v4480_v60, %v5571_v34 }
 0x417   : > { %2457 = vst [vmem:[%s3462_s29 + $0x1d0] sm:$0xff] %v2393_v23  ;;  %v2202_v7 = vadd.f32 %v4506_v46, %v2065_v25  ;;  %v2329_v53 = vmax.f32 %v2201_v45, 0.0  ;;  %v2068_v15 = vmul.f32 %v4482_v32, %v5572_v22  ;;  %v2069_v12 = vmul.f32 %v4484_v2, %v5573_v0 }
 0x418   : > { %2458 = vst [vmem:[%s3462_s29 + $0x1d8] sm:$0xff] %v2394_v52  ;;  %v2395_v5 = vpack.c.bf16 %v2328_v61, %v2327_v63  ;;  %v2203_v16 = vadd.f32 %v4500_v37, %v2066_v1  ;;  %v2204_v28 = vadd.f32 %v4502_v31, %v2067_v29 }
 0x419   : > { %v2330_v60 = vmax.f32 %v2202_v7, 0.0  ;;  %v2205_v19 = vadd.f32 %v4504_v54, %v2068_v15  ;;  %v2206_v57 = vadd.f32 %v4506_v46, %v2069_v12 }
 0x41a   : > { %2459 = vst [vmem:[%s3462_s29 + $0x1e0] sm:$0xff] %v2395_v5  ;;  %v2331_v41 = vmax.f32 %v2203_v16, 0.0  ;;  %v2332_v32 = vmax.f32 %v2204_v28, 0.0 }
 0x41b   : > { %v2396_v43 = vpack.c.bf16 %v2330_v60, %v2329_v53  ;;  %v2333_v24 = vmax.f32 %v2205_v19, 0.0  ;;  %v2334_v35 = vmax.f32 %v2206_v57, 0.0 }
 0x41c   : > { %v2397_v2 = vpack.c.bf16 %v2332_v32, %v2331_v41 }
 0x41d   : > { %2460 = vst [vmem:[%s3462_s29 + $0x1e8] sm:$0xff] %v2396_v43  ;;  %v2398_v8 = vpack.c.bf16 %v2334_v35, %v2333_v24 }
 0x41e   : > { %2461 = vst [vmem:[%s3462_s29 + $0x1f0] sm:$0xff] %v2397_v2 }
 0x41f   : > { %2462 = vst [vmem:[%s3462_s29 + $0x1f8] sm:$0xff] %v2398_v8 }
 0x420 PF: > { %s2471_s25 = smul.u32 %s3261_s18, %s3265_s19  ;;  %s2478_s26 = sshll.u32 %s3462_s29, 4  ;;  %s2479_s26 = int_to_ptr.vmem [resolvable:$true] %s2478_s26 }
 0x421   : > { %s5574_s7 = sld [smem:[#allocation146_spill]]  ;;  %s2464_s24 = scalar_lea.sflag [#allocation6], %s234_s3 }
 0x422   : > { %s2930_s15 = sshll.u32 %s2471_s25, 9 }
 0x427   : > { %s2477_s10 = scalar_lea.hbm %s5574_s7, %s2930_s15  ;;  %s3171_s19 = scalar_lea.hbm %s5574_s7, 1024 }
 0x428   : > { %s2480_s23 = sshll.u32 %s2477_s10, 4  ;;  %s2481_s23 = int_to_ptr.hbm [resolvable:$true] %s2480_s23 }
 0x429   : > { %s3165_s5 = sshra.s32 %s2481_s23, 4  ;;  %s3166_s5 = int_to_ptr.hbm [resolvable:$true] %s3165_s5 }
 0x42a   : > { %s3167_s6 = scalar_lea.hbm %s3166_s5, 512  ;;  %p3172_p8 = scmp.lt.s32.totalorder %s3166_s5, %s5574_s7 }
 0x42b   : > { %p3168_p3 = scmp.ne.s32.totalorder %s3166_s5, %s3167_s6  ;;  %p3173_p9 = scmp.lt.s32.totalorder %s3171_s19, %s3167_s6 }
 0x42d   : > { %p3169_p5 = pnand %p3168_p3, %p3376_p6  ;;  %p3174_p12 = por %p3173_p9, %p3172_p8 }
 0x42f   : > { %p3170_p7 = pneg %p3169_p5 }
 0x431   : > { %p3175_p13 = pnand %p3174_p12, %p3170_p7 }
 0x433   : > { %3178 = shalt.err (!%p3175_p13)
}
 0x434   : > { %s3284_s11 = smov 256   ;;  %s3285_s12 = smov 16  }
 0x435   : > { %2941 = dma.vmem_to_hbm [thread:$0]  (%p3376_p6), %s2479_s26, 8192, %s2481_s23, %s2464_s24, %s3284_s11, %s3284_s11, %s3285_s12  }
 0x436 PF: > { %s5575_s3 = sld [smem:[#allocation14_spill]]  ;;  %p2963_p11 = scmp.ge.s32.totalorder %s3277_s22, 2 }
 0x438   : > { %p2955_p0 = pnand %p2963_p11, %p3382_p10 }
 0x43a   : > { %p2956_p2 = pneg %p2955_p0 }
 0x43c   : > { %s2495_s29 = sand.u32 1, %s5575_s3  }
 0x43d   : > { %s2496_s25 = scalar_lea.sflag [#allocation6], %s2495_s29 }
 0x43e   : > { %3232 = dma.done.wait (%p2956_p2), %s2496_s25, 8192  }
 0x43f   : > { %3234 = vsyncadd (%p2956_p2), %s2496_s25, 4294959104  ;;  %s20_s22 = sadd.s32 1, %s3277_s22   ;;  %s5577_s19 = sld [smem:[#allocation15_spill]] }
 0x440   : > { %p17_p1 = scmp.ge.s32.totalorder %s20_s22, 6   ;;  %s5578_s27 = sld [smem:[#allocation17_spill]] }
 0x441   : > { %s5579_s21 = sld [smem:[#allocation18_spill]]  ;;  %s5580_s12 = smov %s3241_s13 }
 0x442   : > { %s5581_s13 = smov %s3245_s14  ;;  %s5582_s14 = smov %s3432_s1 }
 0x443   : > { %s5583_s15 = smov %s3253_s16  ;;  %s5584_s16 = smov %s3257_s17 }
 0x444   : > { %s5585_s17 = smov %s3423_s9  ;;  %s5586_s18 = smov %s3269_s20 }
 0x445   :  { %19 = sbr.rel (!%p17_p1) target bundleno = 14 (0xe), region = 98 }
 0x446   : > { %s5587_s20 = smov %s5578_s27 }
 0x44a   :  { %2502 = vsyncpa [#allocation5], 1 }
 0x44b   :  { %2504 = vsyncpa [#allocation5 + $0x1], 1 }
 0x44c   :  { %2505 = vsyncpa [#allocation8], 1 }
 0x44d   :  { %2506 = vsyncpa [#allocation6], 1 }
 0x44e   :  { %2508 = vsyncpa [#allocation6 + $0x1], 1 }

</bundles_post_ra>
